<compile_context>
chip_gen: v6e
topology: v6e:2x2x1
jax: 0.10.0
libtpu: 0.0.40
codegen_flags: <defaults>
</compile_context>

<pallas_src>
import functools

import jax
import jax.numpy as jnp
from jax.experimental import pallas as pl
from jax.experimental.pallas import tpu as pltpu

EPS = 1e-5
NEG_INF = -1e30                       # finite stand-in for the -inf causal mask
VMEM_LIMIT_BYTES = 48 * 1024 * 1024   # headroom on v7x (64 MiB physical VMEM)


def _layernorm(x, g, b):
    mu = jnp.mean(x, axis=-1, keepdims=True)
    var = jnp.mean((x - mu) ** 2, axis=-1, keepdims=True)
    return (x - mu) * jax.lax.rsqrt(var + EPS) * g + b


# ---------------------------------------------------------------------------
# Shared math for one CLIP residual attention block on a [TB, S, W] slab.
# ---------------------------------------------------------------------------
def _residual_block(x, attn_ref, ln1g, ln1b, wqkv, bqkv, wo, bo,
                    ln2g, ln2b, wfc, bfc, wpr, bpr, *, num_heads):
    TB, S, W = x.shape
    dh = W // num_heads
    scale = dh ** -0.5

    # Residual stream kept in f32, flattened so matmul M = TB*S fills the MXU.
    xf = x.reshape(TB * S, W)

    # --- multi-head self-attention (pre-LN, causal mask) ---
    xn = _layernorm(xf, ln1g, ln1b)
    qkv = jnp.dot(xn.astype(jnp.bfloat16), wqkv,
                  preferred_element_type=jnp.float32) + bqkv

    # Causal mask built in-kernel: VPU filler, no DMA'd [S, S] operand.
    row_ids = jax.lax.broadcasted_iota(jnp.int32, (S, S), 0)
    col_ids = jax.lax.broadcasted_iota(jnp.int32, (S, S), 1)
    mask = jnp.where(col_ids > row_ids, NEG_INF, 0.0).astype(jnp.float32)

    # Static loop over heads; each iteration is batched over the TB sequences
    # with single-batch-dim einsums (reliably lowered by Mosaic).  Per-head
    # outputs go straight into a VMEM scratch slab — no jnp.concatenate.
    for h in range(num_heads):
        qh = (qkv[:, h * dh:(h + 1) * dh] * scale).reshape(TB, S, dh)
        kh = qkv[:, W + h * dh:W + (h + 1) * dh].reshape(TB, S, dh)
        vh = qkv[:, 2 * W + h * dh:2 * W + (h + 1) * dh].reshape(TB, S, dh)
        s = jnp.einsum('bqd,bkd->bqk',
                       qh.astype(jnp.bfloat16), kh.astype(jnp.bfloat16),
                       preferred_element_type=jnp.float32) + mask
        s = s - jnp.max(s, axis=-1, keepdims=True)
        e = jnp.exp(s)
        p = e * pl.reciprocal(jnp.sum(e, axis=-1, keepdims=True), approx=True)
        oh = jnp.einsum('bqk,bkd->bqd',
                        p.astype(jnp.bfloat16), vh.astype(jnp.bfloat16),
                        preferred_element_type=jnp.float32)
        attn_ref[:, :, h * dh:(h + 1) * dh] = oh

    attn = attn_ref[...].reshape(TB * S, W)
    attn = jnp.dot(attn.astype(jnp.bfloat16), wo,
                   preferred_element_type=jnp.float32) + bo
    xf = xf + attn

    # --- MLP with QuickGELU (OpenAI CLIP) ---
    xn2 = _layernorm(xf, ln2g, ln2b)
    hid = jnp.dot(xn2.astype(jnp.bfloat16), wfc,
                  preferred_element_type=jnp.float32) + bfc
    hid = hid * jax.nn.sigmoid(1.702 * hid)
    mlp = jnp.dot(hid.astype(jnp.bfloat16), wpr,
                  preferred_element_type=jnp.float32) + bpr
    xf = xf + mlp

    return xf.reshape(TB, S, W)


# ---------------------------------------------------------------------------
# Kernel 1 (fused): all layers for one block of TB sequences.
# grid = (B // TB, L); output block revisited across the layer axis, so the
# residual stream stays in VMEM for the whole depth of the transformer.
# ---------------------------------------------------------------------------
def fused_transformer_kernel(x_ref, ln1g_ref, ln1b_ref, wqkv_ref, bqkv_ref,
                             wo_ref, bo_ref, ln2g_ref, ln2b_ref,
                             wfc_ref, bfc_ref, wpr_ref, bpr_ref,
                             o_ref, attn_ref, *, num_heads):
    @pl.when(pl.program_id(1) == 0)
    def _():
        o_ref[...] = x_ref[...].astype(o_ref.dtype)

    x = o_ref[...].astype(jnp.float32)
    x = _residual_block(
        x, attn_ref,
        ln1g_ref[...], ln1b_ref[...], wqkv_ref[...], bqkv_ref[...],
        wo_ref[...], bo_ref[...], ln2g_ref[...], ln2b_ref[...],
        wfc_ref[...], bfc_ref[...], wpr_ref[...], bpr_ref[...],
        num_heads=num_heads)
    o_ref[...] = x.astype(o_ref.dtype)


# Layer-by-layer fallback kernel (same math, one layer per pallas_call).
def single_layer_kernel(x_ref, ln1g_ref, ln1b_ref, wqkv_ref, bqkv_ref,
                        wo_ref, bo_ref, ln2g_ref, ln2b_ref,
                        wfc_ref, bfc_ref, wpr_ref, bpr_ref,
                        o_ref, attn_ref, *, num_heads):
    x = x_ref[...].astype(jnp.float32)
    x = _residual_block(
        x, attn_ref,
        ln1g_ref[...], ln1b_ref[...], wqkv_ref[...], bqkv_ref[...],
        wo_ref[...], bo_ref[...], ln2g_ref[...], ln2b_ref[...],
        wfc_ref[...], bfc_ref[...], wpr_ref[...], bpr_ref[...],
        num_heads=num_heads)
    o_ref[...] = x.astype(o_ref.dtype)


def _stack_layer_params(layers):
    """Stack per-layer params along a new leading layer axis; bf16 matmul weights."""
    cols = list(zip(*layers))
    stacked = [jnp.stack(c, axis=0) for c in cols]
    for i in (2, 4, 8, 10):                       # wqkv, wo, wfc, wpr
        stacked[i] = stacked[i].astype(jnp.bfloat16)
    return stacked


def _transformer_stack_layerwise(x, stacked, *, num_heads, block_b):
    B, S, W = x.shape
    L = stacked[2].shape[0]
    kernel = functools.partial(single_layer_kernel, num_heads=num_heads)
    xmap = lambda b: (b, 0, 0)
    for layer in range(L):
        wmap = lambda b, _l=layer: (_l, 0, 0)
        in_specs = [pl.BlockSpec((block_b, S, W), xmap)]
        in_specs += [pl.BlockSpec((None,) + tuple(p.shape[1:]), wmap)
                     for p in stacked]
        x = pl.pallas_call(
            kernel,
            out_shape=jax.ShapeDtypeStruct((B, S, W), jnp.float32),
            grid=(B // block_b,),
            in_specs=in_specs,
            out_specs=pl.BlockSpec((block_b, S, W), xmap),
            scratch_shapes=[pltpu.VMEM((block_b, S, W), jnp.float32)],
            compiler_params=pltpu.CompilerParams(
                dimension_semantics=("parallel",),
                vmem_limit_bytes=VMEM_LIMIT_BYTES),
        )(x, *stacked)
    return x


def transformer_stack(x, stacked, *, num_heads, block_b):
    B, S, W = x.shape
    L = stacked[2].shape[0]
    kernel = functools.partial(fused_transformer_kernel, num_heads=num_heads)
    xmap = lambda b, l: (b, 0, 0)        # residual block: constant over layers
    wmap = lambda b, l: (l, 0, 0)        # weights: indexed by layer grid axis
    in_specs = [pl.BlockSpec((block_b, S, W), xmap)]
    in_specs += [pl.BlockSpec((None,) + tuple(p.shape[1:]), wmap)
                 for p in stacked]
    try:
        return pl.pallas_call(
            kernel,
            out_shape=jax.ShapeDtypeStruct((B, S, W), jnp.float32),
            grid=(B // block_b, L),
            in_specs=in_specs,
            out_specs=pl.BlockSpec((block_b, S, W), xmap),
            scratch_shapes=[pltpu.VMEM((block_b, S, W), jnp.float32)],
            compiler_params=pltpu.CompilerParams(
                dimension_semantics=("parallel", "arbitrary"),
                vmem_limit_bytes=VMEM_LIMIT_BYTES),
        )(x, *stacked)
    except Exception:
        # Fallback: one pallas_call per layer (identical math) if this build
        # rejects the fused grid layout.
        return _transformer_stack_layerwise(x, stacked, num_heads=num_heads,
                                            block_b=block_b)


# ---------------------------------------------------------------------------
# Kernel 2: EOT-token gather + ln_final (on the gathered rows only) + proj.
# One grid step; a single [B, W] x [W, E] matmul instead of B row matmuls.
# ---------------------------------------------------------------------------
def head_kernel(x_ref, eot_ref, g_ref, b_ref, proj_ref, o_ref):
    B, S, W = x_ref.shape
    x = x_ref[...].astype(jnp.float32).reshape(B * S, W)
    # one-hot row selector: onehot[b, b*S + eot[b]] = 1
    col_ids = jax.lax.broadcasted_iota(jnp.int32, (B, B * S), 1)
    row_ids = jax.lax.broadcasted_iota(jnp.int32, (B, B * S), 0)
    onehot = (col_ids == row_ids * S + eot_ref[...]).astype(jnp.float32)
    rows = jnp.dot(onehot, x, preferred_element_type=jnp.float32)     # [B, W]
    rows = _layernorm(rows, g_ref[...], b_ref[...])
    out = jnp.dot(rows.astype(jnp.bfloat16), proj_ref[...],
                  preferred_element_type=jnp.float32)                 # [B, E]
    o_ref[...] = out.astype(o_ref.dtype)


def text_head(x, eot_idx, lnf_g, lnf_b, proj):
    # TODO(synk): block over the batch axis for very large prompt counts
    # (this single-step version assumes the whole [B, S, W] block fits VMEM).
    B, S, W = x.shape
    E = proj.shape[1]
    return pl.pallas_call(
        head_kernel,
        out_shape=jax.ShapeDtypeStruct((B, E), x.dtype),
        grid=(1,),
        in_specs=[
            pl.BlockSpec((B, S, W), lambda i: (0, 0, 0)),
            pl.BlockSpec((B, 1), lambda i: (0, 0)),
            pl.BlockSpec((1, W), lambda i: (0, 0)),
            pl.BlockSpec((1, W), lambda i: (0, 0)),
            pl.BlockSpec((W, E), lambda i: (0, 0)),
        ],
        out_specs=pl.BlockSpec((B, E), lambda i: (0, 0)),
        compiler_params=pltpu.CompilerParams(
            vmem_limit_bytes=VMEM_LIMIT_BYTES),
    )(x, eot_idx, lnf_g, lnf_b, proj.astype(jnp.bfloat16))


# ---------------------------------------------------------------------------
# Full TextEncoder forward.
# ---------------------------------------------------------------------------
def _pick_block_b(B, S):
    # Largest divisor of B whose flattened block (TB*S rows) stays near the
    # MXU's 256-row sweet spot (allow up to 512 rows per grid step).
    best = 1
    for cand in range(1, B + 1):
        if B % cand == 0 and cand * S <= 512:
            best = cand
    return best


def text_encoder_forward(prompts, tokenized_prompts, params, *, num_heads):
    pos_emb, layers, lnf_g, lnf_b, proj = params
    B, S, W = prompts.shape
    x = (prompts + pos_emb[None, :, :]).astype(jnp.float32)
    block_b = _pick_block_b(B, S)
    stacked = _stack_layer_params(layers)
    x = transformer_stack(x, stacked, num_heads=num_heads, block_b=block_b)
    eot_idx = jnp.argmax(tokenized_prompts, axis=-1).astype(jnp.int32)[:, None]
    return text_head(x, eot_idx, lnf_g, lnf_b, proj)


# ---------------------------------------------------------------------------
# Pure-JAX reference (for correctness check), all f32.
# ---------------------------------------------------------------------------
def reference_forward(prompts, tokenized_prompts, params, *, num_heads):
    pos_emb, layers, lnf_g, lnf_b, proj = params
    B, S, W = prompts.shape
    dh = W // num_heads
    x = prompts + pos_emb[None, :, :]
    row = jnp.arange(S)
    mask = jnp.where(row[None, :] > row[:, None], NEG_INF, 0.0)
    for (g1, b1, wqkv, bqkv, wo, bo, g2, b2, wfc, bfc, wpr, bpr) in layers:
        xn = _layernorm(x, g1, b1)
        qkv = xn @ wqkv + bqkv
        q, k, v = jnp.split(qkv, 3, axis=-1)
        q = (q * dh ** -0.5).reshape(B, S, num_heads, dh).transpose(0, 2, 1, 3)
        k = k.reshape(B, S, num_heads, dh).transpose(0, 2, 1, 3)
        v = v.reshape(B, S, num_heads, dh).transpose(0, 2, 1, 3)
        s = jnp.einsum('bhqd,bhkd->bhqk', q, k) + mask
        p = jax.nn.softmax(s, axis=-1)
        attn = jnp.einsum('bhqk,bhkd->bhqd', p, v).transpose(0, 2, 1, 3
                                                             ).reshape(B, S, W)
        x = x + attn @ wo + bo
        xn2 = _layernorm(x, g2, b2)
        h = xn2 @ wfc + bfc
        h = h * jax.nn.sigmoid(1.702 * h)
        x = x + h @ wpr + bpr
    xn = _layernorm(x, lnf_g, lnf_b)
    eot = jnp.argmax(tokenized_prompts, axis=-1)
    return xn[jnp.arange(B), eot] @ proj


# ---------------------------------------------------------------------------
# Deterministic parameter construction (master weights in f32).
# ---------------------------------------------------------------------------
def make_params(key, *, num_layers, seq, width, embed_dim):
    keys = iter(jax.random.split(key, 8 + 12 * num_layers))

    def nrm(shape, scale=0.02):
        return (scale * jax.random.normal(next(keys), shape)).astype(jnp.float32)

    pos_emb = nrm((seq, width))
    layers = []
    for _ in range(num_layers):
        layers.append((
            jnp.ones((1, width), jnp.float32),    # ln1 gamma
            jnp.zeros((1, width), jnp.float32),   # ln1 beta
            nrm((width, 3 * width)),              # qkv weight
            nrm((1, 3 * width)),                  # qkv bias
            nrm((width, width)),                  # out-proj weight
            nrm((1, width)),                      # out-proj bias
            jnp.ones((1, width), jnp.float32),    # ln2 gamma
            jnp.zeros((1, width), jnp.float32),   # ln2 beta
            nrm((width, 4 * width)),              # mlp c_fc weight
            nrm((1, 4 * width)),                  # mlp c_fc bias
            nrm((4 * width, width)),              # mlp c_proj weight
            nrm((1, width)),                      # mlp c_proj bias
        ))
    lnf_g = jnp.ones((1, width), jnp.float32)
    lnf_b = jnp.zeros((1, width), jnp.float32)
    proj = nrm((width, embed_dim))
    return (pos_emb, layers, lnf_g, lnf_b, proj)


if __name__ == "__main__":
    B, S, W, H, L, E = 2, 8, 32, 4, 2, 16

    key = jax.random.PRNGKey(0)
    k_prompt, k_tok, k_param = jax.random.split(key, 3)

    prompts = (0.1 * jax.random.normal(k_prompt, (B, S, W))).astype(jnp.float32)
    # synthetic tokenized prompts: EOT token (largest id) at positions 5 and 7
    tokenized = jax.random.randint(k_tok, (B, S), 1, 100, dtype=jnp.int32)
    tokenized = tokenized.at[0, 5].set(1000).at[1, 7].set(1000)

    params = make_params(k_param, num_layers=L, seq=S, width=W, embed_dim=E)

    out = text_encoder_forward(prompts, tokenized, params, num_heads=H)
    out = jax.block_until_ready(out)

    ref = reference_forward(prompts, tokenized, params, num_heads=H)
    assert out.shape == (B, E)
    err = float(jnp.max(jnp.abs(out - ref)))
    # bf16 matmul inputs + approx reciprocal -> slightly looser tolerance
    assert jnp.allclose(out, ref, atol=2e-2, rtol=2e-2), (
        f"mismatch: max abs err {err}")

    print("KERNEL_OK")
</pallas_src>

<mosaic_0001>
module attributes {stable_mosaic.version = 11 : i64} {
  func.func @fused_transformer_kernel(%arg0: i32, %arg1: i32, %arg2: memref<2x8x32xf32, #tpu.memory_space<vmem>>, %arg3: memref<1x1x32xf32, #tpu.memory_space<vmem>>, %arg4: memref<1x1x32xf32, #tpu.memory_space<vmem>>, %arg5: memref<1x32x96xbf16, #tpu.memory_space<vmem>>, %arg6: memref<1x1x96xf32, #tpu.memory_space<vmem>>, %arg7: memref<1x32x32xbf16, #tpu.memory_space<vmem>>, %arg8: memref<1x1x32xf32, #tpu.memory_space<vmem>>, %arg9: memref<1x1x32xf32, #tpu.memory_space<vmem>>, %arg10: memref<1x1x32xf32, #tpu.memory_space<vmem>>, %arg11: memref<1x32x128xbf16, #tpu.memory_space<vmem>>, %arg12: memref<1x1x128xf32, #tpu.memory_space<vmem>>, %arg13: memref<1x128x32xbf16, #tpu.memory_space<vmem>>, %arg14: memref<1x1x32xf32, #tpu.memory_space<vmem>>, %arg15: memref<2x8x32xf32, #tpu.memory_space<vmem>>, %arg16: memref<2x8x32xf32, #tpu.memory_space<vmem>>) attributes {dimension_semantics = [#tpu.dimension_semantics<parallel>, #tpu.dimension_semantics<arbitrary>], iteration_bounds = array<i64: 1, 2>, scalar_prefetch = 0 : i64, scratch_operands = 1 : i64, tpu.core_type = #tpu.core_type<tc>, window_params = [{transform_indices = @transform_0, window_bounds = array<i64: 2, 8, 32>}, {transform_indices = @transform_1, window_bounds = array<i64: 1, 1, 32>}, {transform_indices = @transform_2, window_bounds = array<i64: 1, 1, 32>}, {transform_indices = @transform_3, window_bounds = array<i64: 1, 32, 96>}, {transform_indices = @transform_4, window_bounds = array<i64: 1, 1, 96>}, {transform_indices = @transform_5, window_bounds = array<i64: 1, 32, 32>}, {transform_indices = @transform_6, window_bounds = array<i64: 1, 1, 32>}, {transform_indices = @transform_7, window_bounds = array<i64: 1, 1, 32>}, {transform_indices = @transform_8, window_bounds = array<i64: 1, 1, 32>}, {transform_indices = @transform_9, window_bounds = array<i64: 1, 32, 128>}, {transform_indices = @transform_10, window_bounds = array<i64: 1, 1, 128>}, {transform_indices = @transform_11, window_bounds = array<i64: 1, 128, 32>}, {transform_indices = @transform_12, window_bounds = array<i64: 1, 1, 32>}, {transform_indices = @transform_13, window_bounds = array<i64: 2, 8, 32>}]} {
    %c0_i32 = arith.constant 0 : i32
    %0 = arith.cmpi eq, %arg1, %c0_i32 : i32
    %1 = arith.extui %0 : i1 to i32
    %c0_i32_0 = arith.constant 0 : i32
    %2 = arith.cmpi ne, %1, %c0_i32_0 : i32
    scf.if %2 {
      %c0_91 = arith.constant 0 : index
      %c0_92 = arith.constant 0 : index
      %c0_93 = arith.constant 0 : index
      %221 = vector.load %arg2[%c0_91, %c0_92, %c0_93] : memref<2x8x32xf32, #tpu.memory_space<vmem>>, vector<2x8x32xf32>
      %c0_94 = arith.constant 0 : index
      %c0_95 = arith.constant 0 : index
      %c0_96 = arith.constant 0 : index
      %222 = vector.load %arg15[%c0_94, %c0_95, %c0_96] : memref<2x8x32xf32, #tpu.memory_space<vmem>>, vector<2x8x32xf32>
      tpu.vector_store %arg15[%c0_94, %c0_95, %c0_96], %221 {strides = array<i32>} : memref<2x8x32xf32, #tpu.memory_space<vmem>>, vector<2x8x32xf32>,
    } else {
    }
    %c0 = arith.constant 0 : index
    %c0_1 = arith.constant 0 : index
    %c0_2 = arith.constant 0 : index
    %3 = vector.load %arg15[%c0, %c0_1, %c0_2] : memref<2x8x32xf32, #tpu.memory_space<vmem>>, vector<2x8x32xf32>
    %c0_3 = arith.constant 0 : index
    %c0_4 = arith.constant 0 : index
    %c0_5 = arith.constant 0 : index
    %4 = vector.load %arg3[%c0_3, %c0_4, %c0_5] : memref<1x1x32xf32, #tpu.memory_space<vmem>>, vector<1x1x32xf32>
    %5 = vector.shape_cast %4 : vector<1x1x32xf32> to vector<1x32xf32>
    %c0_6 = arith.constant 0 : index
    %c0_7 = arith.constant 0 : index
    %c0_8 = arith.constant 0 : index
    %6 = vector.load %arg4[%c0_6, %c0_7, %c0_8] : memref<1x1x32xf32, #tpu.memory_space<vmem>>, vector<1x1x32xf32>
    %7 = vector.shape_cast %6 : vector<1x1x32xf32> to vector<1x32xf32>
    %c0_9 = arith.constant 0 : index
    %c0_10 = arith.constant 0 : index
    %c0_11 = arith.constant 0 : index
    %8 = vector.load %arg5[%c0_9, %c0_10, %c0_11] : memref<1x32x96xbf16, #tpu.memory_space<vmem>>, vector<1x32x96xbf16>
    %9 = vector.shape_cast %8 : vector<1x32x96xbf16> to vector<32x96xbf16>
    %c0_12 = arith.constant 0 : index
    %c0_13 = arith.constant 0 : index
    %c0_14 = arith.constant 0 : index
    %10 = vector.load %arg6[%c0_12, %c0_13, %c0_14] : memref<1x1x96xf32, #tpu.memory_space<vmem>>, vector<1x1x96xf32>
    %11 = vector.shape_cast %10 : vector<1x1x96xf32> to vector<1x96xf32>
    %c0_15 = arith.constant 0 : index
    %c0_16 = arith.constant 0 : index
    %c0_17 = arith.constant 0 : index
    %12 = vector.load %arg7[%c0_15, %c0_16, %c0_17] : memref<1x32x32xbf16, #tpu.memory_space<vmem>>, vector<1x32x32xbf16>
    %13 = vector.shape_cast %12 : vector<1x32x32xbf16> to vector<32x32xbf16>
    %c0_18 = arith.constant 0 : index
    %c0_19 = arith.constant 0 : index
    %c0_20 = arith.constant 0 : index
    %14 = vector.load %arg8[%c0_18, %c0_19, %c0_20] : memref<1x1x32xf32, #tpu.memory_space<vmem>>, vector<1x1x32xf32>
    %15 = vector.shape_cast %14 : vector<1x1x32xf32> to vector<1x32xf32>
    %c0_21 = arith.constant 0 : index
    %c0_22 = arith.constant 0 : index
    %c0_23 = arith.constant 0 : index
    %16 = vector.load %arg9[%c0_21, %c0_22, %c0_23] : memref<1x1x32xf32, #tpu.memory_space<vmem>>, vector<1x1x32xf32>
    %17 = vector.shape_cast %16 : vector<1x1x32xf32> to vector<1x32xf32>
    %c0_24 = arith.constant 0 : index
    %c0_25 = arith.constant 0 : index
    %c0_26 = arith.constant 0 : index
    %18 = vector.load %arg10[%c0_24, %c0_25, %c0_26] : memref<1x1x32xf32, #tpu.memory_space<vmem>>, vector<1x1x32xf32>
    %19 = vector.shape_cast %18 : vector<1x1x32xf32> to vector<1x32xf32>
    %c0_27 = arith.constant 0 : index
    %c0_28 = arith.constant 0 : index
    %c0_29 = arith.constant 0 : index
    %20 = vector.load %arg11[%c0_27, %c0_28, %c0_29] : memref<1x32x128xbf16, #tpu.memory_space<vmem>>, vector<1x32x128xbf16>
    %21 = vector.shape_cast %20 : vector<1x32x128xbf16> to vector<32x128xbf16>
    %c0_30 = arith.constant 0 : index
    %c0_31 = arith.constant 0 : index
    %c0_32 = arith.constant 0 : index
    %22 = vector.load %arg12[%c0_30, %c0_31, %c0_32] : memref<1x1x128xf32, #tpu.memory_space<vmem>>, vector<1x1x128xf32>
    %23 = vector.shape_cast %22 : vector<1x1x128xf32> to vector<1x128xf32>
    %c0_33 = arith.constant 0 : index
    %c0_34 = arith.constant 0 : index
    %c0_35 = arith.constant 0 : index
    %24 = vector.load %arg13[%c0_33, %c0_34, %c0_35] : memref<1x128x32xbf16, #tpu.memory_space<vmem>>, vector<1x128x32xbf16>
    %25 = vector.shape_cast %24 : vector<1x128x32xbf16> to vector<128x32xbf16>
    %c0_36 = arith.constant 0 : index
    %c0_37 = arith.constant 0 : index
    %c0_38 = arith.constant 0 : index
    %26 = vector.load %arg14[%c0_36, %c0_37, %c0_38] : memref<1x1x32xf32, #tpu.memory_space<vmem>>, vector<1x1x32xf32>
    %27 = vector.shape_cast %26 : vector<1x1x32xf32> to vector<1x32xf32>
    %28 = vector.shape_cast %3 : vector<2x8x32xf32> to vector<16x32xf32>
    %cst = arith.constant dense<0.000000e+00> : vector<16xf32>
    %29 = vector.multi_reduction <add>, %28, %cst [1] : vector<16x32xf32> to vector<16xf32>
    %30 = vector.shape_cast %29 : vector<16xf32> to vector<16x1xf32>
    %cst_39 = arith.constant 3.200000e+01 : f32
    %31 = vector.broadcast %cst_39 : f32 to vector<16x1xf32>
    %32 = arith.divf %30, %31 : vector<16x1xf32>
    %33 = vector.broadcast %32 : vector<16x1xf32> to vector<16x32xf32>
    %34 = arith.subf %28, %33 : vector<16x32xf32>
    %35 = arith.mulf %34, %34 : vector<16x32xf32>
    %cst_40 = arith.constant dense<0.000000e+00> : vector<16xf32>
    %36 = vector.multi_reduction <add>, %35, %cst_40 [1] : vector<16x32xf32> to vector<16xf32>
    %37 = vector.shape_cast %36 : vector<16xf32> to vector<16x1xf32>
    %cst_41 = arith.constant 3.200000e+01 : f32
    %38 = vector.broadcast %cst_41 : f32 to vector<16x1xf32>
    %39 = arith.divf %37, %38 : vector<16x1xf32>
    %40 = vector.broadcast %32 : vector<16x1xf32> to vector<16x32xf32>
    %41 = arith.subf %28, %40 : vector<16x32xf32>
    %cst_42 = arith.constant 9.99999974E-6 : f32
    %42 = vector.broadcast %cst_42 : f32 to vector<16x1xf32>
    %43 = arith.addf %39, %42 : vector<16x1xf32>
    %44 = math.rsqrt %43 : vector<16x1xf32>
    %45 = vector.broadcast %44 : vector<16x1xf32> to vector<16x32xf32>
    %46 = arith.mulf %41, %45 : vector<16x32xf32>
    %47 = vector.broadcast %5 : vector<1x32xf32> to vector<16x32xf32>
    %48 = arith.mulf %46, %47 : vector<16x32xf32>
    %49 = vector.broadcast %7 : vector<1x32xf32> to vector<16x32xf32>
    %50 = arith.addf %48, %49 : vector<16x32xf32>
    %51 = arith.truncf %50 : vector<16x32xf32> to vector<16x32xbf16>
    %cst_43 = arith.constant dense<0.000000e+00> : vector<16x96xf32>
    %52 = tpu.matmul %51, %9, %cst_43 {dimension_numbers = #tpu.dot_dimension_numbers<[1], [0], [0], [1], [0, 0, 1, 1], [], []>} : vector<16x32xbf16>, vector<32x96xbf16>, vector<16x96xf32> -> vector<16x96xf32>
    %53 = vector.broadcast %11 : vector<1x96xf32> to vector<16x96xf32>
    %54 = arith.addf %52, %53 : vector<16x96xf32>
    %55 = tpu.iota {dimensions = array<i32: 0>} : vector<8x8xi32>
    %56 = tpu.iota {dimensions = array<i32: 1>} : vector<8x8xi32>
    %57 = arith.cmpi sgt, %56, %55 : vector<8x8xi32>
    %cst_44 = arith.constant -1.000000e+30 : f32
    %cst_45 = arith.constant 0.000000e+00 : f32
    %58 = vector.broadcast %cst_44 : f32 to vector<8x8xf32>
    %59 = vector.broadcast %cst_45 : f32 to vector<8x8xf32>
    %60 = arith.select %57, %58, %59 : vector<8x8xi1>, vector<8x8xf32>
    %61 = vector.extract_strided_slice %54 {offsets = [0, 0], sizes = [16, 8], strides = [1, 1]} : vector<16x96xf32> to vector<16x8xf32>
    %cst_46 = arith.constant 0.353553385 : f32
    %62 = vector.broadcast %cst_46 : f32 to vector<16x8xf32>
    %63 = arith.mulf %61, %62 : vector<16x8xf32>
    %64 = vector.shape_cast %63 : vector<16x8xf32> to vector<2x8x8xf32>
    %65 = vector.extract_strided_slice %54 {offsets = [0, 32], sizes = [16, 8], strides = [1, 1]} : vector<16x96xf32> to vector<16x8xf32>
    %66 = vector.shape_cast %65 : vector<16x8xf32> to vector<2x8x8xf32>
    %67 = vector.extract_strided_slice %54 {offsets = [0, 64], sizes = [16, 8], strides = [1, 1]} : vector<16x96xf32> to vector<16x8xf32>
    %68 = vector.shape_cast %67 : vector<16x8xf32> to vector<2x8x8xf32>
    %69 = arith.truncf %64 : vector<2x8x8xf32> to vector<2x8x8xbf16>
    %70 = arith.truncf %66 : vector<2x8x8xf32> to vector<2x8x8xbf16>
    "tpu.trace_start"() <{level = 10 : i32, message = "bqd,bkd->bqk"}> : () -> ()
    %cst_47 = arith.constant dense<0.000000e+00> : vector<2x8x8xf32>
    %71 = tpu.matmul %69, %70, %cst_47 {dimension_numbers = #tpu.dot_dimension_numbers<[2], [2], [1], [1], [0, 0, 0, 1, 1, 1], [0], [0]>} : vector<2x8x8xbf16>, vector<2x8x8xbf16>, vector<2x8x8xf32> -> vector<2x8x8xf32>
    "tpu.trace_stop"() : () -> ()
    %72 = vector.shape_cast %60 : vector<8x8xf32> to vector<1x8x8xf32>
    %73 = vector.broadcast %72 : vector<1x8x8xf32> to vector<2x8x8xf32>
    %74 = arith.addf %71, %73 : vector<2x8x8xf32>
    %cst_48 = arith.constant dense<0xFF800000> : vector<2x8xf32>
    %75 = vector.multi_reduction <maximumf>, %74, %cst_48 [2] : vector<2x8x8xf32> to vector<2x8xf32>
    %76 = vector.shape_cast %75 : vector<2x8xf32> to vector<2x8x1xf32>
    %77 = vector.broadcast %76 : vector<2x8x1xf32> to vector<2x8x8xf32>
    %78 = arith.subf %74, %77 : vector<2x8x8xf32>
    %79 = math.exp %78 : vector<2x8x8xf32>
    %cst_49 = arith.constant dense<0.000000e+00> : vector<2x8xf32>
    %80 = vector.multi_reduction <add>, %79, %cst_49 [2] : vector<2x8x8xf32> to vector<2x8xf32>
    %81 = vector.shape_cast %80 : vector<2x8xf32> to vector<2x8x1xf32>
    %82 = tpu.reciprocal %81 {approx = true} : vector<2x8x1xf32> -> vector<2x8x1xf32>
    %83 = vector.broadcast %82 : vector<2x8x1xf32> to vector<2x8x8xf32>
    %84 = arith.mulf %79, %83 : vector<2x8x8xf32>
    %85 = arith.truncf %84 : vector<2x8x8xf32> to vector<2x8x8xbf16>
    %86 = arith.truncf %68 : vector<2x8x8xf32> to vector<2x8x8xbf16>
    "tpu.trace_start"() <{level = 10 : i32, message = "bqk,bkd->bqd"}> : () -> ()
    %cst_50 = arith.constant dense<0.000000e+00> : vector<2x8x8xf32>
    %87 = tpu.matmul %85, %86, %cst_50 {dimension_numbers = #tpu.dot_dimension_numbers<[2], [1], [1], [2], [0, 0, 0, 1, 1, 2], [0], [0]>} : vector<2x8x8xbf16>, vector<2x8x8xbf16>, vector<2x8x8xf32> -> vector<2x8x8xf32>
    "tpu.trace_stop"() : () -> ()
    %c0_51 = arith.constant 0 : index
    %c0_52 = arith.constant 0 : index
    %c0_53 = arith.constant 0 : index
    %88 = vector.load %arg16[%c0_51, %c0_52, %c0_53] : memref<2x8x32xf32, #tpu.memory_space<vmem>>, vector<2x8x8xf32>
    tpu.vector_store %arg16[%c0_51, %c0_52, %c0_53], %87 {strides = array<i32>} : memref<2x8x32xf32, #tpu.memory_space<vmem>>, vector<2x8x8xf32>,
    %89 = vector.extract_strided_slice %54 {offsets = [0, 8], sizes = [16, 8], strides = [1, 1]} : vector<16x96xf32> to vector<16x8xf32>
    %cst_54 = arith.constant 0.353553385 : f32
    %90 = vector.broadcast %cst_54 : f32 to vector<16x8xf32>
    %91 = arith.mulf %89, %90 : vector<16x8xf32>
    %92 = vector.shape_cast %91 : vector<16x8xf32> to vector<2x8x8xf32>
    %93 = vector.extract_strided_slice %54 {offsets = [0, 40], sizes = [16, 8], strides = [1, 1]} : vector<16x96xf32> to vector<16x8xf32>
    %94 = vector.shape_cast %93 : vector<16x8xf32> to vector<2x8x8xf32>
    %95 = vector.extract_strided_slice %54 {offsets = [0, 72], sizes = [16, 8], strides = [1, 1]} : vector<16x96xf32> to vector<16x8xf32>
    %96 = vector.shape_cast %95 : vector<16x8xf32> to vector<2x8x8xf32>
    %97 = arith.truncf %92 : vector<2x8x8xf32> to vector<2x8x8xbf16>
    %98 = arith.truncf %94 : vector<2x8x8xf32> to vector<2x8x8xbf16>
    "tpu.trace_start"() <{level = 10 : i32, message = "bqd,bkd->bqk"}> : () -> ()
    %cst_55 = arith.constant dense<0.000000e+00> : vector<2x8x8xf32>
    %99 = tpu.matmul %97, %98, %cst_55 {dimension_numbers = #tpu.dot_dimension_numbers<[2], [2], [1], [1], [0, 0, 0, 1, 1, 1], [0], [0]>} : vector<2x8x8xbf16>, vector<2x8x8xbf16>, vector<2x8x8xf32> -> vector<2x8x8xf32>
    "tpu.trace_stop"() : () -> ()
    %100 = vector.shape_cast %60 : vector<8x8xf32> to vector<1x8x8xf32>
    %101 = vector.broadcast %100 : vector<1x8x8xf32> to vector<2x8x8xf32>
    %102 = arith.addf %99, %101 : vector<2x8x8xf32>
    %cst_56 = arith.constant dense<0xFF800000> : vector<2x8xf32>
    %103 = vector.multi_reduction <maximumf>, %102, %cst_56 [2] : vector<2x8x8xf32> to vector<2x8xf32>
    %104 = vector.shape_cast %103 : vector<2x8xf32> to vector<2x8x1xf32>
    %105 = vector.broadcast %104 : vector<2x8x1xf32> to vector<2x8x8xf32>
    %106 = arith.subf %102, %105 : vector<2x8x8xf32>
    %107 = math.exp %106 : vector<2x8x8xf32>
    %cst_57 = arith.constant dense<0.000000e+00> : vector<2x8xf32>
    %108 = vector.multi_reduction <add>, %107, %cst_57 [2] : vector<2x8x8xf32> to vector<2x8xf32>
    %109 = vector.shape_cast %108 : vector<2x8xf32> to vector<2x8x1xf32>
    %110 = tpu.reciprocal %109 {approx = true} : vector<2x8x1xf32> -> vector<2x8x1xf32>
    %111 = vector.broadcast %110 : vector<2x8x1xf32> to vector<2x8x8xf32>
    %112 = arith.mulf %107, %111 : vector<2x8x8xf32>
    %113 = arith.truncf %112 : vector<2x8x8xf32> to vector<2x8x8xbf16>
    %114 = arith.truncf %96 : vector<2x8x8xf32> to vector<2x8x8xbf16>
    "tpu.trace_start"() <{level = 10 : i32, message = "bqk,bkd->bqd"}> : () -> ()
    %cst_58 = arith.constant dense<0.000000e+00> : vector<2x8x8xf32>
    %115 = tpu.matmul %113, %114, %cst_58 {dimension_numbers = #tpu.dot_dimension_numbers<[2], [1], [1], [2], [0, 0, 0, 1, 1, 2], [0], [0]>} : vector<2x8x8xbf16>, vector<2x8x8xbf16>, vector<2x8x8xf32> -> vector<2x8x8xf32>
    "tpu.trace_stop"() : () -> ()
    %c0_59 = arith.constant 0 : index
    %c0_60 = arith.constant 0 : index
    %c8 = arith.constant 8 : index
    %116 = vector.load %arg16[%c0_59, %c0_60, %c8] : memref<2x8x32xf32, #tpu.memory_space<vmem>>, vector<2x8x8xf32>
    tpu.vector_store %arg16[%c0_59, %c0_60, %c8], %115 {strides = array<i32>} : memref<2x8x32xf32, #tpu.memory_space<vmem>>, vector<2x8x8xf32>,
    %117 = vector.extract_strided_slice %54 {offsets = [0, 16], sizes = [16, 8], strides = [1, 1]} : vector<16x96xf32> to vector<16x8xf32>
    %cst_61 = arith.constant 0.353553385 : f32
    %118 = vector.broadcast %cst_61 : f32 to vector<16x8xf32>
    %119 = arith.mulf %117, %118 : vector<16x8xf32>
    %120 = vector.shape_cast %119 : vector<16x8xf32> to vector<2x8x8xf32>
    %121 = vector.extract_strided_slice %54 {offsets = [0, 48], sizes = [16, 8], strides = [1, 1]} : vector<16x96xf32> to vector<16x8xf32>
    %122 = vector.shape_cast %121 : vector<16x8xf32> to vector<2x8x8xf32>
    %123 = vector.extract_strided_slice %54 {offsets = [0, 80], sizes = [16, 8], strides = [1, 1]} : vector<16x96xf32> to vector<16x8xf32>
    %124 = vector.shape_cast %123 : vector<16x8xf32> to vector<2x8x8xf32>
    %125 = arith.truncf %120 : vector<2x8x8xf32> to vector<2x8x8xbf16>
    %126 = arith.truncf %122 : vector<2x8x8xf32> to vector<2x8x8xbf16>
    "tpu.trace_start"() <{level = 10 : i32, message = "bqd,bkd->bqk"}> : () -> ()
    %cst_62 = arith.constant dense<0.000000e+00> : vector<2x8x8xf32>
    %127 = tpu.matmul %125, %126, %cst_62 {dimension_numbers = #tpu.dot_dimension_numbers<[2], [2], [1], [1], [0, 0, 0, 1, 1, 1], [0], [0]>} : vector<2x8x8xbf16>, vector<2x8x8xbf16>, vector<2x8x8xf32> -> vector<2x8x8xf32>
    "tpu.trace_stop"() : () -> ()
    %128 = vector.shape_cast %60 : vector<8x8xf32> to vector<1x8x8xf32>
    %129 = vector.broadcast %128 : vector<1x8x8xf32> to vector<2x8x8xf32>
    %130 = arith.addf %127, %129 : vector<2x8x8xf32>
    %cst_63 = arith.constant dense<0xFF800000> : vector<2x8xf32>
    %131 = vector.multi_reduction <maximumf>, %130, %cst_63 [2] : vector<2x8x8xf32> to vector<2x8xf32>
    %132 = vector.shape_cast %131 : vector<2x8xf32> to vector<2x8x1xf32>
    %133 = vector.broadcast %132 : vector<2x8x1xf32> to vector<2x8x8xf32>
    %134 = arith.subf %130, %133 : vector<2x8x8xf32>
    %135 = math.exp %134 : vector<2x8x8xf32>
    %cst_64 = arith.constant dense<0.000000e+00> : vector<2x8xf32>
    %136 = vector.multi_reduction <add>, %135, %cst_64 [2] : vector<2x8x8xf32> to vector<2x8xf32>
    %137 = vector.shape_cast %136 : vector<2x8xf32> to vector<2x8x1xf32>
    %138 = tpu.reciprocal %137 {approx = true} : vector<2x8x1xf32> -> vector<2x8x1xf32>
    %139 = vector.broadcast %138 : vector<2x8x1xf32> to vector<2x8x8xf32>
    %140 = arith.mulf %135, %139 : vector<2x8x8xf32>
    %141 = arith.truncf %140 : vector<2x8x8xf32> to vector<2x8x8xbf16>
    %142 = arith.truncf %124 : vector<2x8x8xf32> to vector<2x8x8xbf16>
    "tpu.trace_start"() <{level = 10 : i32, message = "bqk,bkd->bqd"}> : () -> ()
    %cst_65 = arith.constant dense<0.000000e+00> : vector<2x8x8xf32>
    %143 = tpu.matmul %141, %142, %cst_65 {dimension_numbers = #tpu.dot_dimension_numbers<[2], [1], [1], [2], [0, 0, 0, 1, 1, 2], [0], [0]>} : vector<2x8x8xbf16>, vector<2x8x8xbf16>, vector<2x8x8xf32> -> vector<2x8x8xf32>
    "tpu.trace_stop"() : () -> ()
    %c0_66 = arith.constant 0 : index
    %c0_67 = arith.constant 0 : index
    %c16 = arith.constant 16 : index
    %144 = vector.load %arg16[%c0_66, %c0_67, %c16] : memref<2x8x32xf32, #tpu.memory_space<vmem>>, vector<2x8x8xf32>
    tpu.vector_store %arg16[%c0_66, %c0_67, %c16], %143 {strides = array<i32>} : memref<2x8x32xf32, #tpu.memory_space<vmem>>, vector<2x8x8xf32>,
    %145 = vector.extract_strided_slice %54 {offsets = [0, 24], sizes = [16, 8], strides = [1, 1]} : vector<16x96xf32> to vector<16x8xf32>
    %cst_68 = arith.constant 0.353553385 : f32
    %146 = vector.broadcast %cst_68 : f32 to vector<16x8xf32>
    %147 = arith.mulf %145, %146 : vector<16x8xf32>
    %148 = vector.shape_cast %147 : vector<16x8xf32> to vector<2x8x8xf32>
    %149 = vector.extract_strided_slice %54 {offsets = [0, 56], sizes = [16, 8], strides = [1, 1]} : vector<16x96xf32> to vector<16x8xf32>
    %150 = vector.shape_cast %149 : vector<16x8xf32> to vector<2x8x8xf32>
    %151 = vector.extract_strided_slice %54 {offsets = [0, 88], sizes = [16, 8], strides = [1, 1]} : vector<16x96xf32> to vector<16x8xf32>
    %152 = vector.shape_cast %151 : vector<16x8xf32> to vector<2x8x8xf32>
    %153 = arith.truncf %148 : vector<2x8x8xf32> to vector<2x8x8xbf16>
    %154 = arith.truncf %150 : vector<2x8x8xf32> to vector<2x8x8xbf16>
    "tpu.trace_start"() <{level = 10 : i32, message = "bqd,bkd->bqk"}> : () -> ()
    %cst_69 = arith.constant dense<0.000000e+00> : vector<2x8x8xf32>
    %155 = tpu.matmul %153, %154, %cst_69 {dimension_numbers = #tpu.dot_dimension_numbers<[2], [2], [1], [1], [0, 0, 0, 1, 1, 1], [0], [0]>} : vector<2x8x8xbf16>, vector<2x8x8xbf16>, vector<2x8x8xf32> -> vector<2x8x8xf32>
    "tpu.trace_stop"() : () -> ()
    %156 = vector.shape_cast %60 : vector<8x8xf32> to vector<1x8x8xf32>
    %157 = vector.broadcast %156 : vector<1x8x8xf32> to vector<2x8x8xf32>
    %158 = arith.addf %155, %157 : vector<2x8x8xf32>
    %cst_70 = arith.constant dense<0xFF800000> : vector<2x8xf32>
    %159 = vector.multi_reduction <maximumf>, %158, %cst_70 [2] : vector<2x8x8xf32> to vector<2x8xf32>
    %160 = vector.shape_cast %159 : vector<2x8xf32> to vector<2x8x1xf32>
    %161 = vector.broadcast %160 : vector<2x8x1xf32> to vector<2x8x8xf32>
    %162 = arith.subf %158, %161 : vector<2x8x8xf32>
    %163 = math.exp %162 : vector<2x8x8xf32>
    %cst_71 = arith.constant dense<0.000000e+00> : vector<2x8xf32>
    %164 = vector.multi_reduction <add>, %163, %cst_71 [2] : vector<2x8x8xf32> to vector<2x8xf32>
    %165 = vector.shape_cast %164 : vector<2x8xf32> to vector<2x8x1xf32>
    %166 = tpu.reciprocal %165 {approx = true} : vector<2x8x1xf32> -> vector<2x8x1xf32>
    %167 = vector.broadcast %166 : vector<2x8x1xf32> to vector<2x8x8xf32>
    %168 = arith.mulf %163, %167 : vector<2x8x8xf32>
    %169 = arith.truncf %168 : vector<2x8x8xf32> to vector<2x8x8xbf16>
    %170 = arith.truncf %152 : vector<2x8x8xf32> to vector<2x8x8xbf16>
    "tpu.trace_start"() <{level = 10 : i32, message = "bqk,bkd->bqd"}> : () -> ()
    %cst_72 = arith.constant dense<0.000000e+00> : vector<2x8x8xf32>
    %171 = tpu.matmul %169, %170, %cst_72 {dimension_numbers = #tpu.dot_dimension_numbers<[2], [1], [1], [2], [0, 0, 0, 1, 1, 2], [0], [0]>} : vector<2x8x8xbf16>, vector<2x8x8xbf16>, vector<2x8x8xf32> -> vector<2x8x8xf32>
    "tpu.trace_stop"() : () -> ()
    %c0_73 = arith.constant 0 : index
    %c0_74 = arith.constant 0 : index
    %c24 = arith.constant 24 : index
    %172 = vector.load %arg16[%c0_73, %c0_74, %c24] : memref<2x8x32xf32, #tpu.memory_space<vmem>>, vector<2x8x8xf32>
    tpu.vector_store %arg16[%c0_73, %c0_74, %c24], %171 {strides = array<i32>} : memref<2x8x32xf32, #tpu.memory_space<vmem>>, vector<2x8x8xf32>,
    %c0_75 = arith.constant 0 : index
    %c0_76 = arith.constant 0 : index
    %c0_77 = arith.constant 0 : index
    %173 = vector.load %arg16[%c0_75, %c0_76, %c0_77] : memref<2x8x32xf32, #tpu.memory_space<vmem>>, vector<2x8x32xf32>
    %174 = vector.shape_cast %173 : vector<2x8x32xf32> to vector<16x32xf32>
    %175 = arith.truncf %174 : vector<16x32xf32> to vector<16x32xbf16>
    %cst_78 = arith.constant dense<0.000000e+00> : vector<16x32xf32>
    %176 = tpu.matmul %175, %13, %cst_78 {dimension_numbers = #tpu.dot_dimension_numbers<[1], [0], [0], [1], [0, 0, 1, 1], [], []>} : vector<16x32xbf16>, vector<32x32xbf16>, vector<16x32xf32> -> vector<16x32xf32>
    %177 = vector.broadcast %15 : vector<1x32xf32> to vector<16x32xf32>
    %178 = arith.addf %176, %177 : vector<16x32xf32>
    %179 = arith.addf %28, %178 : vector<16x32xf32>
    %cst_79 = arith.constant dense<0.000000e+00> : vector<16xf32>
    %180 = vector.multi_reduction <add>, %179, %cst_79 [1] : vector<16x32xf32> to vector<16xf32>
    %181 = vector.shape_cast %180 : vector<16xf32> to vector<16x1xf32>
    %cst_80 = arith.constant 3.200000e+01 : f32
    %182 = vector.broadcast %cst_80 : f32 to vector<16x1xf32>
    %183 = arith.divf %181, %182 : vector<16x1xf32>
    %184 = vector.broadcast %183 : vector<16x1xf32> to vector<16x32xf32>
    %185 = arith.subf %179, %184 : vector<16x32xf32>
    %186 = arith.mulf %185, %185 : vector<16x32xf32>
    %cst_81 = arith.constant dense<0.000000e+00> : vector<16xf32>
    %187 = vector.multi_reduction <add>, %186, %cst_81 [1] : vector<16x32xf32> to vector<16xf32>
    %188 = vector.shape_cast %187 : vector<16xf32> to vector<16x1xf32>
    %cst_82 = arith.constant 3.200000e+01 : f32
    %189 = vector.broadcast %cst_82 : f32 to vector<16x1xf32>
    %190 = arith.divf %188, %189 : vector<16x1xf32>
    %191 = vector.broadcast %183 : vector<16x1xf32> to vector<16x32xf32>
    %192 = arith.subf %179, %191 : vector<16x32xf32>
    %cst_83 = arith.constant 9.99999974E-6 : f32
    %193 = vector.broadcast %cst_83 : f32 to vector<16x1xf32>
    %194 = arith.addf %190, %193 : vector<16x1xf32>
    %195 = math.rsqrt %194 : vector<16x1xf32>
    %196 = vector.broadcast %195 : vector<16x1xf32> to vector<16x32xf32>
    %197 = arith.mulf %192, %196 : vector<16x32xf32>
    %198 = vector.broadcast %17 : vector<1x32xf32> to vector<16x32xf32>
    %199 = arith.mulf %197, %198 : vector<16x32xf32>
    %200 = vector.broadcast %19 : vector<1x32xf32> to vector<16x32xf32>
    %201 = arith.addf %199, %200 : vector<16x32xf32>
    %202 = arith.truncf %201 : vector<16x32xf32> to vector<16x32xbf16>
    %cst_84 = arith.constant dense<0.000000e+00> : vector<16x128xf32>
    %203 = tpu.matmul %202, %21, %cst_84 {dimension_numbers = #tpu.dot_dimension_numbers<[1], [0], [0], [1], [0, 0, 1, 1], [], []>} : vector<16x32xbf16>, vector<32x128xbf16>, vector<16x128xf32> -> vector<16x128xf32>
    %204 = vector.broadcast %23 : vector<1x128xf32> to vector<16x128xf32>
    %205 = arith.addf %203, %204 : vector<16x128xf32>
    %cst_85 = arith.constant 1.702000e+00 : f32
    %206 = vector.broadcast %cst_85 : f32 to vector<16x128xf32>
    %207 = arith.mulf %206, %205 : vector<16x128xf32>
    %208 = arith.negf %207 : vector<16x128xf32>
    %209 = math.exp %208 : vector<16x128xf32>
    %cst_86 = arith.constant 1.000000e+00 : f32
    %210 = vector.broadcast %cst_86 : f32 to vector<16x128xf32>
    %211 = arith.addf %210, %209 : vector<16x128xf32>
    %212 = arith.divf %210, %211 : vector<16x128xf32>
    %213 = arith.mulf %205, %212 : vector<16x128xf32>
    %214 = arith.truncf %213 : vector<16x128xf32> to vector<16x128xbf16>
    %cst_87 = arith.constant dense<0.000000e+00> : vector<16x32xf32>
    %215 = tpu.matmul %214, %25, %cst_87 {dimension_numbers = #tpu.dot_dimension_numbers<[1], [0], [0], [1], [0, 0, 1, 1], [], []>} : vector<16x128xbf16>, vector<128x32xbf16>, vector<16x32xf32> -> vector<16x32xf32>
    %216 = vector.broadcast %27 : vector<1x32xf32> to vector<16x32xf32>
    %217 = arith.addf %215, %216 : vector<16x32xf32>
    %218 = arith.addf %179, %217 : vector<16x32xf32>
    %219 = vector.shape_cast %218 : vector<16x32xf32> to vector<2x8x32xf32>
    %c0_88 = arith.constant 0 : index
    %c0_89 = arith.constant 0 : index
    %c0_90 = arith.constant 0 : index
    %220 = vector.load %arg15[%c0_88, %c0_89, %c0_90] : memref<2x8x32xf32, #tpu.memory_space<vmem>>, vector<2x8x32xf32>
    tpu.vector_store %arg15[%c0_88, %c0_89, %c0_90], %219 {strides = array<i32>} : memref<2x8x32xf32, #tpu.memory_space<vmem>>, vector<2x8x32xf32>,
    return
  }
  func.func @transform_0(%arg0: i32, %arg1: i32) -> (i32, i32, i32) {
    %c0_i32 = arith.constant 0 : i32
    %c0_i32_0 = arith.constant 0 : i32
    %c0_i32_1 = arith.constant 0 : i32
    return %arg0, %c0_i32, %c0_i32_0 : i32, i32, i32
  }
  func.func @transform_1(%arg0: i32, %arg1: i32) -> (i32, i32, i32) {
    %c0_i32 = arith.constant 0 : i32
    %c0_i32_0 = arith.constant 0 : i32
    %c0_i32_1 = arith.constant 0 : i32
    return %arg1, %c0_i32, %c0_i32_0 : i32, i32, i32
  }
  func.func @transform_2(%arg0: i32, %arg1: i32) -> (i32, i32, i32) {
    %c0_i32 = arith.constant 0 : i32
    %c0_i32_0 = arith.constant 0 : i32
    %c0_i32_1 = arith.constant 0 : i32
    return %arg1, %c0_i32, %c0_i32_0 : i32, i32, i32
  }
  func.func @transform_3(%arg0: i32, %arg1: i32) -> (i32, i32, i32) {
    %c0_i32 = arith.constant 0 : i32
    %c0_i32_0 = arith.constant 0 : i32
    %c0_i32_1 = arith.constant 0 : i32
    return %arg1, %c0_i32, %c0_i32_0 : i32, i32, i32
  }
  func.func @transform_4(%arg0: i32, %arg1: i32) -> (i32, i32, i32) {
    %c0_i32 = arith.constant 0 : i32
    %c0_i32_0 = arith.constant 0 : i32
    %c0_i32_1 = arith.constant 0 : i32
    return %arg1, %c0_i32, %c0_i32_0 : i32, i32, i32
  }
  func.func @transform_5(%arg0: i32, %arg1: i32) -> (i32, i32, i32) {
    %c0_i32 = arith.constant 0 : i32
    %c0_i32_0 = arith.constant 0 : i32
    %c0_i32_1 = arith.constant 0 : i32
    return %arg1, %c0_i32, %c0_i32_0 : i32, i32, i32
  }
  func.func @transform_6(%arg0: i32, %arg1: i32) -> (i32, i32, i32) {
    %c0_i32 = arith.constant 0 : i32
    %c0_i32_0 = arith.constant 0 : i32
    %c0_i32_1 = arith.constant 0 : i32
    return %arg1, %c0_i32, %c0_i32_0 : i32, i32, i32
  }
  func.func @transform_7(%arg0: i32, %arg1: i32) -> (i32, i32, i32) {
    %c0_i32 = arith.constant 0 : i32
    %c0_i32_0 = arith.constant 0 : i32
    %c0_i32_1 = arith.constant 0 : i32
    return %arg1, %c0_i32, %c0_i32_0 : i32, i32, i32
  }
  func.func @transform_8(%arg0: i32, %arg1: i32) -> (i32, i32, i32) {
    %c0_i32 = arith.constant 0 : i32
    %c0_i32_0 = arith.constant 0 : i32
    %c0_i32_1 = arith.constant 0 : i32
    return %arg1, %c0_i32, %c0_i32_0 : i32, i32, i32
  }
  func.func @transform_9(%arg0: i32, %arg1: i32) -> (i32, i32, i32) {
    %c0_i32 = arith.constant 0 : i32
    %c0_i32_0 = arith.constant 0 : i32
    %c0_i32_1 = arith.constant 0 : i32
    return %arg1, %c0_i32, %c0_i32_0 : i32, i32, i32
  }
  func.func @transform_10(%arg0: i32, %arg1: i32) -> (i32, i32, i32) {
    %c0_i32 = arith.constant 0 : i32
    %c0_i32_0 = arith.constant 0 : i32
    %c0_i32_1 = arith.constant 0 : i32
    return %arg1, %c0_i32, %c0_i32_0 : i32, i32, i32
  }
  func.func @transform_11(%arg0: i32, %arg1: i32) -> (i32, i32, i32) {
    %c0_i32 = arith.constant 0 : i32
    %c0_i32_0 = arith.constant 0 : i32
    %c0_i32_1 = arith.constant 0 : i32
    return %arg1, %c0_i32, %c0_i32_0 : i32, i32, i32
  }
  func.func @transform_12(%arg0: i32, %arg1: i32) -> (i32, i32, i32) {
    %c0_i32 = arith.constant 0 : i32
    %c0_i32_0 = arith.constant 0 : i32
    %c0_i32_1 = arith.constant 0 : i32
    return %arg1, %c0_i32, %c0_i32_0 : i32, i32, i32
  }
  func.func @transform_13(%arg0: i32, %arg1: i32) -> (i32, i32, i32) {
    %c0_i32 = arith.constant 0 : i32
    %c0_i32_0 = arith.constant 0 : i32
    %c0_i32_1 = arith.constant 0 : i32
    return %arg0, %c0_i32, %c0_i32_0 : i32, i32, i32
  }
}

module attributes {stable_mosaic.version = 11 : i64} {
  func.func @single_layer_kernel(%arg0: i32, %arg1: memref<2x8x32xf32, #tpu.memory_space<vmem>>, %arg2: memref<1x1x32xf32, #tpu.memory_space<vmem>>, %arg3: memref<1x1x32xf32, #tpu.memory_space<vmem>>, %arg4: memref<1x32x96xbf16, #tpu.memory_space<vmem>>, %arg5: memref<1x1x96xf32, #tpu.memory_space<vmem>>, %arg6: memref<1x32x32xbf16, #tpu.memory_space<vmem>>, %arg7: memref<1x1x32xf32, #tpu.memory_space<vmem>>, %arg8: memref<1x1x32xf32, #tpu.memory_space<vmem>>, %arg9: memref<1x1x32xf32, #tpu.memory_space<vmem>>, %arg10: memref<1x32x128xbf16, #tpu.memory_space<vmem>>, %arg11: memref<1x1x128xf32, #tpu.memory_space<vmem>>, %arg12: memref<1x128x32xbf16, #tpu.memory_space<vmem>>, %arg13: memref<1x1x32xf32, #tpu.memory_space<vmem>>, %arg14: memref<2x8x32xf32, #tpu.memory_space<vmem>>, %arg15: memref<2x8x32xf32, #tpu.memory_space<vmem>>) attributes {dimension_semantics = [#tpu.dimension_semantics<parallel>], iteration_bounds = array<i64: 1>, scalar_prefetch = 0 : i64, scratch_operands = 1 : i64, tpu.core_type = #tpu.core_type<tc>, window_params = [{transform_indices = @transform_0, window_bounds = array<i64: 2, 8, 32>}, {transform_indices = @transform_1, window_bounds = array<i64: 1, 1, 32>}, {transform_indices = @transform_2, window_bounds = array<i64: 1, 1, 32>}, {transform_indices = @transform_3, window_bounds = array<i64: 1, 32, 96>}, {transform_indices = @transform_4, window_bounds = array<i64: 1, 1, 96>}, {transform_indices = @transform_5, window_bounds = array<i64: 1, 32, 32>}, {transform_indices = @transform_6, window_bounds = array<i64: 1, 1, 32>}, {transform_indices = @transform_7, window_bounds = array<i64: 1, 1, 32>}, {transform_indices = @transform_8, window_bounds = array<i64: 1, 1, 32>}, {transform_indices = @transform_9, window_bounds = array<i64: 1, 32, 128>}, {transform_indices = @transform_10, window_bounds = array<i64: 1, 1, 128>}, {transform_indices = @transform_11, window_bounds = array<i64: 1, 128, 32>}, {transform_indices = @transform_12, window_bounds = array<i64: 1, 1, 32>}, {transform_indices = @transform_13, window_bounds = array<i64: 2, 8, 32>}]} {
    %c0 = arith.constant 0 : index
    %c0_0 = arith.constant 0 : index
    %c0_1 = arith.constant 0 : index
    %0 = vector.load %arg1[%c0, %c0_0, %c0_1] : memref<2x8x32xf32, #tpu.memory_space<vmem>>, vector<2x8x32xf32>
    %c0_2 = arith.constant 0 : index
    %c0_3 = arith.constant 0 : index
    %c0_4 = arith.constant 0 : index
    %1 = vector.load %arg2[%c0_2, %c0_3, %c0_4] : memref<1x1x32xf32, #tpu.memory_space<vmem>>, vector<1x1x32xf32>
    %2 = vector.shape_cast %1 : vector<1x1x32xf32> to vector<1x32xf32>
    %c0_5 = arith.constant 0 : index
    %c0_6 = arith.constant 0 : index
    %c0_7 = arith.constant 0 : index
    %3 = vector.load %arg3[%c0_5, %c0_6, %c0_7] : memref<1x1x32xf32, #tpu.memory_space<vmem>>, vector<1x1x32xf32>
    %4 = vector.shape_cast %3 : vector<1x1x32xf32> to vector<1x32xf32>
    %c0_8 = arith.constant 0 : index
    %c0_9 = arith.constant 0 : index
    %c0_10 = arith.constant 0 : index
    %5 = vector.load %arg4[%c0_8, %c0_9, %c0_10] : memref<1x32x96xbf16, #tpu.memory_space<vmem>>, vector<1x32x96xbf16>
    %6 = vector.shape_cast %5 : vector<1x32x96xbf16> to vector<32x96xbf16>
    %c0_11 = arith.constant 0 : index
    %c0_12 = arith.constant 0 : index
    %c0_13 = arith.constant 0 : index
    %7 = vector.load %arg5[%c0_11, %c0_12, %c0_13] : memref<1x1x96xf32, #tpu.memory_space<vmem>>, vector<1x1x96xf32>
    %8 = vector.shape_cast %7 : vector<1x1x96xf32> to vector<1x96xf32>
    %c0_14 = arith.constant 0 : index
    %c0_15 = arith.constant 0 : index
    %c0_16 = arith.constant 0 : index
    %9 = vector.load %arg6[%c0_14, %c0_15, %c0_16] : memref<1x32x32xbf16, #tpu.memory_space<vmem>>, vector<1x32x32xbf16>
    %10 = vector.shape_cast %9 : vector<1x32x32xbf16> to vector<32x32xbf16>
    %c0_17 = arith.constant 0 : index
    %c0_18 = arith.constant 0 : index
    %c0_19 = arith.constant 0 : index
    %11 = vector.load %arg7[%c0_17, %c0_18, %c0_19] : memref<1x1x32xf32, #tpu.memory_space<vmem>>, vector<1x1x32xf32>
    %12 = vector.shape_cast %11 : vector<1x1x32xf32> to vector<1x32xf32>
    %c0_20 = arith.constant 0 : index
    %c0_21 = arith.constant 0 : index
    %c0_22 = arith.constant 0 : index
    %13 = vector.load %arg8[%c0_20, %c0_21, %c0_22] : memref<1x1x32xf32, #tpu.memory_space<vmem>>, vector<1x1x32xf32>
    %14 = vector.shape_cast %13 : vector<1x1x32xf32> to vector<1x32xf32>
    %c0_23 = arith.constant 0 : index
    %c0_24 = arith.constant 0 : index
    %c0_25 = arith.constant 0 : index
    %15 = vector.load %arg9[%c0_23, %c0_24, %c0_25] : memref<1x1x32xf32, #tpu.memory_space<vmem>>, vector<1x1x32xf32>
    %16 = vector.shape_cast %15 : vector<1x1x32xf32> to vector<1x32xf32>
    %c0_26 = arith.constant 0 : index
    %c0_27 = arith.constant 0 : index
    %c0_28 = arith.constant 0 : index
    %17 = vector.load %arg10[%c0_26, %c0_27, %c0_28] : memref<1x32x128xbf16, #tpu.memory_space<vmem>>, vector<1x32x128xbf16>
    %18 = vector.shape_cast %17 : vector<1x32x128xbf16> to vector<32x128xbf16>
    %c0_29 = arith.constant 0 : index
    %c0_30 = arith.constant 0 : index
    %c0_31 = arith.constant 0 : index
    %19 = vector.load %arg11[%c0_29, %c0_30, %c0_31] : memref<1x1x128xf32, #tpu.memory_space<vmem>>, vector<1x1x128xf32>
    %20 = vector.shape_cast %19 : vector<1x1x128xf32> to vector<1x128xf32>
    %c0_32 = arith.constant 0 : index
    %c0_33 = arith.constant 0 : index
    %c0_34 = arith.constant 0 : index
    %21 = vector.load %arg12[%c0_32, %c0_33, %c0_34] : memref<1x128x32xbf16, #tpu.memory_space<vmem>>, vector<1x128x32xbf16>
    %22 = vector.shape_cast %21 : vector<1x128x32xbf16> to vector<128x32xbf16>
    %c0_35 = arith.constant 0 : index
    %c0_36 = arith.constant 0 : index
    %c0_37 = arith.constant 0 : index
    %23 = vector.load %arg13[%c0_35, %c0_36, %c0_37] : memref<1x1x32xf32, #tpu.memory_space<vmem>>, vector<1x1x32xf32>
    %24 = vector.shape_cast %23 : vector<1x1x32xf32> to vector<1x32xf32>
    %25 = vector.shape_cast %0 : vector<2x8x32xf32> to vector<16x32xf32>
    %cst = arith.constant dense<0.000000e+00> : vector<16xf32>
    %26 = vector.multi_reduction <add>, %25, %cst [1] : vector<16x32xf32> to vector<16xf32>
    %27 = vector.shape_cast %26 : vector<16xf32> to vector<16x1xf32>
    %cst_38 = arith.constant 3.200000e+01 : f32
    %28 = vector.broadcast %cst_38 : f32 to vector<16x1xf32>
    %29 = arith.divf %27, %28 : vector<16x1xf32>
    %30 = vector.broadcast %29 : vector<16x1xf32> to vector<16x32xf32>
    %31 = arith.subf %25, %30 : vector<16x32xf32>
    %32 = arith.mulf %31, %31 : vector<16x32xf32>
    %cst_39 = arith.constant dense<0.000000e+00> : vector<16xf32>
    %33 = vector.multi_reduction <add>, %32, %cst_39 [1] : vector<16x32xf32> to vector<16xf32>
    %34 = vector.shape_cast %33 : vector<16xf32> to vector<16x1xf32>
    %cst_40 = arith.constant 3.200000e+01 : f32
    %35 = vector.broadcast %cst_40 : f32 to vector<16x1xf32>
    %36 = arith.divf %34, %35 : vector<16x1xf32>
    %37 = vector.broadcast %29 : vector<16x1xf32> to vector<16x32xf32>
    %38 = arith.subf %25, %37 : vector<16x32xf32>
    %cst_41 = arith.constant 9.99999974E-6 : f32
    %39 = vector.broadcast %cst_41 : f32 to vector<16x1xf32>
    %40 = arith.addf %36, %39 : vector<16x1xf32>
    %41 = math.rsqrt %40 : vector<16x1xf32>
    %42 = vector.broadcast %41 : vector<16x1xf32> to vector<16x32xf32>
    %43 = arith.mulf %38, %42 : vector<16x32xf32>
    %44 = vector.broadcast %2 : vector<1x32xf32> to vector<16x32xf32>
    %45 = arith.mulf %43, %44 : vector<16x32xf32>
    %46 = vector.broadcast %4 : vector<1x32xf32> to vector<16x32xf32>
    %47 = arith.addf %45, %46 : vector<16x32xf32>
    %48 = arith.truncf %47 : vector<16x32xf32> to vector<16x32xbf16>
    %cst_42 = arith.constant dense<0.000000e+00> : vector<16x96xf32>
    %49 = tpu.matmul %48, %6, %cst_42 {dimension_numbers = #tpu.dot_dimension_numbers<[1], [0], [0], [1], [0, 0, 1, 1], [], []>} : vector<16x32xbf16>, vector<32x96xbf16>, vector<16x96xf32> -> vector<16x96xf32>
    %50 = vector.broadcast %8 : vector<1x96xf32> to vector<16x96xf32>
    %51 = arith.addf %49, %50 : vector<16x96xf32>
    %52 = tpu.iota {dimensions = array<i32: 0>} : vector<8x8xi32>
    %53 = tpu.iota {dimensions = array<i32: 1>} : vector<8x8xi32>
    %54 = arith.cmpi sgt, %53, %52 : vector<8x8xi32>
    %cst_43 = arith.constant -1.000000e+30 : f32
    %cst_44 = arith.constant 0.000000e+00 : f32
    %55 = vector.broadcast %cst_43 : f32 to vector<8x8xf32>
    %56 = vector.broadcast %cst_44 : f32 to vector<8x8xf32>
    %57 = arith.select %54, %55, %56 : vector<8x8xi1>, vector<8x8xf32>
    %58 = vector.extract_strided_slice %51 {offsets = [0, 0], sizes = [16, 8], strides = [1, 1]} : vector<16x96xf32> to vector<16x8xf32>
    %cst_45 = arith.constant 0.353553385 : f32
    %59 = vector.broadcast %cst_45 : f32 to vector<16x8xf32>
    %60 = arith.mulf %58, %59 : vector<16x8xf32>
    %61 = vector.shape_cast %60 : vector<16x8xf32> to vector<2x8x8xf32>
    %62 = vector.extract_strided_slice %51 {offsets = [0, 32], sizes = [16, 8], strides = [1, 1]} : vector<16x96xf32> to vector<16x8xf32>
    %63 = vector.shape_cast %62 : vector<16x8xf32> to vector<2x8x8xf32>
    %64 = vector.extract_strided_slice %51 {offsets = [0, 64], sizes = [16, 8], strides = [1, 1]} : vector<16x96xf32> to vector<16x8xf32>
    %65 = vector.shape_cast %64 : vector<16x8xf32> to vector<2x8x8xf32>
    %66 = arith.truncf %61 : vector<2x8x8xf32> to vector<2x8x8xbf16>
    %67 = arith.truncf %63 : vector<2x8x8xf32> to vector<2x8x8xbf16>
    "tpu.trace_start"() <{level = 10 : i32, message = "bqd,bkd->bqk"}> : () -> ()
    %cst_46 = arith.constant dense<0.000000e+00> : vector<2x8x8xf32>
    %68 = tpu.matmul %66, %67, %cst_46 {dimension_numbers = #tpu.dot_dimension_numbers<[2], [2], [1], [1], [0, 0, 0, 1, 1, 1], [0], [0]>} : vector<2x8x8xbf16>, vector<2x8x8xbf16>, vector<2x8x8xf32> -> vector<2x8x8xf32>
    "tpu.trace_stop"() : () -> ()
    %69 = vector.shape_cast %57 : vector<8x8xf32> to vector<1x8x8xf32>
    %70 = vector.broadcast %69 : vector<1x8x8xf32> to vector<2x8x8xf32>
    %71 = arith.addf %68, %70 : vector<2x8x8xf32>
    %cst_47 = arith.constant dense<0xFF800000> : vector<2x8xf32>
    %72 = vector.multi_reduction <maximumf>, %71, %cst_47 [2] : vector<2x8x8xf32> to vector<2x8xf32>
    %73 = vector.shape_cast %72 : vector<2x8xf32> to vector<2x8x1xf32>
    %74 = vector.broadcast %73 : vector<2x8x1xf32> to vector<2x8x8xf32>
    %75 = arith.subf %71, %74 : vector<2x8x8xf32>
    %76 = math.exp %75 : vector<2x8x8xf32>
    %cst_48 = arith.constant dense<0.000000e+00> : vector<2x8xf32>
    %77 = vector.multi_reduction <add>, %76, %cst_48 [2] : vector<2x8x8xf32> to vector<2x8xf32>
    %78 = vector.shape_cast %77 : vector<2x8xf32> to vector<2x8x1xf32>
    %79 = tpu.reciprocal %78 {approx = true} : vector<2x8x1xf32> -> vector<2x8x1xf32>
    %80 = vector.broadcast %79 : vector<2x8x1xf32> to vector<2x8x8xf32>
    %81 = arith.mulf %76, %80 : vector<2x8x8xf32>
    %82 = arith.truncf %81 : vector<2x8x8xf32> to vector<2x8x8xbf16>
    %83 = arith.truncf %65 : vector<2x8x8xf32> to vector<2x8x8xbf16>
    "tpu.trace_start"() <{level = 10 : i32, message = "bqk,bkd->bqd"}> : () -> ()
    %cst_49 = arith.constant dense<0.000000e+00> : vector<2x8x8xf32>
    %84 = tpu.matmul %82, %83, %cst_49 {dimension_numbers = #tpu.dot_dimension_numbers<[2], [1], [1], [2], [0, 0, 0, 1, 1, 2], [0], [0]>} : vector<2x8x8xbf16>, vector<2x8x8xbf16>, vector<2x8x8xf32> -> vector<2x8x8xf32>
    "tpu.trace_stop"() : () -> ()
    %c0_50 = arith.constant 0 : index
    %c0_51 = arith.constant 0 : index
    %c0_52 = arith.constant 0 : index
    %85 = vector.load %arg15[%c0_50, %c0_51, %c0_52] : memref<2x8x32xf32, #tpu.memory_space<vmem>>, vector<2x8x8xf32>
    tpu.vector_store %arg15[%c0_50, %c0_51, %c0_52], %84 {strides = array<i32>} : memref<2x8x32xf32, #tpu.memory_space<vmem>>, vector<2x8x8xf32>,
    %86 = vector.extract_strided_slice %51 {offsets = [0, 8], sizes = [16, 8], strides = [1, 1]} : vector<16x96xf32> to vector<16x8xf32>
    %cst_53 = arith.constant 0.353553385 : f32
    %87 = vector.broadcast %cst_53 : f32 to vector<16x8xf32>
    %88 = arith.mulf %86, %87 : vector<16x8xf32>
    %89 = vector.shape_cast %88 : vector<16x8xf32> to vector<2x8x8xf32>
    %90 = vector.extract_strided_slice %51 {offsets = [0, 40], sizes = [16, 8], strides = [1, 1]} : vector<16x96xf32> to vector<16x8xf32>
    %91 = vector.shape_cast %90 : vector<16x8xf32> to vector<2x8x8xf32>
    %92 = vector.extract_strided_slice %51 {offsets = [0, 72], sizes = [16, 8], strides = [1, 1]} : vector<16x96xf32> to vector<16x8xf32>
    %93 = vector.shape_cast %92 : vector<16x8xf32> to vector<2x8x8xf32>
    %94 = arith.truncf %89 : vector<2x8x8xf32> to vector<2x8x8xbf16>
    %95 = arith.truncf %91 : vector<2x8x8xf32> to vector<2x8x8xbf16>
    "tpu.trace_start"() <{level = 10 : i32, message = "bqd,bkd->bqk"}> : () -> ()
    %cst_54 = arith.constant dense<0.000000e+00> : vector<2x8x8xf32>
    %96 = tpu.matmul %94, %95, %cst_54 {dimension_numbers = #tpu.dot_dimension_numbers<[2], [2], [1], [1], [0, 0, 0, 1, 1, 1], [0], [0]>} : vector<2x8x8xbf16>, vector<2x8x8xbf16>, vector<2x8x8xf32> -> vector<2x8x8xf32>
    "tpu.trace_stop"() : () -> ()
    %97 = vector.shape_cast %57 : vector<8x8xf32> to vector<1x8x8xf32>
    %98 = vector.broadcast %97 : vector<1x8x8xf32> to vector<2x8x8xf32>
    %99 = arith.addf %96, %98 : vector<2x8x8xf32>
    %cst_55 = arith.constant dense<0xFF800000> : vector<2x8xf32>
    %100 = vector.multi_reduction <maximumf>, %99, %cst_55 [2] : vector<2x8x8xf32> to vector<2x8xf32>
    %101 = vector.shape_cast %100 : vector<2x8xf32> to vector<2x8x1xf32>
    %102 = vector.broadcast %101 : vector<2x8x1xf32> to vector<2x8x8xf32>
    %103 = arith.subf %99, %102 : vector<2x8x8xf32>
    %104 = math.exp %103 : vector<2x8x8xf32>
    %cst_56 = arith.constant dense<0.000000e+00> : vector<2x8xf32>
    %105 = vector.multi_reduction <add>, %104, %cst_56 [2] : vector<2x8x8xf32> to vector<2x8xf32>
    %106 = vector.shape_cast %105 : vector<2x8xf32> to vector<2x8x1xf32>
    %107 = tpu.reciprocal %106 {approx = true} : vector<2x8x1xf32> -> vector<2x8x1xf32>
    %108 = vector.broadcast %107 : vector<2x8x1xf32> to vector<2x8x8xf32>
    %109 = arith.mulf %104, %108 : vector<2x8x8xf32>
    %110 = arith.truncf %109 : vector<2x8x8xf32> to vector<2x8x8xbf16>
    %111 = arith.truncf %93 : vector<2x8x8xf32> to vector<2x8x8xbf16>
    "tpu.trace_start"() <{level = 10 : i32, message = "bqk,bkd->bqd"}> : () -> ()
    %cst_57 = arith.constant dense<0.000000e+00> : vector<2x8x8xf32>
    %112 = tpu.matmul %110, %111, %cst_57 {dimension_numbers = #tpu.dot_dimension_numbers<[2], [1], [1], [2], [0, 0, 0, 1, 1, 2], [0], [0]>} : vector<2x8x8xbf16>, vector<2x8x8xbf16>, vector<2x8x8xf32> -> vector<2x8x8xf32>
    "tpu.trace_stop"() : () -> ()
    %c0_58 = arith.constant 0 : index
    %c0_59 = arith.constant 0 : index
    %c8 = arith.constant 8 : index
    %113 = vector.load %arg15[%c0_58, %c0_59, %c8] : memref<2x8x32xf32, #tpu.memory_space<vmem>>, vector<2x8x8xf32>
    tpu.vector_store %arg15[%c0_58, %c0_59, %c8], %112 {strides = array<i32>} : memref<2x8x32xf32, #tpu.memory_space<vmem>>, vector<2x8x8xf32>,
    %114 = vector.extract_strided_slice %51 {offsets = [0, 16], sizes = [16, 8], strides = [1, 1]} : vector<16x96xf32> to vector<16x8xf32>
    %cst_60 = arith.constant 0.353553385 : f32
    %115 = vector.broadcast %cst_60 : f32 to vector<16x8xf32>
    %116 = arith.mulf %114, %115 : vector<16x8xf32>
    %117 = vector.shape_cast %116 : vector<16x8xf32> to vector<2x8x8xf32>
    %118 = vector.extract_strided_slice %51 {offsets = [0, 48], sizes = [16, 8], strides = [1, 1]} : vector<16x96xf32> to vector<16x8xf32>
    %119 = vector.shape_cast %118 : vector<16x8xf32> to vector<2x8x8xf32>
    %120 = vector.extract_strided_slice %51 {offsets = [0, 80], sizes = [16, 8], strides = [1, 1]} : vector<16x96xf32> to vector<16x8xf32>
    %121 = vector.shape_cast %120 : vector<16x8xf32> to vector<2x8x8xf32>
    %122 = arith.truncf %117 : vector<2x8x8xf32> to vector<2x8x8xbf16>
    %123 = arith.truncf %119 : vector<2x8x8xf32> to vector<2x8x8xbf16>
    "tpu.trace_start"() <{level = 10 : i32, message = "bqd,bkd->bqk"}> : () -> ()
    %cst_61 = arith.constant dense<0.000000e+00> : vector<2x8x8xf32>
    %124 = tpu.matmul %122, %123, %cst_61 {dimension_numbers = #tpu.dot_dimension_numbers<[2], [2], [1], [1], [0, 0, 0, 1, 1, 1], [0], [0]>} : vector<2x8x8xbf16>, vector<2x8x8xbf16>, vector<2x8x8xf32> -> vector<2x8x8xf32>
    "tpu.trace_stop"() : () -> ()
    %125 = vector.shape_cast %57 : vector<8x8xf32> to vector<1x8x8xf32>
    %126 = vector.broadcast %125 : vector<1x8x8xf32> to vector<2x8x8xf32>
    %127 = arith.addf %124, %126 : vector<2x8x8xf32>
    %cst_62 = arith.constant dense<0xFF800000> : vector<2x8xf32>
    %128 = vector.multi_reduction <maximumf>, %127, %cst_62 [2] : vector<2x8x8xf32> to vector<2x8xf32>
    %129 = vector.shape_cast %128 : vector<2x8xf32> to vector<2x8x1xf32>
    %130 = vector.broadcast %129 : vector<2x8x1xf32> to vector<2x8x8xf32>
    %131 = arith.subf %127, %130 : vector<2x8x8xf32>
    %132 = math.exp %131 : vector<2x8x8xf32>
    %cst_63 = arith.constant dense<0.000000e+00> : vector<2x8xf32>
    %133 = vector.multi_reduction <add>, %132, %cst_63 [2] : vector<2x8x8xf32> to vector<2x8xf32>
    %134 = vector.shape_cast %133 : vector<2x8xf32> to vector<2x8x1xf32>
    %135 = tpu.reciprocal %134 {approx = true} : vector<2x8x1xf32> -> vector<2x8x1xf32>
    %136 = vector.broadcast %135 : vector<2x8x1xf32> to vector<2x8x8xf32>
    %137 = arith.mulf %132, %136 : vector<2x8x8xf32>
    %138 = arith.truncf %137 : vector<2x8x8xf32> to vector<2x8x8xbf16>
    %139 = arith.truncf %121 : vector<2x8x8xf32> to vector<2x8x8xbf16>
    "tpu.trace_start"() <{level = 10 : i32, message = "bqk,bkd->bqd"}> : () -> ()
    %cst_64 = arith.constant dense<0.000000e+00> : vector<2x8x8xf32>
    %140 = tpu.matmul %138, %139, %cst_64 {dimension_numbers = #tpu.dot_dimension_numbers<[2], [1], [1], [2], [0, 0, 0, 1, 1, 2], [0], [0]>} : vector<2x8x8xbf16>, vector<2x8x8xbf16>, vector<2x8x8xf32> -> vector<2x8x8xf32>
    "tpu.trace_stop"() : () -> ()
    %c0_65 = arith.constant 0 : index
    %c0_66 = arith.constant 0 : index
    %c16 = arith.constant 16 : index
    %141 = vector.load %arg15[%c0_65, %c0_66, %c16] : memref<2x8x32xf32, #tpu.memory_space<vmem>>, vector<2x8x8xf32>
    tpu.vector_store %arg15[%c0_65, %c0_66, %c16], %140 {strides = array<i32>} : memref<2x8x32xf32, #tpu.memory_space<vmem>>, vector<2x8x8xf32>,
    %142 = vector.extract_strided_slice %51 {offsets = [0, 24], sizes = [16, 8], strides = [1, 1]} : vector<16x96xf32> to vector<16x8xf32>
    %cst_67 = arith.constant 0.353553385 : f32
    %143 = vector.broadcast %cst_67 : f32 to vector<16x8xf32>
    %144 = arith.mulf %142, %143 : vector<16x8xf32>
    %145 = vector.shape_cast %144 : vector<16x8xf32> to vector<2x8x8xf32>
    %146 = vector.extract_strided_slice %51 {offsets = [0, 56], sizes = [16, 8], strides = [1, 1]} : vector<16x96xf32> to vector<16x8xf32>
    %147 = vector.shape_cast %146 : vector<16x8xf32> to vector<2x8x8xf32>
    %148 = vector.extract_strided_slice %51 {offsets = [0, 88], sizes = [16, 8], strides = [1, 1]} : vector<16x96xf32> to vector<16x8xf32>
    %149 = vector.shape_cast %148 : vector<16x8xf32> to vector<2x8x8xf32>
    %150 = arith.truncf %145 : vector<2x8x8xf32> to vector<2x8x8xbf16>
    %151 = arith.truncf %147 : vector<2x8x8xf32> to vector<2x8x8xbf16>
    "tpu.trace_start"() <{level = 10 : i32, message = "bqd,bkd->bqk"}> : () -> ()
    %cst_68 = arith.constant dense<0.000000e+00> : vector<2x8x8xf32>
    %152 = tpu.matmul %150, %151, %cst_68 {dimension_numbers = #tpu.dot_dimension_numbers<[2], [2], [1], [1], [0, 0, 0, 1, 1, 1], [0], [0]>} : vector<2x8x8xbf16>, vector<2x8x8xbf16>, vector<2x8x8xf32> -> vector<2x8x8xf32>
    "tpu.trace_stop"() : () -> ()
    %153 = vector.shape_cast %57 : vector<8x8xf32> to vector<1x8x8xf32>
    %154 = vector.broadcast %153 : vector<1x8x8xf32> to vector<2x8x8xf32>
    %155 = arith.addf %152, %154 : vector<2x8x8xf32>
    %cst_69 = arith.constant dense<0xFF800000> : vector<2x8xf32>
    %156 = vector.multi_reduction <maximumf>, %155, %cst_69 [2] : vector<2x8x8xf32> to vector<2x8xf32>
    %157 = vector.shape_cast %156 : vector<2x8xf32> to vector<2x8x1xf32>
    %158 = vector.broadcast %157 : vector<2x8x1xf32> to vector<2x8x8xf32>
    %159 = arith.subf %155, %158 : vector<2x8x8xf32>
    %160 = math.exp %159 : vector<2x8x8xf32>
    %cst_70 = arith.constant dense<0.000000e+00> : vector<2x8xf32>
    %161 = vector.multi_reduction <add>, %160, %cst_70 [2] : vector<2x8x8xf32> to vector<2x8xf32>
    %162 = vector.shape_cast %161 : vector<2x8xf32> to vector<2x8x1xf32>
    %163 = tpu.reciprocal %162 {approx = true} : vector<2x8x1xf32> -> vector<2x8x1xf32>
    %164 = vector.broadcast %163 : vector<2x8x1xf32> to vector<2x8x8xf32>
    %165 = arith.mulf %160, %164 : vector<2x8x8xf32>
    %166 = arith.truncf %165 : vector<2x8x8xf32> to vector<2x8x8xbf16>
    %167 = arith.truncf %149 : vector<2x8x8xf32> to vector<2x8x8xbf16>
    "tpu.trace_start"() <{level = 10 : i32, message = "bqk,bkd->bqd"}> : () -> ()
    %cst_71 = arith.constant dense<0.000000e+00> : vector<2x8x8xf32>
    %168 = tpu.matmul %166, %167, %cst_71 {dimension_numbers = #tpu.dot_dimension_numbers<[2], [1], [1], [2], [0, 0, 0, 1, 1, 2], [0], [0]>} : vector<2x8x8xbf16>, vector<2x8x8xbf16>, vector<2x8x8xf32> -> vector<2x8x8xf32>
    "tpu.trace_stop"() : () -> ()
    %c0_72 = arith.constant 0 : index
    %c0_73 = arith.constant 0 : index
    %c24 = arith.constant 24 : index
    %169 = vector.load %arg15[%c0_72, %c0_73, %c24] : memref<2x8x32xf32, #tpu.memory_space<vmem>>, vector<2x8x8xf32>
    tpu.vector_store %arg15[%c0_72, %c0_73, %c24], %168 {strides = array<i32>} : memref<2x8x32xf32, #tpu.memory_space<vmem>>, vector<2x8x8xf32>,
    %c0_74 = arith.constant 0 : index
    %c0_75 = arith.constant 0 : index
    %c0_76 = arith.constant 0 : index
    %170 = vector.load %arg15[%c0_74, %c0_75, %c0_76] : memref<2x8x32xf32, #tpu.memory_space<vmem>>, vector<2x8x32xf32>
    %171 = vector.shape_cast %170 : vector<2x8x32xf32> to vector<16x32xf32>
    %172 = arith.truncf %171 : vector<16x32xf32> to vector<16x32xbf16>
    %cst_77 = arith.constant dense<0.000000e+00> : vector<16x32xf32>
    %173 = tpu.matmul %172, %10, %cst_77 {dimension_numbers = #tpu.dot_dimension_numbers<[1], [0], [0], [1], [0, 0, 1, 1], [], []>} : vector<16x32xbf16>, vector<32x32xbf16>, vector<16x32xf32> -> vector<16x32xf32>
    %174 = vector.broadcast %12 : vector<1x32xf32> to vector<16x32xf32>
    %175 = arith.addf %173, %174 : vector<16x32xf32>
    %176 = arith.addf %25, %175 : vector<16x32xf32>
    %cst_78 = arith.constant dense<0.000000e+00> : vector<16xf32>
    %177 = vector.multi_reduction <add>, %176, %cst_78 [1] : vector<16x32xf32> to vector<16xf32>
    %178 = vector.shape_cast %177 : vector<16xf32> to vector<16x1xf32>
    %cst_79 = arith.constant 3.200000e+01 : f32
    %179 = vector.broadcast %cst_79 : f32 to vector<16x1xf32>
    %180 = arith.divf %178, %179 : vector<16x1xf32>
    %181 = vector.broadcast %180 : vector<16x1xf32> to vector<16x32xf32>
    %182 = arith.subf %176, %181 : vector<16x32xf32>
    %183 = arith.mulf %182, %182 : vector<16x32xf32>
    %cst_80 = arith.constant dense<0.000000e+00> : vector<16xf32>
    %184 = vector.multi_reduction <add>, %183, %cst_80 [1] : vector<16x32xf32> to vector<16xf32>
    %185 = vector.shape_cast %184 : vector<16xf32> to vector<16x1xf32>
    %cst_81 = arith.constant 3.200000e+01 : f32
    %186 = vector.broadcast %cst_81 : f32 to vector<16x1xf32>
    %187 = arith.divf %185, %186 : vector<16x1xf32>
    %188 = vector.broadcast %180 : vector<16x1xf32> to vector<16x32xf32>
    %189 = arith.subf %176, %188 : vector<16x32xf32>
    %cst_82 = arith.constant 9.99999974E-6 : f32
    %190 = vector.broadcast %cst_82 : f32 to vector<16x1xf32>
    %191 = arith.addf %187, %190 : vector<16x1xf32>
    %192 = math.rsqrt %191 : vector<16x1xf32>
    %193 = vector.broadcast %192 : vector<16x1xf32> to vector<16x32xf32>
    %194 = arith.mulf %189, %193 : vector<16x32xf32>
    %195 = vector.broadcast %14 : vector<1x32xf32> to vector<16x32xf32>
    %196 = arith.mulf %194, %195 : vector<16x32xf32>
    %197 = vector.broadcast %16 : vector<1x32xf32> to vector<16x32xf32>
    %198 = arith.addf %196, %197 : vector<16x32xf32>
    %199 = arith.truncf %198 : vector<16x32xf32> to vector<16x32xbf16>
    %cst_83 = arith.constant dense<0.000000e+00> : vector<16x128xf32>
    %200 = tpu.matmul %199, %18, %cst_83 {dimension_numbers = #tpu.dot_dimension_numbers<[1], [0], [0], [1], [0, 0, 1, 1], [], []>} : vector<16x32xbf16>, vector<32x128xbf16>, vector<16x128xf32> -> vector<16x128xf32>
    %201 = vector.broadcast %20 : vector<1x128xf32> to vector<16x128xf32>
    %202 = arith.addf %200, %201 : vector<16x128xf32>
    %cst_84 = arith.constant 1.702000e+00 : f32
    %203 = vector.broadcast %cst_84 : f32 to vector<16x128xf32>
    %204 = arith.mulf %203, %202 : vector<16x128xf32>
    %205 = arith.negf %204 : vector<16x128xf32>
    %206 = math.exp %205 : vector<16x128xf32>
    %cst_85 = arith.constant 1.000000e+00 : f32
    %207 = vector.broadcast %cst_85 : f32 to vector<16x128xf32>
    %208 = arith.addf %207, %206 : vector<16x128xf32>
    %209 = arith.divf %207, %208 : vector<16x128xf32>
    %210 = arith.mulf %202, %209 : vector<16x128xf32>
    %211 = arith.truncf %210 : vector<16x128xf32> to vector<16x128xbf16>
    %cst_86 = arith.constant dense<0.000000e+00> : vector<16x32xf32>
    %212 = tpu.matmul %211, %22, %cst_86 {dimension_numbers = #tpu.dot_dimension_numbers<[1], [0], [0], [1], [0, 0, 1, 1], [], []>} : vector<16x128xbf16>, vector<128x32xbf16>, vector<16x32xf32> -> vector<16x32xf32>
    %213 = vector.broadcast %24 : vector<1x32xf32> to vector<16x32xf32>
    %214 = arith.addf %212, %213 : vector<16x32xf32>
    %215 = arith.addf %176, %214 : vector<16x32xf32>
    %216 = vector.shape_cast %215 : vector<16x32xf32> to vector<2x8x32xf32>
    %c0_87 = arith.constant 0 : index
    %c0_88 = arith.constant 0 : index
    %c0_89 = arith.constant 0 : index
    %217 = vector.load %arg14[%c0_87, %c0_88, %c0_89] : memref<2x8x32xf32, #tpu.memory_space<vmem>>, vector<2x8x32xf32>
    tpu.vector_store %arg14[%c0_87, %c0_88, %c0_89], %216 {strides = array<i32>} : memref<2x8x32xf32, #tpu.memory_space<vmem>>, vector<2x8x32xf32>,
    return
  }
  func.func @transform_0(%arg0: i32) -> (i32, i32, i32) {
    %c0_i32 = arith.constant 0 : i32
    %c0_i32_0 = arith.constant 0 : i32
    %c0_i32_1 = arith.constant 0 : i32
    return %arg0, %c0_i32, %c0_i32_0 : i32, i32, i32
  }
  func.func @transform_1(%arg0: i32) -> (i32, i32, i32) {
    %c0_i32 = arith.constant 0 : i32
    %c0_i32_0 = arith.constant 0 : i32
    %c0_i32_1 = arith.constant 0 : i32
    %c0_i32_2 = arith.constant 0 : i32
    return %c0_i32, %c0_i32_0, %c0_i32_1 : i32, i32, i32
  }
  func.func @transform_2(%arg0: i32) -> (i32, i32, i32) {
    %c0_i32 = arith.constant 0 : i32
    %c0_i32_0 = arith.constant 0 : i32
    %c0_i32_1 = arith.constant 0 : i32
    %c0_i32_2 = arith.constant 0 : i32
    return %c0_i32, %c0_i32_0, %c0_i32_1 : i32, i32, i32
  }
  func.func @transform_3(%arg0: i32) -> (i32, i32, i32) {
    %c0_i32 = arith.constant 0 : i32
    %c0_i32_0 = arith.constant 0 : i32
    %c0_i32_1 = arith.constant 0 : i32
    %c0_i32_2 = arith.constant 0 : i32
    return %c0_i32, %c0_i32_0, %c0_i32_1 : i32, i32, i32
  }
  func.func @transform_4(%arg0: i32) -> (i32, i32, i32) {
    %c0_i32 = arith.constant 0 : i32
    %c0_i32_0 = arith.constant 0 : i32
    %c0_i32_1 = arith.constant 0 : i32
    %c0_i32_2 = arith.constant 0 : i32
    return %c0_i32, %c0_i32_0, %c0_i32_1 : i32, i32, i32
  }
  func.func @transform_5(%arg0: i32) -> (i32, i32, i32) {
    %c0_i32 = arith.constant 0 : i32
    %c0_i32_0 = arith.constant 0 : i32
    %c0_i32_1 = arith.constant 0 : i32
    %c0_i32_2 = arith.constant 0 : i32
    return %c0_i32, %c0_i32_0, %c0_i32_1 : i32, i32, i32
  }
  func.func @transform_6(%arg0: i32) -> (i32, i32, i32) {
    %c0_i32 = arith.constant 0 : i32
    %c0_i32_0 = arith.constant 0 : i32
    %c0_i32_1 = arith.constant 0 : i32
    %c0_i32_2 = arith.constant 0 : i32
    return %c0_i32, %c0_i32_0, %c0_i32_1 : i32, i32, i32
  }
  func.func @transform_7(%arg0: i32) -> (i32, i32, i32) {
    %c0_i32 = arith.constant 0 : i32
    %c0_i32_0 = arith.constant 0 : i32
    %c0_i32_1 = arith.constant 0 : i32
    %c0_i32_2 = arith.constant 0 : i32
    return %c0_i32, %c0_i32_0, %c0_i32_1 : i32, i32, i32
  }
  func.func @transform_8(%arg0: i32) -> (i32, i32, i32) {
    %c0_i32 = arith.constant 0 : i32
    %c0_i32_0 = arith.constant 0 : i32
    %c0_i32_1 = arith.constant 0 : i32
    %c0_i32_2 = arith.constant 0 : i32
    return %c0_i32, %c0_i32_0, %c0_i32_1 : i32, i32, i32
  }
  func.func @transform_9(%arg0: i32) -> (i32, i32, i32) {
    %c0_i32 = arith.constant 0 : i32
    %c0_i32_0 = arith.constant 0 : i32
    %c0_i32_1 = arith.constant 0 : i32
    %c0_i32_2 = arith.constant 0 : i32
    return %c0_i32, %c0_i32_0, %c0_i32_1 : i32, i32, i32
  }
  func.func @transform_10(%arg0: i32) -> (i32, i32, i32) {
    %c0_i32 = arith.constant 0 : i32
    %c0_i32_0 = arith.constant 0 : i32
    %c0_i32_1 = arith.constant 0 : i32
    %c0_i32_2 = arith.constant 0 : i32
    return %c0_i32, %c0_i32_0, %c0_i32_1 : i32, i32, i32
  }
  func.func @transform_11(%arg0: i32) -> (i32, i32, i32) {
    %c0_i32 = arith.constant 0 : i32
    %c0_i32_0 = arith.constant 0 : i32
    %c0_i32_1 = arith.constant 0 : i32
    %c0_i32_2 = arith.constant 0 : i32
    return %c0_i32, %c0_i32_0, %c0_i32_1 : i32, i32, i32
  }
  func.func @transform_12(%arg0: i32) -> (i32, i32, i32) {
    %c0_i32 = arith.constant 0 : i32
    %c0_i32_0 = arith.constant 0 : i32
    %c0_i32_1 = arith.constant 0 : i32
    %c0_i32_2 = arith.constant 0 : i32
    return %c0_i32, %c0_i32_0, %c0_i32_1 : i32, i32, i32
  }
  func.func @transform_13(%arg0: i32) -> (i32, i32, i32) {
    %c0_i32 = arith.constant 0 : i32
    %c0_i32_0 = arith.constant 0 : i32
    %c0_i32_1 = arith.constant 0 : i32
    return %arg0, %c0_i32, %c0_i32_0 : i32, i32, i32
  }
}

</mosaic_0001>

<bundles_post_ra>
// kernel: tpu_custom_call.1
= control target key start
LH: loop header
LB: loop body
LE: loop exit
PB: predicated region body
PF: predicated region fallthrough
CT: control target
= control target key end

     0   :  { %s3071_s0 = inlined_call_operand.vmem [shape: f32[2,8,32], index: 0, kind: input, shape index: {}]   ;;  %s3072_s1 = inlined_call_operand.vmem [shape: f32[2,1,32], index: 1, kind: input, shape index: {}]   ;;  %s3073_s2 = inlined_call_operand.vmem [shape: f32[2,1,32], index: 2, kind: input, shape index: {}]   ;;  %s3074_s3 = inlined_call_operand.vmem [shape: bf16[2,32,96], index: 3, kind: input, shape index: {}]   ;;  %s3075_s4 = inlined_call_operand.vmem [shape: f32[2,1,96], index: 4, kind: input, shape index: {}]   ;;  %s3076_s5 = inlined_call_operand.vmem [shape: bf16[2,32,32], index: 5, kind: input, shape index: {}]   ;;  %s3077_s6 = inlined_call_operand.vmem [shape: f32[2,1,32], index: 6, kind: input, shape index: {}]   ;;  %s3078_s7 = inlined_call_operand.vmem [shape: f32[2,1,32], index: 7, kind: input, shape index: {}]   ;;  %s3079_s8 = inlined_call_operand.vmem [shape: f32[2,1,32], index: 8, kind: input, shape index: {}]   ;;  %s3080_s9 = inlined_call_operand.vmem [shape: bf16[2,32,128], index: 9, kind: input, shape index: {}]   ;;  %s3081_s10 = inlined_call_operand.vmem [shape: f32[2,1,128], index: 10, kind: input, shape index: {}]   ;;  %s3082_s11 = inlined_call_operand.vmem [shape: bf16[2,128,32], index: 11, kind: input, shape index: {}]   ;;  %s3083_s12 = inlined_call_operand.vmem [shape: f32[2,1,32], index: 12, kind: input, shape index: {}]   ;;  %s3084_s13 = inlined_call_operand.hbm [shape: f32[2,8,32], index: 13, kind: output, shape index: {}]  }
   0x1   :  { %3088 = sst [smem:[#allocation10_spill]] %s3074_s3 }
   0x2   :  { %3089 = sst [smem:[#allocation11_spill]] %s3076_s5 }
   0x3   :  { %3090 = sst [smem:[#allocation12_spill]] %s3084_s13 }
   0x4   :  { %18 = vsyncpa [#allocation4], 0  ;;  %s2701_s25 = smov 0   ;;  %s2703_s26 = smov 0  }
   0x5   :  { %s2705_s27 = smov 0  }
   0x6 LB: > { %3091 = sst [smem:[#allocation6_spill]] %s2607_s26  ;;  %s33_s29 = sadd.s32 1, %s2607_s26  ;;  %s2611_s27 = sphi %s2705_s27, %s24_s27   ;;  %s2607_s26 = sphi %s2703_s26, %s3108_s26   ;;  %s2603_s25 = sphi %s2701_s25, %s3107_s25  }
   0x7   : > { %3092 = sst [smem:[#allocation7_spill]] %s2611_s27  ;;  %p34_p0 = scmp.ge.s32.totalorder %s33_s29, 2 }
   0x8   : > { %p2200_p1 = scmp.ge.s32.totalorder %s2611_s27, 1  ;;  %p505_p2 = scmp.lt.s32.totalorder %s2611_s27, 3 }
   0x9   : > { %s3110_s29 = smov (%p34_p0, %s33_s29), 0 }
   0xa   : > { %3093 = sst [smem:[#allocation8_spill]] %s3110_s29  ;;  %p506_p3 = pnand %p2200_p1, %p505_p2 }
   0xc   : > { %509 = sbr.rel (%p506_p3) target bundleno = 4020 (0xfb4), region = 72 }
  0x11   : > { %p594_p4 = scmp.lt.s32.totalorder %s2603_s25, 1  ;;  %s3094_s3 = sld [smem:[#allocation10_spill]] }
  0x12   : > { %s3095_s5 = sld [smem:[#allocation11_spill]]  ;;  %p2209_p5 = scmp.ne.s32.totalorder %s2603_s25, 0 }
  0x13   : > { %s2720_s30 = scalar_select %p594_p4, %s2603_s25, 1 }
  0x15   : > { %s2257_s20 = sshll.u32 %s2720_s30, 4  ;;  %s618_s27 = scalar_lea.vmem %s3078_s7, %s2720_s30 }
  0x16   : > { %s621_s23 = scalar_lea.vmem %s3079_s8, %s2720_s30  ;;  %s637_s21 = scalar_lea.vmem %s3083_s12, %s2720_s30 }
  0x17   : > { %s2738_s15 = scalar_lea.vmem %s3094_s3, %s2257_s20  ;;  %s2760_s3 = scalar_lea.vmem %s3080_s9, %s2257_s20 }
  0x18   : > { %s2743_s26 = scalar_lea.vmem %s3095_s5, %s2257_s20  ;;  %s629_s5 = scalar_lea.vmem %s3081_s10, %s2720_s30 }
  0x19   : > { %3096 = sst [smem:[#allocation9_spill]] %s2743_s26  ;;  %s2260_s26 = sshll.u32 %s2720_s30, 6 }
  0x1a   : > { %s2770_s17 = scalar_lea.vmem %s3082_s11, %s2260_s26  ;;  %643 = sbr.rel (%p2209_p5) target bundleno = 33 (0x21), region = 76 }
  0x1f   : > { %v644_v0 = vld [vmem:[%s3071_s0] sm:$0xff]  ;;  %vm646_vm0 = vcmask 261120   ;;  %v645_v1 = vld [vmem:[%s3071_s0 + $0x8] sm:$0xff] }
  0x20   : > { %647 = vst.msk [vmem:[#allocation3] sm:$0xff] %vm646_vm0, %v644_v0  ;;  %648 = vst.msk [vmem:[#allocation3 + $0x8] sm:$0xff] %vm646_vm0, %v645_v1 }
  0x21 PF: > { %vm687_vm1 = vcmask 261120   ;;  %v2499_v16 = vld [vmem:[%s2738_s15 + $0x8] sm:$0xff]   ;;  %v2613_v17 = vmov 0.0   ;;  %vm2614_vm2 = vmmov 0   ;;  %v2500_v18 = vld [vmem:[%s2738_s15] sm:$0xff]   ;;  %s3097_s15 = scalar_lea.vmem %s3072_s1, %s2720_s30  ;;  %s3098_s13 = scalar_lea.vmem %s3073_s2, %s2720_s30  ;;  %vm809_vm3 = vcmask 64512  }
  0x22   : > { %2311 = vmatprep.subr.bf16.mxu0 %v2613_v17  ;;  %2315 = vmatprep.mubr.msk.bf16.mxu0 %vm2614_vm2, %v2613_v17  ;;  %v2210_v27 = vld [vmem:[%s3097_s15] ss:$0 sm:$0xff]  ;;  %s3099_s18 = scalar_lea.vmem %s3075_s4, %s2720_s30  ;;  %s2615_s22 = smov 96   ;;  %v794_v53 = vlaneseq  ;;  %vm934_vm5 = vcmask 1043456   ;;  %vm1258_vm6 = vcmask 130112   ;;  %vm1489_vm7 = vcmask 195712  }
  0x23   : > { %2312 = vmatpush3.bf16.msra.mxu0 %v2499_v16  ;;  %2331 = vmatprep.subr.bf16.mxu1 %v2613_v17  ;;  %v2211_v31 = vld [vmem:[%s3098_s13] ss:$0 sm:$0xff]  ;;  %s2616_s24 = smov 64   ;;  %s2617_s20 = smov 88   ;;  %vm1720_vm8 = vcmask 261312  }
  0x24   : > { %2313 = vmatprep.subr.bf16.mxu0 %v2613_v17  ;;  %2333 = vmatprep.mubr.msk.bf16.mxu1 %vm2614_vm2, %v2613_v17  ;;  %v2212_v36 = vld [vmem:[%s3099_s18] ss:$0 sm:$0xff]  ;;  %v795_v54 = vshrl.u32 %v794_v53, 7  ;;  %v797_v55 = vand.u32 127, %v794_v53  ;;  %s2618_s14 = smov 120   ;;  %s2619_s25 = smov 56  }
  0x25   : > { %s2620_s26 = smov 80   ;;  %s2621_s15 = smov 112  }
  0x26   : > { %vm798_vm4 = vcmp.gt.s32.totalorder %v797_v55, %v795_v54  ;;  %s2622_s28 = smov 48   ;;  %s2623_s29 = smov 72  }
  0x27   : > { %v2782_v2 = vld [vmem:[#allocation3] sm:$0xff]  ;;  %v2784_v3 = vld [vmem:[#allocation3 + $0x8] sm:$0xff]  ;;  %2314 = vmatpush3.bf16.msra.mxu0 %v2500_v18  ;;  %v2845_v56 = vsel %vm798_vm4, -1e+30, %v2613_v17  ;;  %s2624_s13 = smov 104   ;;  %s2625_s16 = smov 40  }
  0x28   : > { %v688_v4 = vsel %vm687_vm1, %v2782_v2, 0.0  ;;  %v691_v5 = vsel %vm687_vm1, %v2784_v3, 0.0  ;;  %2319 = vmatprep.subr.bf16.mxu0 %v2613_v17  ;;  %s2626_s19 = smov 8   ;;  %s2627_s18 = smov 16  }
  0x29   : > { %689 = vadd.xlane.f32.xlu0 %v688_v4 }
  0x2d   : > { %692 = vadd.xlane.f32.xlu0 %v691_v5 }
  0xb2   : > { %v690_v6 = vpop.xlane.xlu0 %689 }
  0xb3   : > { %v695_v7 = vmul.f32 0.03125, %v690_v6 }
  0xb5   : > { %v697_v8 = vsub.f32 %v2782_v2, %v695_v7 }
  0xb6   : > { %v693_v9 = vpop.xlane.xlu0 %692 }
  0xb7   : > { %v696_v10 = vmul.f32 0.03125, %v693_v9  ;;  %v699_v11 = vmul.f32 %v697_v8, %v697_v8 }
  0xb9   : > { %v698_v12 = vsub.f32 %v2784_v3, %v696_v10  ;;  %v701_v13 = vsel %vm687_vm1, %v699_v11, 0.0 }
  0xba   : > { %702 = vadd.xlane.f32.xlu1 %v701_v13 }
  0xbb   : > { %v700_v14 = vmul.f32 %v698_v12, %v698_v12 }
  0xbd   : > { %v704_v15 = vsel %vm687_vm1, %v700_v14, 0.0 }
  0xbe   : > { %705 = vadd.xlane.f32.xlu1 %v704_v15 }
 0x143   : > { %v703_v19 = vpop.xlane.xlu1 %702 }
 0x144   : > { %v707_v20 = vmul.f32 0.03125, %v703_v19 }
 0x146   : > { %v709_v21 = vadd.f32 1e-05, %v707_v20 }
 0x147   : > { %v706_v22 = vpop.xlane.xlu1 %705 }
 0x148   : > { %2513 = vrsqrt.f32 %v709_v21  ;;  %v708_v23 = vmul.f32 0.03125, %v706_v22 }
 0x14a   : > { %v710_v24 = vadd.f32 1e-05, %v708_v23 }
 0x14c   : > { %2515 = vrsqrt.f32 %v710_v24 }
 0x155   : > { %v2514_v25 = vpop.eup %2513 }
 0x156   : > { %v713_v26 = vmul.f32 %v2514_v25, %v697_v8 }
 0x158   : > { %v721_v30 = vmul.f32 %v2210_v27, %v713_v26 }
 0x159   : > { %v2516_v28 = vpop.eup %2515 }
 0x15a   : > { %v714_v29 = vmul.f32 %v2516_v28, %v698_v12  ;;  %v729_v33 = vadd.f32 %v2211_v31, %v721_v30 }
 0x15c   : > { %v722_v32 = vmul.f32 %v2210_v27, %v714_v29 }
 0x15e   : > { %v730_v34 = vadd.f32 %v2211_v31, %v722_v32 }
 0x160   : > { %v731_v35 = vpack.c.bf16 %v730_v34, %v729_v33 }
 0x162   : > { %2316 = vmatmul.mubr.msk.bf16.vlgmr.msra.gmra.mxu0 %vm687_vm1, %v731_v35 }
 0x163   : > { %2321 = vmatprep.mubr.msk.bf16.mxu0 %vm2614_vm2, %v2613_v17 }
 0x222   : > { %v787_v37 = vpop.f32.mrf.mxu0 }
 0x223   : > { %v788_v38 = vadd.f32 %v2212_v36, %v787_v37 }
 0x224   : > { %v2317_v39 = vpop.f32.mrf.mxu0 }
 0x225   : > { %v2822_v40 = vpack.c.bf16 %v788_v38, %v788_v38  ;;  %v800_v47 = vmul.f32 0.35355338, %v788_v38 }
 0x226   : > { %v790_v41 = vpop.f32.mrf.mxu0 }
 0x227   : > { %v791_v42 = vadd.f32 %v2212_v36, %v790_v41  ;;  %807 = vrot.lane.b32.xlu0 %v2822_v40, %s2615_s22  ;;  %v2830_v49 = vpack.c.bf16 %v800_v47, %v800_v47 }
 0x228   : > { %v2318_v43 = vpop.f32.mrf.mxu0 }
 0x229   : > { %v2825_v44 = vpack.c.bf16 %v791_v42, %v791_v42  ;;  %v801_v51 = vmul.f32 0.35355338, %v791_v42 }
 0x22b   : > { %857 = vrot.lane.b32.xlu1 %v2825_v44, %s2615_s22  ;;  %v2838_v52 = vpack.c.bf16 %v801_v51, %v801_v51  ;;  %s3100_s22 = sld [smem:[#allocation9_spill]] }
 0x299   : > { %v808_v45 = vpop.permute.xlu0 %807 }
 0x29a   : > { %v814_v46 = vsel %vm809_vm3, %v808_v45, 0 }
 0x29b   : > { %2320 = vmatpush3.bf16.xpose.msra.mxu0 %v814_v46 }
 0x29c   : > { %2325 = vmatprep.subr.bf16.mxu0 %v2613_v17 }
 0x29d   : > { %v858_v48 = vpop.permute.xlu1 %857 }
 0x29e   : > { %v863_v50 = vsel %vm809_vm3, %v858_v48, 0 }
 0x2a2   : > { %2322 = vmatmul.mubr.msk.bf16.vlgmr.msra.gmra.mxu0 %vm809_vm3, %v2830_v49 }
 0x2a3   : > { %2326 = vmatpush3.bf16.xpose.msra.mxu0 %v863_v50  ;;  %2327 = vmatprep.mubr.msk.bf16.mxu0 %vm2614_vm2, %v2613_v17 }
 0x2a4   : > { %2337 = vmatprep.subr.bf16.mxu0 %v2613_v17 }
 0x2aa   : > { %2328 = vmatmul.mubr.msk.bf16.vlgmr.msra.gmra.mxu0 %vm809_vm3, %v2838_v52 }
 0x2ab   : > { %2339 = vmatprep.mubr.msk.bf16.mxu0 %vm2614_vm2, %v2613_v17 }
 0x362   : > { %v850_v57 = vpop.f32.mrf.mxu0 }
 0x363   : > { %v851_v58 = vadd.f32 %v850_v57, %v2845_v56 }
 0x364   : > { %v2323_v59 = vpop.f32.mrf.mxu0 }
 0x365   : > { %v905_v60 = vsel %vm809_vm3, %v851_v58, -inf }
 0x366   : > { %906 = vmax.xlane.f32.xlu1 %v905_v60  ;;  %v853_v61 = vpop.f32.mrf.mxu0 }
 0x368   : > { %v2324_v62 = vpop.f32.mrf.mxu0 }
 0x36a   : > { %v899_v63 = vpop.f32.mrf.mxu0 }
 0x36b   : > { %v900_v0 = vadd.f32 %v899_v63, %v2845_v56 }
 0x36c   : > { %v2329_v1 = vpop.f32.mrf.mxu0 }
 0x36d   : > { %v908_v4 = vsel %vm809_vm3, %v900_v0, -inf }
 0x36e   : > { %909 = vmax.xlane.f32.xlu0 %v908_v4  ;;  %v902_v5 = vpop.f32.mrf.mxu0 }
 0x370   : > { %v2330_v6 = vpop.f32.mrf.mxu0 }
 0x377   : > { %978 = vrot.lane.b32.xlu1 %v2825_v44, %s2616_s24 }
 0x37b   : > { %1031 = vrot.lane.b32.xlu1 %v2822_v40, %s2617_s20 }
 0x3ef   : > { %v907_v7 = vpop.xlane.xlu1 %906 }
 0x3f0   : > { %v911_v8 = vsub.f32 %v851_v58, %v907_v7 }
 0x3f2   : > { %v913_v9 = vmul.f32 1.442695, %v911_v8 }
 0x3f3   : > { %v979_v10 = vpop.permute.xlu1 %978 }
 0x3f4   : > { %2517 = vpow2.f32 %v913_v9  ;;  %v984_v11 = vsel %vm934_vm5, %v979_v10, 0 }
 0x3f5   : > { %2338 = vmatpush3.bf16.msra.mxu0 %v984_v11 }
 0x3f6   : > { %2349 = vmatprep.subr.bf16.mxu0 %v2613_v17 }
 0x3f7   : > { %v910_v12 = vpop.xlane.xlu0 %909  ;;  %v1032_v21 = vpop.permute.xlu1 %1031 }
 0x3f8   : > { %v912_v13 = vsub.f32 %v900_v0, %v910_v12  ;;  %v1037_v28 = vsel %vm809_vm3, %v1032_v21, 0 }
 0x3fa   : > { %v915_v14 = vmul.f32 1.442695, %v912_v13 }
 0x3fc   : > { %2519 = vpow2.f32 %v915_v14 }
 0x401   : > { %v2518_v15 = vpop.eup %2517 }
 0x402   : > { %v917_v16 = vsel %vm809_vm3, %v2518_v15, 0.0 }
 0x403   : > { %918 = vadd.xlane.f32.xlu0 %v917_v16 }
 0x409   : > { %v2520_v18 = vpop.eup %2519 }
 0x40a   : > { %v920_v19 = vsel %vm809_vm3, %v2520_v18, 0.0 }
 0x40b   : > { %921 = vadd.xlane.f32.xlu1 %v920_v19 }
 0x419   : > { %929 = vrot.lane.b32.xlu0 %v2822_v40, %s2616_s24  ;;  %s2628_s24 = smov 24  }
 0x41c   : > { %1082 = vrot.lane.b32.xlu1 %v2825_v44, %s2617_s20 }
 0x41d   : > { %1029 = vrot.lane.b32.xlu0 %v2830_v49, %s2618_s14 }
 0x420   : > { %1080 = vrot.lane.b32.xlu1 %v2838_v52, %s2618_s14 }
 0x48c   : > { %v919_v20 = vpop.xlane.xlu0 %918 }
 0x48d   : > { %2521 = vrcp.f32 %v919_v20 }
 0x490   : > { %v930_v22 = vpop.permute.xlu0 %929 }
 0x491   : > { %v936_v23 = vsel %vm934_vm5, %v930_v22, 0 }
 0x492   : > { %2332 = vmatpush3.bf16.msra.mxu1 %v936_v23 }
 0x493   : > { %2343 = vmatprep.subr.bf16.mxu1 %v2613_v17 }
 0x494   : > { %v922_v24 = vpop.xlane.xlu1 %921  ;;  %v1030_v33 = vpop.permute.xlu0 %1029 }
 0x495   : > { %2523 = vrcp.f32 %v922_v24 }
 0x498   : > { %v1083_v31 = vpop.permute.xlu1 %1082 }
 0x499   : > { %v1088_v34 = vsel %vm809_vm3, %v1083_v31, 0 }
 0x49a   : > { %v2522_v25 = vpop.eup %2521 }
 0x49b   : > { %v925_v26 = vmul.f32 %v2522_v25, %v2518_v15 }
 0x49c   : > { %v1081_v35 = vpop.permute.xlu1 %1080 }
 0x49d   : > { %v927_v27 = vpack.c.bf16 %v925_v26, %v925_v26 }
 0x49f   : > { %2334 = vmatmul.mubr.msk.bf16.vlgmr.msra.gmra.mxu1 %vm809_vm3, %v927_v27 }
 0x4a0   : > { %2344 = vmatpush3.bf16.xpose.msra.mxu1 %v1037_v28  ;;  %2345 = vmatprep.mubr.msk.bf16.mxu1 %vm2614_vm2, %v2613_v17 }
 0x4a1   : > { %2355 = vmatprep.subr.bf16.mxu1 %v2613_v17 }
 0x4a2   : > { %v2524_v29 = vpop.eup %2523 }
 0x4a3   : > { %v926_v30 = vmul.f32 %v2524_v29, %v2520_v18 }
 0x4a5   : > { %v928_v32 = vpack.c.bf16 %v926_v30, %v926_v30 }
 0x4a7   : > { %2340 = vmatmul.mubr.msk.bf16.vlgmr.msra.gmra.mxu0 %vm809_vm3, %v928_v32  ;;  %2346 = vmatmul.mubr.msk.bf16.vlgmr.msra.gmra.mxu1 %vm809_vm3, %v1030_v33 }
 0x4a8   : > { %2350 = vmatpush3.bf16.xpose.msra.mxu0 %v1088_v34  ;;  %2351 = vmatprep.mubr.msk.bf16.mxu0 %vm2614_vm2, %v2613_v17 }
 0x4a9   : > { %2361 = vmatprep.subr.bf16.mxu0 %v2613_v17  ;;  %2357 = vmatprep.mubr.msk.bf16.mxu1 %vm2614_vm2, %v2613_v17 }
 0x4af   : > { %2352 = vmatmul.mubr.msk.bf16.vlgmr.msra.gmra.mxu0 %vm809_vm3, %v1081_v35 }
 0x4b0   : > { %2363 = vmatprep.mubr.msk.bf16.mxu0 %vm2614_vm2, %v2613_v17 }
 0x55f   : > { %v972_v36 = vpop.f32.mrf.mxu1 }
 0x560   : > { %1026 = vst.msk [vmem:[#allocation2] sm:$0xff] %vm809_vm3, %v972_v36 }
 0x561   : > { %v2335_v37 = vpop.f32.mrf.mxu1 }
 0x563   : > { %v975_v38 = vpop.f32.mrf.mxu1 }
 0x565   : > { %v2336_v39 = vpop.f32.mrf.mxu1 }
 0x567   : > { %v1020_v41 = vpop.f32.mrf.mxu0  ;;  %v1073_v42 = vpop.f32.mrf.mxu1 }
 0x568   : > { %1027 = vst.msk [vmem:[#allocation2 + $0x8] sm:$0xff] %vm809_vm3, %v1020_v41  ;;  %v1074_v43 = vadd.f32 %v1073_v42, %v2845_v56 }
 0x569   : > { %v2341_v45 = vpop.f32.mrf.mxu0  ;;  %v2347_v46 = vpop.f32.mrf.mxu1 }
 0x56a   : > { %v1130_v47 = vsel %vm809_vm3, %v1074_v43, -inf }
 0x56b   : > { %1131 = vmax.xlane.f32.xlu0 %v1130_v47  ;;  %v1023_v48 = vpop.f32.mrf.mxu0  ;;  %v1076_v50 = vpop.f32.mrf.mxu1 }
 0x56d   : > { %v2342_v51 = vpop.f32.mrf.mxu0  ;;  %v2348_v53 = vpop.f32.mrf.mxu1 }
 0x56f   : > { %v1124_v54 = vpop.f32.mrf.mxu0 }
 0x570   : > { %v1125_v55 = vadd.f32 %v1124_v54, %v2845_v56 }
 0x571   : > { %v2353_v57 = vpop.f32.mrf.mxu0 }
 0x572   : > { %v1133_v58 = vsel %vm809_vm3, %v1125_v55, -inf }
 0x573   : > { %1134 = vmax.xlane.f32.xlu1 %v1133_v58  ;;  %v1127_v59 = vpop.f32.mrf.mxu0 }
 0x575   : > { %v2354_v60 = vpop.f32.mrf.mxu0 }
 0x584   : > { %1202 = vrot.lane.b32.xlu1 %v2825_v44, %s2619_s25 }
 0x588   : > { %1263 = vrot.lane.b32.xlu1 %v2822_v40, %s2620_s26 }
 0x58c   : > { %1313 = vrot.lane.b32.xlu1 %v2825_v44, %s2620_s26 }
 0x590   : > { %1311 = vrot.lane.b32.xlu1 %v2838_v52, %s2621_s15 }
 0x5f4   : > { %v1132_v61 = vpop.xlane.xlu0 %1131 }
 0x5f5   : > { %v1136_v62 = vsub.f32 %v1074_v43, %v1132_v61 }
 0x5f7   : > { %v1138_v63 = vmul.f32 1.442695, %v1136_v62 }
 0x5f9   : > { %2525 = vpow2.f32 %v1138_v63 }
 0x5fc   : > { %v1135_v0 = vpop.xlane.xlu1 %1134 }
 0x5fd   : > { %v1137_v1 = vsub.f32 %v1125_v55, %v1135_v0 }
 0x5ff   : > { %v1140_v4 = vmul.f32 1.442695, %v1137_v1 }
 0x600   : > { %v1203_v5 = vpop.permute.xlu1 %1202 }
 0x601   : > { %2527 = vpow2.f32 %v1140_v4  ;;  %v1208_v6 = vsel %vm934_vm5, %v1203_v5, 0 }
 0x602   : > { %2362 = vmatpush3.bf16.msra.mxu0 %v1208_v6 }
 0x603   : > { %2373 = vmatprep.subr.bf16.mxu0 %v2613_v17 }
 0x604   : > { %v1264_v18 = vpop.permute.xlu1 %1263 }
 0x605   : > { %v1269_v20 = vsel %vm809_vm3, %v1264_v18, 0 }
 0x606   : > { %v2526_v7 = vpop.eup %2525 }
 0x607   : > { %v1142_v8 = vsel %vm809_vm3, %v2526_v7, 0.0 }
 0x608   : > { %1143 = vadd.xlane.f32.xlu0 %v1142_v8  ;;  %v1314_v23 = vpop.permute.xlu1 %1313 }
 0x609   : > { %v1319_v26 = vsel %vm809_vm3, %v1314_v23, 0 }
 0x60c   : > { %v1312_v27 = vpop.permute.xlu1 %1311 }
 0x60e   : > { %v2528_v9 = vpop.eup %2527 }
 0x60f   : > { %v1145_v10 = vsel %vm809_vm3, %v2528_v9, 0.0 }
 0x610   : > { %1146 = vadd.xlane.f32.xlu0 %v1145_v10 }
 0x626   : > { %1154 = vrot.lane.b32.xlu0 %v2822_v40, %s2619_s25  ;;  %s3101_s25 = scalar_lea.vmem %s3077_s6, %s2720_s30 }
 0x62a   : > { %1261 = vrot.lane.b32.xlu0 %v2830_v49, %s2621_s15 }
 0x691   : > { %v1144_v11 = vpop.xlane.xlu0 %1143 }
 0x692   : > { %2529 = vrcp.f32 %v1144_v11 }
 0x699   : > { %v1147_v12 = vpop.xlane.xlu0 %1146 }
 0x69a   : > { %2531 = vrcp.f32 %v1147_v12 }
 0x69d   : > { %v1155_v13 = vpop.permute.xlu0 %1154 }
 0x69e   : > { %v1160_v14 = vsel %vm934_vm5, %v1155_v13, 0 }
 0x69f   : > { %v2530_v15 = vpop.eup %2529  ;;  %2356 = vmatpush3.bf16.msra.mxu1 %v1160_v14 }
 0x6a0   : > { %2367 = vmatprep.subr.bf16.mxu1 %v2613_v17  ;;  %v1150_v16 = vmul.f32 %v2530_v15, %v2526_v7 }
 0x6a1   : > { %v1262_v25 = vpop.permute.xlu0 %1261 }
 0x6a2   : > { %v1152_v19 = vpack.c.bf16 %v1150_v16, %v1150_v16 }
 0x6a4   : > { %2358 = vmatmul.mubr.msk.bf16.vlgmr.msra.gmra.mxu1 %vm809_vm3, %v1152_v19 }
 0x6a5   : > { %2368 = vmatpush3.bf16.xpose.msra.mxu1 %v1269_v20  ;;  %2369 = vmatprep.mubr.msk.bf16.mxu1 %vm2614_vm2, %v2613_v17 }
 0x6a6   : > { %2379 = vmatprep.subr.bf16.mxu1 %v2613_v17 }
 0x6a7   : > { %v2532_v21 = vpop.eup %2531 }
 0x6a8   : > { %v1151_v22 = vmul.f32 %v2532_v21, %v2528_v9 }
 0x6aa   : > { %v1153_v24 = vpack.c.bf16 %v1151_v22, %v1151_v22 }
 0x6ac   : > { %2364 = vmatmul.mubr.msk.bf16.vlgmr.msra.gmra.mxu0 %vm809_vm3, %v1153_v24  ;;  %2370 = vmatmul.mubr.msk.bf16.vlgmr.msra.gmra.mxu1 %vm809_vm3, %v1262_v25 }
 0x6ad   : > { %2374 = vmatpush3.bf16.xpose.msra.mxu0 %v1319_v26  ;;  %2375 = vmatprep.mubr.msk.bf16.mxu0 %vm2614_vm2, %v2613_v17 }
 0x6ae   : > { %2385 = vmatprep.subr.bf16.mxu0 %v2613_v17  ;;  %2381 = vmatprep.mubr.msk.bf16.mxu1 %vm2614_vm2, %v2613_v17 }
 0x6b4   : > { %2376 = vmatmul.mubr.msk.bf16.vlgmr.msra.gmra.mxu0 %vm809_vm3, %v1312_v27 }
 0x6b5   : > { %2387 = vmatprep.mubr.msk.bf16.mxu0 %vm2614_vm2, %v2613_v17 }
 0x764   : > { %v2913_v28 = vpop.f32.mrf.mxu1 }
 0x766   : > { %v2359_v29 = vpop.f32.mrf.mxu1 }
 0x768   : > { %v1199_v30 = vpop.f32.mrf.mxu1 }
 0x76a   : > { %v2360_v31 = vpop.f32.mrf.mxu1 }
 0x76c   : > { %v2915_v32 = vpop.f32.mrf.mxu0  ;;  %v1305_v33 = vpop.f32.mrf.mxu1 }
 0x76d   : > { %v1306_v34 = vadd.f32 %v1305_v33, %v2845_v56 }
 0x76e   : > { %v2365_v35 = vpop.f32.mrf.mxu0  ;;  %v2371_v36 = vpop.f32.mrf.mxu1 }
 0x76f   : > { %v1361_v37 = vsel %vm809_vm3, %v1306_v34, -inf }
 0x770   : > { %1362 = vmax.xlane.f32.xlu0 %v1361_v37  ;;  %v1247_v38 = vpop.f32.mrf.mxu0  ;;  %v1308_v39 = vpop.f32.mrf.mxu1 }
 0x772   : > { %v2366_v41 = vpop.f32.mrf.mxu0  ;;  %v2372_v42 = vpop.f32.mrf.mxu1 }
 0x774   : > { %v1355_v43 = vpop.f32.mrf.mxu0 }
 0x775   : > { %v1356_v45 = vadd.f32 %v1355_v43, %v2845_v56 }
 0x776   : > { %v2377_v46 = vpop.f32.mrf.mxu0 }
 0x777   : > { %v1364_v47 = vsel %vm809_vm3, %v1356_v45, -inf }
 0x778   : > { %1365 = vmax.xlane.f32.xlu1 %v1364_v47  ;;  %v1358_v48 = vpop.f32.mrf.mxu0 }
 0x77a   : > { %v2378_v50 = vpop.f32.mrf.mxu0 }
 0x789   : > { %1433 = vrot.lane.b32.xlu1 %v2825_v44, %s2622_s28 }
 0x78d   : > { %1494 = vrot.lane.b32.xlu1 %v2822_v40, %s2623_s29 }
 0x791   : > { %1544 = vrot.lane.b32.xlu1 %v2825_v44, %s2623_s29 }
 0x795   : > { %1542 = vrot.lane.b32.xlu1 %v2838_v52, %s2624_s13 }
 0x7f9   : > { %v1363_v51 = vpop.xlane.xlu0 %1362 }
 0x7fa   : > { %v1367_v53 = vsub.f32 %v1306_v34, %v1363_v51 }
 0x7fc   : > { %v1369_v54 = vmul.f32 1.442695, %v1367_v53 }
 0x7fe   : > { %2533 = vpow2.f32 %v1369_v54 }
 0x801   : > { %v1366_v55 = vpop.xlane.xlu1 %1365 }
 0x802   : > { %v1368_v57 = vsub.f32 %v1356_v45, %v1366_v55 }
 0x804   : > { %v1371_v58 = vmul.f32 1.442695, %v1368_v57 }
 0x805   : > { %v1434_v59 = vpop.permute.xlu1 %1433 }
 0x806   : > { %2535 = vpow2.f32 %v1371_v58  ;;  %v1439_v60 = vsel %vm934_vm5, %v1434_v59, 0 }
 0x807   : > { %2386 = vmatpush3.bf16.msra.mxu0 %v1439_v60 }
 0x808   : > { %2397 = vmatprep.subr.bf16.mxu0 %v2613_v17 }
 0x809   : > { %v1495_v8 = vpop.permute.xlu1 %1494 }
 0x80a   : > { %v1500_v10 = vsel %vm809_vm3, %v1495_v8, 0 }
 0x80b   : > { %v2534_v61 = vpop.eup %2533 }
 0x80c   : > { %v1373_v62 = vsel %vm809_vm3, %v2534_v61, 0.0 }
 0x80d   : > { %1374 = vadd.xlane.f32.xlu0 %v1373_v62  ;;  %v1545_v12 = vpop.permute.xlu1 %1544 }
 0x80e   : > { %v1550_v15 = vsel %vm809_vm3, %v1545_v12, 0 }
 0x811   : > { %v1543_v16 = vpop.permute.xlu1 %1542 }
 0x813   : > { %v2536_v63 = vpop.eup %2535 }
 0x814   : > { %v1376_v52 = vsel %vm809_vm3, %v2536_v63, 0.0 }
 0x815   : > { %1377 = vadd.xlane.f32.xlu0 %v1376_v52 }
 0x82b   : > { %1385 = vrot.lane.b32.xlu0 %v2822_v40, %s2622_s28 }
 0x82f   : > { %1492 = vrot.lane.b32.xlu0 %v2830_v49, %s2624_s13  ;;  %s2629_s13 = smov [#allocation3]  }
 0x896   : > { %v1375_v0 = vpop.xlane.xlu0 %1374 }
 0x897   : > { %2537 = vrcp.f32 %v1375_v0 }
 0x89e   : > { %v1378_v1 = vpop.xlane.xlu0 %1377 }
 0x89f   : > { %2539 = vrcp.f32 %v1378_v1  ;;  %v2501_v1 = vld [vmem:[%s3100_s22 + $0x8] sm:$0xff]  }
 0x8a2   : > { %v1386_v4 = vpop.permute.xlu0 %1385 }
 0x8a3   : > { %v1391_v5 = vsel %vm934_vm5, %v1386_v4, 0  ;;  %v2502_v4 = vld [vmem:[%s3100_s22] sm:$0xff]  }
 0x8a4   : > { %v2538_v6 = vpop.eup %2537  ;;  %2380 = vmatpush3.bf16.msra.mxu1 %v1391_v5 }
 0x8a5   : > { %2391 = vmatprep.subr.bf16.mxu1 %v2613_v17  ;;  %v1381_v7 = vmul.f32 %v2538_v6, %v2534_v61 }
 0x8a6   : > { %v1493_v14 = vpop.permute.xlu0 %1492 }
 0x8a7   : > { %v1383_v9 = vpack.c.bf16 %v1381_v7, %v1381_v7 }
 0x8a9   : > { %2382 = vmatmul.mubr.msk.bf16.vlgmr.msra.gmra.mxu1 %vm809_vm3, %v1383_v9 }
 0x8aa   : > { %2392 = vmatpush3.bf16.xpose.msra.mxu1 %v1500_v10  ;;  %2393 = vmatprep.mubr.msk.bf16.mxu1 %vm2614_vm2, %v2613_v17 }
 0x8ab   : > { %2403 = vmatprep.subr.bf16.mxu1 %v2613_v17 }
 0x8ac   : > { %v2540_v49 = vpop.eup %2539 }
 0x8ad   : > { %v1382_v11 = vmul.f32 %v2540_v49, %v2536_v63 }
 0x8af   : > { %v1384_v13 = vpack.c.bf16 %v1382_v11, %v1382_v11 }
 0x8b1   : > { %2388 = vmatmul.mubr.msk.bf16.vlgmr.msra.gmra.mxu0 %vm809_vm3, %v1384_v13  ;;  %2394 = vmatmul.mubr.msk.bf16.vlgmr.msra.gmra.mxu1 %vm809_vm3, %v1493_v14 }
 0x8b2   : > { %2398 = vmatpush3.bf16.xpose.msra.mxu0 %v1550_v15  ;;  %2399 = vmatprep.mubr.msk.bf16.mxu0 %vm2614_vm2, %v2613_v17 }
 0x8b3   : > { %2409 = vmatprep.subr.bf16.mxu0 %v2613_v17  ;;  %2405 = vmatprep.mubr.msk.bf16.mxu1 %vm2614_vm2, %v2613_v17 }
 0x8b9   : > { %2400 = vmatmul.mubr.msk.bf16.vlgmr.msra.gmra.mxu0 %vm809_vm3, %v1543_v16 }
 0x8ba   : > { %2411 = vmatprep.mubr.msk.bf16.mxu0 %vm2614_vm2, %v2613_v17 }
 0x969   : > { %v1427_v18 = vpop.f32.mrf.mxu1 }
 0x96b   : > { %v2383_v19 = vpop.f32.mrf.mxu1 }
 0x96d   : > { %v1430_v20 = vpop.f32.mrf.mxu1 }
 0x96f   : > { %v2384_v21 = vpop.f32.mrf.mxu1 }
 0x971   : > { %v1475_v22 = vpop.f32.mrf.mxu0  ;;  %v1536_v23 = vpop.f32.mrf.mxu1 }
 0x972   : > { %v1537_v24 = vadd.f32 %v1536_v23, %v2845_v56 }
 0x973   : > { %v2389_v25 = vpop.f32.mrf.mxu0  ;;  %v2395_v26 = vpop.f32.mrf.mxu1 }
 0x974   : > { %v1592_v27 = vsel %vm809_vm3, %v1537_v24, -inf }
 0x975   : > { %1593 = vmax.xlane.f32.xlu0 %v1592_v27  ;;  %v1478_v29 = vpop.f32.mrf.mxu0  ;;  %v1539_v30 = vpop.f32.mrf.mxu1 }
 0x977   : > { %v2390_v31 = vpop.f32.mrf.mxu0  ;;  %v2396_v33 = vpop.f32.mrf.mxu1 }
 0x979   : > { %v1586_v34 = vpop.f32.mrf.mxu0 }
 0x97a   : > { %v1587_v35 = vadd.f32 %v1586_v34, %v2845_v56 }
 0x97b   : > { %v2401_v36 = vpop.f32.mrf.mxu0 }
 0x97c   : > { %v1595_v37 = vsel %vm809_vm3, %v1587_v35, -inf }
 0x97d   : > { %1596 = vmax.xlane.f32.xlu1 %v1595_v37  ;;  %v1589_v38 = vpop.f32.mrf.mxu0 }
 0x97f   : > { %v2402_v39 = vpop.f32.mrf.mxu0 }
 0x980   : > { %v2503_v39 = vld [vmem:[%s2760_s3 + $0x8] sm:$0xff]  }
 0x98e   : > { %1664 = vrot.lane.b32.xlu1 %v2825_v44, %s2625_s16 }
 0x992   : > { %1252 = vrot.lane.b32.xlu1 %v2913_v28, %s2626_s19 }
 0x996   : > { %1254 = vrot.lane.b32.xlu1 %v2915_v32, %s2626_s19 }
 0x99a   : > { %1485 = vrot.lane.b32.xlu1 %v1475_v22, %s2627_s18 }
 0x9fe   : > { %v1594_v56 = vpop.xlane.xlu0 %1593 }
 0x9ff   : > { %v1598_v41 = vsub.f32 %v1537_v24, %v1594_v56  ;;  %v2504_v56 = vld [vmem:[%s2760_s3] sm:$0xff]  }
 0xa01   : > { %v1600_v42 = vmul.f32 1.442695, %v1598_v41 }
 0xa03   : > { %2541 = vpow2.f32 %v1600_v42 }
 0xa06   : > { %v1597_v43 = vpop.xlane.xlu1 %1596 }
 0xa07   : > { %v1599_v45 = vsub.f32 %v1587_v35, %v1597_v43 }
 0xa09   : > { %v1602_v46 = vmul.f32 1.442695, %v1599_v45 }
 0xa0a   : > { %v1665_v47 = vpop.permute.xlu1 %1664 }
 0xa0b   : > { %2543 = vpow2.f32 %v1602_v46  ;;  %v1670_v44 = vsel %vm934_vm5, %v1665_v47, 0 }
 0xa0c   : > { %2410 = vmatpush3.bf16.msra.mxu0 %v1670_v44 }
 0xa0d   : > { %2423 = vmatprep.subr.bf16.mxu0 %v2613_v17 }
 0xa0e   : > { %v1253_v28 = vpop.permute.xlu1 %1252 }
 0xa0f   : > { %1259 = vst.msk [vmem:[#allocation2] sm:$0xff] %vm1258_vm6, %v1253_v28 }
 0xa10   : > { %v2542_v32 = vpop.eup %2541 }
 0xa11   : > { %v1604_v48 = vsel %vm809_vm3, %v2542_v32, 0.0 }
 0xa12   : > { %1605 = vadd.xlane.f32.xlu0 %v1604_v48  ;;  %v1255_v50 = vpop.permute.xlu1 %1254 }
 0xa13   : > { %1260 = vst.msk [vmem:[#allocation2 + $0x8] sm:$0xff] %vm1258_vm6, %v1255_v50 }
 0xa16   : > { %v1486_v51 = vpop.permute.xlu1 %1485 }
 0xa17   : > { %1491 = vst.msk [vmem:[#allocation2 + $0x8] sm:$0xff] %vm1489_vm7, %v1486_v51 }
 0xa18   : > { %v2544_v53 = vpop.eup %2543 }
 0xa19   : > { %v1607_v54 = vsel %vm809_vm3, %v2544_v53, 0.0 }
 0xa1a   : > { %1608 = vadd.xlane.f32.xlu0 %v1607_v54 }
 0xa30   : > { %1616 = vrot.lane.b32.xlu0 %v2822_v40, %s2625_s16  ;;  %s2020_s16 = sshll.u32 %s2629_s13, 4  ;;  %s2021_s16 = int_to_ptr.vmem [resolvable:$true] %s2020_s16 }
 0xa31   : > { %s2561_s30 = scalar_lea.vmem %s2021_s16, 256  ;;  %p2568_p10 = scmp.lt.s32.totalorder %s2021_s16, %s2021_s16 }
 0xa32   : > { %p2562_p7 = scmp.ne.s32.totalorder %s2021_s16, %s2561_s30  ;;  %p2569_p11 = scmp.lt.s32.totalorder %s2561_s30, %s2561_s30 }
 0xa34   : > { %1483 = vrot.lane.b32.xlu0 %v1427_v18, %s2627_s18  ;;  %v2232_v18 = vld [vmem:[%s3101_s25] ss:$0 sm:$0xff]  ;;  %p2570_p12 = por %p2569_p11, %p2568_p10 }
 0xa9b   : > { %v1606_v55 = vpop.xlane.xlu0 %1605 }
 0xa9c   : > { %2545 = vrcp.f32 %v1606_v55 }
 0xaa3   : > { %v1609_v57 = vpop.xlane.xlu0 %1608 }
 0xaa4   : > { %2547 = vrcp.f32 %v1609_v57 }
 0xaa7   : > { %v1617_v58 = vpop.permute.xlu0 %1616 }
 0xaa8   : > { %v1622_v59 = vsel %vm934_vm5, %v1617_v58, 0 }
 0xaa9   : > { %v2546_v60 = vpop.eup %2545  ;;  %2404 = vmatpush3.bf16.msra.mxu1 %v1622_v59  ;;  %v2505_v59 = vld [vmem:[%s2770_s17 + $0x38] sm:$0xff]  }
 0xaaa   : > { %v1612_v61 = vmul.f32 %v2546_v60, %v2542_v32  ;;  %2415 = vmatprep.subr.bf16.mxu1 %v2613_v17  ;;  %v2236_v32 = vld [vmem:[%s618_s27] ss:$0 sm:$0xff]  ;;  %v2506_v60 = vld [vmem:[%s2770_s17 + $0x30] sm:$0xff]  }
 0xaab   : > { %v1484_v62 = vpop.permute.xlu0 %1483 }
 0xaac   : > { %1490 = vst.msk [vmem:[#allocation2] sm:$0xff] %vm1489_vm7, %v1484_v62  ;;  %v1614_v63 = vpack.c.bf16 %v1612_v61, %v1612_v61  ;;  %v2507_v61 = vld [vmem:[%s2770_s17 + $0x28] sm:$0xff]   ;;  %v2508_v62 = vld [vmem:[%s2770_s17 + $0x20] sm:$0xff]  }
 0xaae   : > { %2406 = vmatmul.mubr.msk.bf16.vlgmr.msra.gmra.mxu1 %vm809_vm3, %v1614_v63  ;;  %v2509_v63 = vld [vmem:[%s2770_s17 + $0x18] sm:$0xff]  }
 0xaaf   : > { %2419 = vmatprep.mubr.msk.bf16.mxu1 %vm2614_vm2, %v2613_v17  ;;  %2416 = vmatpush3.bf16.msra.mxu1 %v2501_v1  ;;  %v2238_v1 = vld [vmem:[%s629_s5] ss:$0 sm:$0xff]  ;;  %s3102_s5 = sld [smem:[#allocation7_spill]] }
 0xab0   : > { %2417 = vmatprep.subr.bf16.mxu1 %v2613_v17 }
 0xab1   : > { %v2548_v40 = vpop.eup %2547 }
 0xab2   : > { %v1613_v52 = vmul.f32 %v2548_v40, %v2544_v53  ;;  %v2237_v53 = vld [vmem:[%s621_s23] ss:$0 sm:$0xff]  ;;  %v2510_v40 = vld [vmem:[%s2770_s17 + $0x10] sm:$0xff]  }
 0xab3   : > { %2418 = vmatpush3.bf16.msra.mxu1 %v2502_v4 }
 0xab4   : > { %v1615_v0 = vpack.c.bf16 %v1613_v52, %v1613_v52  ;;  %2431 = vmatprep.subr.bf16.mxu1 %v2613_v17  ;;  %v2511_v52 = vld [vmem:[%s2770_s17 + $0x8] sm:$0xff]  }
 0xab5   : > { %s3103_s18 = sadd.s32 4294967295, %s3102_s5  }
 0xab6   : > { %2412 = vmatmul.mubr.msk.bf16.vlgmr.msra.gmra.mxu0 %vm809_vm3, %v1615_v0  ;;  %v2512_v0 = vld [vmem:[%s2770_s17] sm:$0xff]   ;;  %p3044_p6 = scmp.eq.s32.totalorder %s3103_s18, 1 }
 0xab7   : > { %2427 = vmatprep.mubr.msk.bf16.mxu0 %vm2614_vm2, %v2613_v17  ;;  %2424 = vmatpush3.bf16.msra.mxu0 %v2503_v39 }
 0xab8   : > { %2425 = vmatprep.subr.bf16.mxu0 %v2613_v17  ;;  %p2563_p8 = pnand %p2562_p7, %p3044_p6 }
 0xaba   : > { %p2564_p9 = pneg %p2563_p8 }
 0xabb   : > { %2426 = vmatpush3.bf16.msra.mxu0 %v2504_v56 }
 0xabc   : > { %p2571_p13 = pnand %p2570_p12, %p2564_p9 }
 0xb6e   : > { %v1658_v5 = vpop.f32.mrf.mxu1 }
 0xb6f   : > { %1714 = vrot.lane.b32.xlu0 %v1658_v5, %s2628_s24 }
 0xb70   : > { %v2407_v6 = vpop.f32.mrf.mxu1 }
 0xb72   : > { %v1661_v7 = vpop.f32.mrf.mxu1 }
 0xb74   : > { %v2408_v8 = vpop.f32.mrf.mxu1 }
 0xb76   : > { %v1706_v9 = vpop.f32.mrf.mxu0 }
 0xb77   : > { %1716 = vrot.lane.b32.xlu1 %v1706_v9, %s2628_s24 }
 0xb78   : > { %v2413_v10 = vpop.f32.mrf.mxu0 }
 0xb7a   : > { %v1709_v49 = vpop.f32.mrf.mxu0 }
 0xb7c   : > { %v2414_v11 = vpop.f32.mrf.mxu0 }
 0xbe1   : > { %v1715_v12 = vpop.permute.xlu0 %1714 }
 0xbe2   : > { %1721 = vst.msk [vmem:[#allocation2] sm:$0xff] %vm1720_vm8, %v1715_v12 }
 0xbe9   : > { %v1717_v13 = vpop.permute.xlu1 %1716  ;;  %v1723_v14 = vld [vmem:[#allocation2] sm:$0xff] }
 0xbea   : > { %1722 = vst.msk [vmem:[#allocation2 + $0x8] sm:$0xff] %vm1720_vm8, %v1717_v13 }
 0xbf1   : > { %v1724_v15 = vld [vmem:[#allocation2 + $0x8] sm:$0xff] }
 0xbf2   : > { %v1725_v16 = vpack.c.bf16 %v1724_v15, %v1723_v14 }
 0xbf4   : > { %2420 = vmatmul.mubr.msk.bf16.vlgmr.msra.gmra.mxu1 %vm687_vm1, %v1725_v16 }
 0xbf5   : > { %2447 = vmatprep.mubr.msk.bf16.mxu1 %vm2614_vm2, %v2613_v17  ;;  %2432 = vmatpush3.bf16.msra.mxu1 %v2505_v59 }
 0xbf6   : > { %2433 = vmatprep.subr.bf16.mxu1 %v2613_v17 }
 0xbf9   : > { %2434 = vmatpush3.bf16.msra.mxu1 %v2506_v60 }
 0xbfa   : > { %2435 = vmatprep.subr.bf16.mxu1 %v2613_v17 }
 0xbfd   : > { %2436 = vmatpush3.bf16.msra.mxu1 %v2507_v61 }
 0xbfe   : > { %2437 = vmatprep.subr.bf16.mxu1 %v2613_v17 }
 0xc01   : > { %2438 = vmatpush3.bf16.msra.mxu1 %v2508_v62 }
 0xc02   : > { %2439 = vmatprep.subr.bf16.mxu1 %v2613_v17 }
 0xc05   : > { %2440 = vmatpush3.bf16.msra.mxu1 %v2509_v63 }
 0xc06   : > { %2441 = vmatprep.subr.bf16.mxu1 %v2613_v17 }
 0xc09   : > { %2442 = vmatpush3.bf16.msra.mxu1 %v2510_v40 }
 0xc0a   : > { %2443 = vmatprep.subr.bf16.mxu1 %v2613_v17 }
 0xc0d   : > { %2444 = vmatpush3.bf16.msra.mxu1 %v2511_v52 }
 0xc0e   : > { %2445 = vmatprep.subr.bf16.mxu1 %v2613_v17 }
 0xc11   : > { %2446 = vmatpush3.bf16.msra.mxu1 %v2512_v0 }
 0xcb4   : > { %v1781_v19 = vpop.f32.mrf.mxu1 }
 0xcb5   : > { %v1782_v20 = vadd.f32 %v2232_v18, %v1781_v19 }
 0xcb6   : > { %v2421_v21 = vpop.f32.mrf.mxu1 }
 0xcb7   : > { %v2988_v22 = vadd.f32 %v1782_v20, %v2782_v2 }
 0xcb8   : > { %v1784_v23 = vpop.f32.mrf.mxu1 }
 0xcb9   : > { %v1785_v24 = vadd.f32 %v2232_v18, %v1784_v23  ;;  %v1790_v25 = vsel %vm687_vm1, %v2988_v22, 0.0  ;;  %v2244_v23 = vld [vmem:[%s637_s21] ss:$0 sm:$0xff] }
 0xcba   : > { %1791 = vadd.xlane.f32.xlu0 %v1790_v25  ;;  %v2422_v26 = vpop.f32.mrf.mxu1 }
 0xcbb   : > { %v2993_v27 = vadd.f32 %v1785_v24, %v2784_v3 }
 0xcbd   : > { %v1793_v29 = vsel %vm687_vm1, %v2993_v27, 0.0 }
 0xcbe   : > { %1794 = vadd.xlane.f32.xlu1 %v1793_v29 }
 0xd43   : > { %v1792_v30 = vpop.xlane.xlu0 %1791 }
 0xd44   : > { %v1796_v31 = vmul.f32 0.03125, %v1792_v30 }
 0xd46   : > { %v1798_v2 = vsub.f32 %v2988_v22, %v1796_v31 }
 0xd47   : > { %v1795_v33 = vpop.xlane.xlu1 %1794 }
 0xd48   : > { %v1797_v34 = vmul.f32 0.03125, %v1795_v33  ;;  %v1800_v35 = vmul.f32 %v1798_v2, %v1798_v2 }
 0xd4a   : > { %v1799_v36 = vsub.f32 %v2993_v27, %v1797_v34  ;;  %v1802_v37 = vsel %vm687_vm1, %v1800_v35, 0.0 }
 0xd4b   : > { %1803 = vadd.xlane.f32.xlu0 %v1802_v37 }
 0xd4c   : > { %v1801_v38 = vmul.f32 %v1799_v36, %v1799_v36 }
 0xd4e   : > { %v1805_v3 = vsel %vm687_vm1, %v1801_v38, 0.0 }
 0xd4f   : > { %1806 = vadd.xlane.f32.xlu0 %v1805_v3 }
 0xdd4   : > { %v1804_v41 = vpop.xlane.xlu0 %1803 }
 0xdd5   : > { %v1808_v42 = vmul.f32 0.03125, %v1804_v41 }
 0xdd7   : > { %v1810_v43 = vadd.f32 1e-05, %v1808_v42 }
 0xdd8   : > { %v1807_v45 = vpop.xlane.xlu0 %1806 }
 0xdd9   : > { %2549 = vrsqrt.f32 %v1810_v43  ;;  %v1809_v46 = vmul.f32 0.03125, %v1807_v45 }
 0xddb   : > { %v1811_v47 = vadd.f32 1e-05, %v1809_v46 }
 0xddd   : > { %2551 = vrsqrt.f32 %v1811_v47 }
 0xde6   : > { %v2550_v44 = vpop.eup %2549 }
 0xde7   : > { %v1814_v28 = vmul.f32 %v2550_v44, %v1798_v2 }
 0xde9   : > { %v1822_v51 = vmul.f32 %v2236_v32, %v1814_v28 }
 0xdea   : > { %v2552_v48 = vpop.eup %2551 }
 0xdeb   : > { %v1815_v50 = vmul.f32 %v2552_v48, %v1799_v36  ;;  %v1830_v55 = vadd.f32 %v2237_v53, %v1822_v51 }
 0xded   : > { %v1823_v54 = vmul.f32 %v2236_v32, %v1815_v50 }
 0xdef   : > { %v1831_v57 = vadd.f32 %v2237_v53, %v1823_v54 }
 0xdf1   : > { %v1832_v58 = vpack.c.bf16 %v1831_v57, %v1830_v55 }
 0xdf3   : > { %2428 = vmatmul.mubr.msk.bf16.vlgmr.msra.gmra.mxu0 %vm687_vm1, %v1832_v58 }
 0xeb3   : > { %v1888_v4 = vpop.f32.mrf.mxu0 }
 0xeb4   : > { %v1889_v5 = vadd.f32 %v2238_v1, %v1888_v4 }
 0xeb5   : > { %v2429_v6 = vpop.f32.mrf.mxu0 }
 0xeb6   : > { %v2242_v7 = vmul.f32 -1.702, %v1889_v5 }
 0xeb7   : > { %v1891_v8 = vpop.f32.mrf.mxu0 }
 0xeb8   : > { %v1899_v9 = vmul.f32 1.442695, %v2242_v7  ;;  %v1892_v10 = vadd.f32 %v2238_v1, %v1891_v8 }
 0xeb9   : > { %v2430_v49 = vpop.f32.mrf.mxu0 }
 0xeba   : > { %2553 = vpow2.f32 %v1899_v9  ;;  %v2243_v11 = vmul.f32 -1.702, %v1892_v10 }
 0xebc   : > { %v1901_v12 = vmul.f32 1.442695, %v2243_v11 }
 0xebe   : > { %2555 = vpow2.f32 %v1901_v12 }
 0xec7   : > { %v2554_v17 = vpop.eup %2553 }
 0xec8   : > { %v1903_v13 = vadd.f32 1.0, %v2554_v17 }
 0xeca   : > { %2557 = vrcp.f32 %v1903_v13 }
 0xecb   : > { %v2556_v14 = vpop.eup %2555 }
 0xecc   : > { %v1904_v15 = vadd.f32 1.0, %v2556_v14 }
 0xece   : > { %2559 = vrcp.f32 %v1904_v15 }
 0xed7   : > { %v2558_v16 = vpop.eup %2557 }
 0xed8   : > { %v1909_v19 = vmul.f32 %v2558_v16, %v1889_v5 }
 0xedb   : > { %v2560_v18 = vpop.eup %2559 }
 0xedc   : > { %v1910_v20 = vmul.f32 %v2560_v18, %v1892_v10 }
 0xede   : > { %v1911_v21 = vpack.c.bf16 %v1910_v20, %v1909_v19 }
 0xee0   : > { %2448 = vmatmul.mubr.bf16.vlgmr.msra.gmra.mxu1 %v1911_v21 }
 0xfa0   : > { %v2000_v24 = vpop.f32.mrf.mxu1 }
 0xfa1   : > { %v2001_v25 = vadd.f32 %v2244_v23, %v2000_v24 }
 0xfa2   : > { %v2449_v26 = vpop.f32.mrf.mxu1 }
 0xfa3   : > { %v2007_v29 = vadd.f32 %v2001_v25, %v2988_v22 }
 0xfa4   : > { %v2003_v30 = vpop.f32.mrf.mxu1 }
 0xfa5   : > { %2009 = vst.msk [vmem:[#allocation3] sm:$0xff] %vm687_vm1, %v2007_v29  ;;  %v2004_v31 = vadd.f32 %v2244_v23, %v2003_v30 }
 0xfa6   : > { %v2450_v2 = vpop.f32.mrf.mxu1 }
 0xfa7   : > { %v2008_v33 = vadd.f32 %v2004_v31, %v2993_v27 }
 0xfa9   : > { %2010 = vst.msk [vmem:[#allocation3 + $0x8] sm:$0xff] %vm687_vm1, %v2008_v33 }
 0xfaa   : > { %2574 = shalt.err (!%p2571_p13)
}
 0xfab   : > { %s2630_s21 = smov 128   ;;  %s3105_s14 = sld [smem:[#allocation12_spill]] }
 0xfb1   : > { %2452 = dma.vmem_to_hbm [thread:$0]  (%p3044_p6), %s2021_s16, 256, %s3105_s14, [#allocation4], %s2630_s21, %s2630_s21, %s2626_s19  }
 0xfb2   : > { %2598 = dma.done.wait (%p3044_p6), [#allocation4], 256  }
 0xfb3   : > { %2600 = vsyncadd (%p3044_p6), [#allocation4], 4294967040 }
 0xfb4 PF: > { %s3106_s25 = sld [smem:[#allocation7_spill]] }
 0xfb5   : > { %s3108_s26 = sld [smem:[#allocation8_spill]] }
 0xfba   : > { %s24_s27 = sadd.s32 1, %s3106_s25   ;;  %s3107_s25 = sld [smem:[#allocation6_spill]] }
 0xfbb   : > { %p21_p0 = scmp.ge.s32.totalorder %s24_s27, 4  }
 0xfbd   :  { %23 = sbr.rel (!%p21_p0) target bundleno = 6 (0x6), region = 140 }
 0xfc2   :  { %2036 = vsyncpa [#allocation4], 1 }
 0xfc3   :  { %2038 = vsyncpa [#allocation4 + $0x1], 1 }

// kernel: tpu_custom_call.1
= control target key start
LH: loop header
LB: loop body
LE: loop exit
PB: predicated region body
PF: predicated region fallthrough
CT: control target
= control target key end

     0   :  { %vm84_vm0 = vcmask 261120   ;;  %s2131_s0 = inlined_call_operand.vmem [shape: f32[2,8,32], index: 0, kind: input, shape index: {}]   ;;  %s2132_s1 = inlined_call_operand.vmem [shape: f32[2,1,32], index: 1, kind: input, shape index: {}]   ;;  %s2133_s2 = inlined_call_operand.vmem [shape: f32[2,1,32], index: 2, kind: input, shape index: {}]   ;;  %s2134_s3 = inlined_call_operand.vmem [shape: bf16[2,32,96], index: 3, kind: input, shape index: {}]   ;;  %s2135_s4 = inlined_call_operand.vmem [shape: f32[2,1,96], index: 4, kind: input, shape index: {}]   ;;  %s2136_s5 = inlined_call_operand.vmem [shape: bf16[2,32,32], index: 5, kind: input, shape index: {}]   ;;  %s2137_s6 = inlined_call_operand.vmem [shape: f32[2,1,32], index: 6, kind: input, shape index: {}]   ;;  %s2138_s7 = inlined_call_operand.vmem [shape: f32[2,1,32], index: 7, kind: input, shape index: {}]   ;;  %s2139_s8 = inlined_call_operand.vmem [shape: f32[2,1,32], index: 8, kind: input, shape index: {}]   ;;  %s2140_s9 = inlined_call_operand.vmem [shape: bf16[2,32,128], index: 9, kind: input, shape index: {}]   ;;  %s2141_s10 = inlined_call_operand.vmem [shape: f32[2,1,128], index: 10, kind: input, shape index: {}]   ;;  %s2142_s11 = inlined_call_operand.vmem [shape: bf16[2,128,32], index: 11, kind: input, shape index: {}]   ;;  %s2143_s12 = inlined_call_operand.vmem [shape: f32[2,1,32], index: 12, kind: input, shape index: {}]   ;;  %s2144_s13 = inlined_call_operand.hbm [shape: f32[2,8,32], index: 13, kind: output, shape index: {}]  }
   0x1   :  { %v1850_v0 = vld [vmem:[%s2131_s0] sm:$0xff]  ;;  %v1855_v1 = vld [vmem:[%s2131_s0 + $0x8] sm:$0xff] }
   0x2   :  { %v85_v2 = vsel %vm84_vm0, %v1850_v0, 0.0  ;;  %v88_v3 = vsel %vm84_vm0, %v1855_v1, 0.0 }
   0x3   :  { %86 = vadd.xlane.f32.xlu0 %v85_v2 }
   0x7   :  { %89 = vadd.xlane.f32.xlu0 %v88_v3 }
   0x8   :  { %18 = vsyncpa [#allocation4], 0  ;;  %v1675_v14 = vld [vmem:[%s2134_s3 + $0x8] sm:$0xff]   ;;  %v1759_v15 = vmov 0.0   ;;  %vm1760_vm1 = vmmov 0   ;;  %v1676_v16 = vld [vmem:[%s2134_s3] sm:$0xff]   ;;  %v191_v51 = vlaneseq }
   0x9   :  { %1517 = vmatprep.subr.bf16.mxu0 %v1759_v15  ;;  %1521 = vmatprep.mubr.msk.bf16.mxu0 %vm1760_vm1, %v1759_v15  ;;  %v1424_v25 = vld [vmem:[%s2132_s1] ss:$0 sm:$0xff]  ;;  %s1761_s1 = smov 96   ;;  %vm206_vm2 = vcmask 64512   ;;  %vm331_vm4 = vcmask 1043456   ;;  %s1764_s20 = smov 120  }
   0xa   :  { %1518 = vmatpush3.bf16.msra.mxu0 %v1675_v14  ;;  %1537 = vmatprep.subr.bf16.mxu1 %v1759_v15  ;;  %v1425_v29 = vld [vmem:[%s2133_s2] ss:$0 sm:$0xff]  ;;  %v192_v52 = vshrl.u32 %v191_v51, 7  ;;  %v194_v53 = vand.u32 127, %v191_v51  ;;  %s1762_s2 = smov 64   ;;  %s1765_s21 = smov 56  }
   0xb   :  { %1519 = vmatprep.subr.bf16.mxu0 %v1759_v15  ;;  %1539 = vmatprep.mubr.msk.bf16.mxu1 %vm1760_vm1, %v1759_v15  ;;  %v1426_v34 = vld [vmem:[%s2135_s4] ss:$0 sm:$0xff]  ;;  %s1763_s4 = smov 88   ;;  %s1766_s22 = smov 80   ;;  %vm655_vm5 = vcmask 130112   ;;  %vm886_vm6 = vcmask 195712  }
   0xc   :  { %vm195_vm3 = vcmp.gt.s32.totalorder %v194_v53, %v192_v52  ;;  %s1767_s23 = smov 112   ;;  %s1768_s24 = smov 48   ;;  %vm1117_vm7 = vcmask 261312  }
   0xd   :  { %v1914_v54 = vsel %vm195_vm3, -1e+30, %v1759_v15  ;;  %s1769_s25 = smov 72   ;;  %s1770_s26 = smov 104  }
   0xe   :  { %1520 = vmatpush3.bf16.msra.mxu0 %v1676_v16  ;;  %s1771_s27 = smov 40   ;;  %s1772_s28 = smov 8  }
   0xf   :  { %1525 = vmatprep.subr.bf16.mxu0 %v1759_v15  ;;  %s1773_s0 = smov 16   ;;  %s1774_s15 = smov 24  }
  0x8c   :  { %v87_v4 = vpop.xlane.xlu0 %86 }
  0x8d   :  { %v92_v5 = vmul.f32 0.03125, %v87_v4 }
  0x8f   :  { %v94_v6 = vsub.f32 %v1850_v0, %v92_v5 }
  0x90   :  { %v90_v7 = vpop.xlane.xlu0 %89 }
  0x91   :  { %v93_v8 = vmul.f32 0.03125, %v90_v7  ;;  %v96_v9 = vmul.f32 %v94_v6, %v94_v6 }
  0x93   :  { %v95_v10 = vsub.f32 %v1855_v1, %v93_v8  ;;  %v98_v11 = vsel %vm84_vm0, %v96_v9, 0.0 }
  0x94   :  { %99 = vadd.xlane.f32.xlu1 %v98_v11 }
  0x95   :  { %v97_v12 = vmul.f32 %v95_v10, %v95_v10 }
  0x97   :  { %v101_v13 = vsel %vm84_vm0, %v97_v12, 0.0 }
  0x98   :  { %102 = vadd.xlane.f32.xlu1 %v101_v13 }
 0x11d   :  { %v100_v17 = vpop.xlane.xlu1 %99 }
 0x11e   :  { %v104_v18 = vmul.f32 0.03125, %v100_v17 }
 0x120   :  { %v106_v19 = vadd.f32 1e-05, %v104_v18 }
 0x121   :  { %v103_v20 = vpop.xlane.xlu1 %102 }
 0x122   :  { %1689 = vrsqrt.f32 %v106_v19  ;;  %v105_v21 = vmul.f32 0.03125, %v103_v20 }
 0x124   :  { %v107_v22 = vadd.f32 1e-05, %v105_v21 }
 0x126   :  { %1691 = vrsqrt.f32 %v107_v22 }
 0x12f   :  { %v1690_v23 = vpop.eup %1689 }
 0x130   :  { %v110_v24 = vmul.f32 %v1690_v23, %v94_v6 }
 0x132   :  { %v118_v28 = vmul.f32 %v1424_v25, %v110_v24 }
 0x133   :  { %v1692_v26 = vpop.eup %1691 }
 0x134   :  { %v111_v27 = vmul.f32 %v1692_v26, %v95_v10  ;;  %v126_v31 = vadd.f32 %v1425_v29, %v118_v28 }
 0x136   :  { %v119_v30 = vmul.f32 %v1424_v25, %v111_v27 }
 0x138   :  { %v127_v32 = vadd.f32 %v1425_v29, %v119_v30 }
 0x13a   :  { %v128_v33 = vpack.c.bf16 %v127_v32, %v126_v31 }
 0x13c   :  { %1522 = vmatmul.mubr.msk.bf16.vlgmr.msra.gmra.mxu0 %vm84_vm0, %v128_v33 }
 0x13d   :  { %1527 = vmatprep.mubr.msk.bf16.mxu0 %vm1760_vm1, %v1759_v15 }
 0x1fc   :  { %v184_v35 = vpop.f32.mrf.mxu0 }
 0x1fd   :  { %v185_v36 = vadd.f32 %v1426_v34, %v184_v35 }
 0x1fe   :  { %v1523_v37 = vpop.f32.mrf.mxu0 }
 0x1ff   :  { %v1891_v38 = vpack.c.bf16 %v185_v36, %v185_v36  ;;  %v197_v45 = vmul.f32 0.35355338, %v185_v36 }
 0x200   :  { %v187_v39 = vpop.f32.mrf.mxu0 }
 0x201   :  { %v188_v40 = vadd.f32 %v1426_v34, %v187_v39  ;;  %204 = vrot.lane.b32.xlu0 %v1891_v38, %s1761_s1  ;;  %v1899_v47 = vpack.c.bf16 %v197_v45, %v197_v45 }
 0x202   :  { %v1524_v41 = vpop.f32.mrf.mxu0 }
 0x203   :  { %v1894_v42 = vpack.c.bf16 %v188_v40, %v188_v40  ;;  %v198_v49 = vmul.f32 0.35355338, %v188_v40 }
 0x205   :  { %254 = vrot.lane.b32.xlu1 %v1894_v42, %s1761_s1  ;;  %v1907_v50 = vpack.c.bf16 %v198_v49, %v198_v49 }
 0x273   :  { %v205_v43 = vpop.permute.xlu0 %204 }
 0x274   :  { %v211_v44 = vsel %vm206_vm2, %v205_v43, 0 }
 0x275   :  { %1526 = vmatpush3.bf16.xpose.msra.mxu0 %v211_v44 }
 0x276   :  { %1531 = vmatprep.subr.bf16.mxu0 %v1759_v15 }
 0x277   :  { %v255_v46 = vpop.permute.xlu1 %254 }
 0x278   :  { %v260_v48 = vsel %vm206_vm2, %v255_v46, 0 }
 0x27c   :  { %1528 = vmatmul.mubr.msk.bf16.vlgmr.msra.gmra.mxu0 %vm206_vm2, %v1899_v47 }
 0x27d   :  { %1532 = vmatpush3.bf16.xpose.msra.mxu0 %v260_v48  ;;  %1533 = vmatprep.mubr.msk.bf16.mxu0 %vm1760_vm1, %v1759_v15 }
 0x27e   :  { %1543 = vmatprep.subr.bf16.mxu0 %v1759_v15 }
 0x284   :  { %1534 = vmatmul.mubr.msk.bf16.vlgmr.msra.gmra.mxu0 %vm206_vm2, %v1907_v50 }
 0x285   :  { %1545 = vmatprep.mubr.msk.bf16.mxu0 %vm1760_vm1, %v1759_v15 }
 0x33c   :  { %v247_v55 = vpop.f32.mrf.mxu0 }
 0x33d   :  { %v248_v56 = vadd.f32 %v247_v55, %v1914_v54 }
 0x33e   :  { %v1529_v57 = vpop.f32.mrf.mxu0 }
 0x33f   :  { %v302_v58 = vsel %vm206_vm2, %v248_v56, -inf }
 0x340   :  { %303 = vmax.xlane.f32.xlu1 %v302_v58  ;;  %v250_v59 = vpop.f32.mrf.mxu0 }
 0x342   :  { %v1530_v60 = vpop.f32.mrf.mxu0 }
 0x344   :  { %v296_v61 = vpop.f32.mrf.mxu0 }
 0x345   :  { %v297_v62 = vadd.f32 %v296_v61, %v1914_v54 }
 0x346   :  { %v1535_v63 = vpop.f32.mrf.mxu0 }
 0x347   :  { %v305_v2 = vsel %vm206_vm2, %v297_v62, -inf }
 0x348   :  { %306 = vmax.xlane.f32.xlu0 %v305_v2  ;;  %v299_v3 = vpop.f32.mrf.mxu0 }
 0x34a   :  { %v1536_v4 = vpop.f32.mrf.mxu0 }
 0x351   :  { %375 = vrot.lane.b32.xlu1 %v1894_v42, %s1762_s2 }
 0x355   :  { %428 = vrot.lane.b32.xlu1 %v1891_v38, %s1763_s4 }
 0x3c9   :  { %v304_v5 = vpop.xlane.xlu1 %303 }
 0x3ca   :  { %v308_v6 = vsub.f32 %v248_v56, %v304_v5 }
 0x3cc   :  { %v310_v7 = vmul.f32 1.442695, %v308_v6 }
 0x3cd   :  { %v376_v8 = vpop.permute.xlu1 %375 }
 0x3ce   :  { %1693 = vpow2.f32 %v310_v7  ;;  %v381_v9 = vsel %vm331_vm4, %v376_v8, 0 }
 0x3cf   :  { %1544 = vmatpush3.bf16.msra.mxu0 %v381_v9 }
 0x3d0   :  { %1555 = vmatprep.subr.bf16.mxu0 %v1759_v15 }
 0x3d1   :  { %v307_v10 = vpop.xlane.xlu0 %306  ;;  %v429_v19 = vpop.permute.xlu1 %428 }
 0x3d2   :  { %v309_v11 = vsub.f32 %v297_v62, %v307_v10  ;;  %v434_v26 = vsel %vm206_vm2, %v429_v19, 0 }
 0x3d4   :  { %v312_v12 = vmul.f32 1.442695, %v309_v11 }
 0x3d6   :  { %1695 = vpow2.f32 %v312_v12 }
 0x3db   :  { %v1694_v13 = vpop.eup %1693 }
 0x3dc   :  { %v314_v14 = vsel %vm206_vm2, %v1694_v13, 0.0 }
 0x3dd   :  { %315 = vadd.xlane.f32.xlu0 %v314_v14 }
 0x3e3   :  { %v1696_v16 = vpop.eup %1695 }
 0x3e4   :  { %v317_v17 = vsel %vm206_vm2, %v1696_v16, 0.0 }
 0x3e5   :  { %318 = vadd.xlane.f32.xlu1 %v317_v17 }
 0x3f3   :  { %326 = vrot.lane.b32.xlu0 %v1891_v38, %s1762_s2 }
 0x3f6   :  { %479 = vrot.lane.b32.xlu1 %v1894_v42, %s1763_s4 }
 0x3f7   :  { %426 = vrot.lane.b32.xlu0 %v1899_v47, %s1764_s20 }
 0x3fa   :  { %477 = vrot.lane.b32.xlu1 %v1907_v50, %s1764_s20 }
 0x466   :  { %v316_v18 = vpop.xlane.xlu0 %315 }
 0x467   :  { %1697 = vrcp.f32 %v316_v18 }
 0x46a   :  { %v327_v20 = vpop.permute.xlu0 %326 }
 0x46b   :  { %v333_v21 = vsel %vm331_vm4, %v327_v20, 0 }
 0x46c   :  { %1538 = vmatpush3.bf16.msra.mxu1 %v333_v21 }
 0x46d   :  { %1549 = vmatprep.subr.bf16.mxu1 %v1759_v15 }
 0x46e   :  { %v319_v22 = vpop.xlane.xlu1 %318  ;;  %v427_v31 = vpop.permute.xlu0 %426 }
 0x46f   :  { %1699 = vrcp.f32 %v319_v22 }
 0x472   :  { %v480_v29 = vpop.permute.xlu1 %479 }
 0x473   :  { %v485_v32 = vsel %vm206_vm2, %v480_v29, 0 }
 0x474   :  { %v1698_v23 = vpop.eup %1697 }
 0x475   :  { %v322_v24 = vmul.f32 %v1698_v23, %v1694_v13 }
 0x476   :  { %v478_v33 = vpop.permute.xlu1 %477 }
 0x477   :  { %v324_v25 = vpack.c.bf16 %v322_v24, %v322_v24 }
 0x479   :  { %1540 = vmatmul.mubr.msk.bf16.vlgmr.msra.gmra.mxu1 %vm206_vm2, %v324_v25 }
 0x47a   :  { %1550 = vmatpush3.bf16.xpose.msra.mxu1 %v434_v26  ;;  %1551 = vmatprep.mubr.msk.bf16.mxu1 %vm1760_vm1, %v1759_v15 }
 0x47b   :  { %1561 = vmatprep.subr.bf16.mxu1 %v1759_v15 }
 0x47c   :  { %v1700_v27 = vpop.eup %1699 }
 0x47d   :  { %v323_v28 = vmul.f32 %v1700_v27, %v1696_v16 }
 0x47f   :  { %v325_v30 = vpack.c.bf16 %v323_v28, %v323_v28 }
 0x481   :  { %1546 = vmatmul.mubr.msk.bf16.vlgmr.msra.gmra.mxu0 %vm206_vm2, %v325_v30  ;;  %1552 = vmatmul.mubr.msk.bf16.vlgmr.msra.gmra.mxu1 %vm206_vm2, %v427_v31 }
 0x482   :  { %1556 = vmatpush3.bf16.xpose.msra.mxu0 %v485_v32  ;;  %1557 = vmatprep.mubr.msk.bf16.mxu0 %vm1760_vm1, %v1759_v15 }
 0x483   :  { %1567 = vmatprep.subr.bf16.mxu0 %v1759_v15  ;;  %1563 = vmatprep.mubr.msk.bf16.mxu1 %vm1760_vm1, %v1759_v15 }
 0x489   :  { %1558 = vmatmul.mubr.msk.bf16.vlgmr.msra.gmra.mxu0 %vm206_vm2, %v478_v33 }
 0x48a   :  { %1569 = vmatprep.mubr.msk.bf16.mxu0 %vm1760_vm1, %v1759_v15 }
 0x539   :  { %v369_v34 = vpop.f32.mrf.mxu1 }
 0x53a   :  { %423 = vst.msk [vmem:[#allocation2] sm:$0xff] %vm206_vm2, %v369_v34 }
 0x53b   :  { %v1541_v35 = vpop.f32.mrf.mxu1 }
 0x53d   :  { %v372_v36 = vpop.f32.mrf.mxu1 }
 0x53f   :  { %v1542_v37 = vpop.f32.mrf.mxu1 }
 0x541   :  { %v417_v39 = vpop.f32.mrf.mxu0  ;;  %v470_v40 = vpop.f32.mrf.mxu1 }
 0x542   :  { %424 = vst.msk [vmem:[#allocation2 + $0x8] sm:$0xff] %vm206_vm2, %v417_v39  ;;  %v471_v41 = vadd.f32 %v470_v40, %v1914_v54 }
 0x543   :  { %v1547_v43 = vpop.f32.mrf.mxu0  ;;  %v1553_v44 = vpop.f32.mrf.mxu1 }
 0x544   :  { %v527_v45 = vsel %vm206_vm2, %v471_v41, -inf }
 0x545   :  { %528 = vmax.xlane.f32.xlu0 %v527_v45  ;;  %v420_v46 = vpop.f32.mrf.mxu0  ;;  %v473_v48 = vpop.f32.mrf.mxu1 }
 0x547   :  { %v1548_v49 = vpop.f32.mrf.mxu0  ;;  %v1554_v51 = vpop.f32.mrf.mxu1 }
 0x549   :  { %v521_v52 = vpop.f32.mrf.mxu0 }
 0x54a   :  { %v522_v53 = vadd.f32 %v521_v52, %v1914_v54 }
 0x54b   :  { %v1559_v55 = vpop.f32.mrf.mxu0 }
 0x54c   :  { %v530_v56 = vsel %vm206_vm2, %v522_v53, -inf }
 0x54d   :  { %531 = vmax.xlane.f32.xlu1 %v530_v56  ;;  %v524_v57 = vpop.f32.mrf.mxu0 }
 0x54f   :  { %v1560_v58 = vpop.f32.mrf.mxu0 }
 0x55e   :  { %599 = vrot.lane.b32.xlu1 %v1894_v42, %s1765_s21 }
 0x562   :  { %660 = vrot.lane.b32.xlu1 %v1891_v38, %s1766_s22 }
 0x566   :  { %710 = vrot.lane.b32.xlu1 %v1894_v42, %s1766_s22 }
 0x56a   :  { %708 = vrot.lane.b32.xlu1 %v1907_v50, %s1767_s23 }
 0x5ce   :  { %v529_v59 = vpop.xlane.xlu0 %528 }
 0x5cf   :  { %v533_v60 = vsub.f32 %v471_v41, %v529_v59 }
 0x5d1   :  { %v535_v61 = vmul.f32 1.442695, %v533_v60 }
 0x5d3   :  { %1701 = vpow2.f32 %v535_v61 }
 0x5d6   :  { %v532_v62 = vpop.xlane.xlu1 %531 }
 0x5d7   :  { %v534_v63 = vsub.f32 %v522_v53, %v532_v62 }
 0x5d9   :  { %v537_v2 = vmul.f32 1.442695, %v534_v63 }
 0x5da   :  { %v600_v3 = vpop.permute.xlu1 %599 }
 0x5db   :  { %1703 = vpow2.f32 %v537_v2  ;;  %v605_v4 = vsel %vm331_vm4, %v600_v3, 0 }
 0x5dc   :  { %1568 = vmatpush3.bf16.msra.mxu0 %v605_v4 }
 0x5dd   :  { %1579 = vmatprep.subr.bf16.mxu0 %v1759_v15 }
 0x5de   :  { %v661_v16 = vpop.permute.xlu1 %660 }
 0x5df   :  { %v666_v18 = vsel %vm206_vm2, %v661_v16, 0 }
 0x5e0   :  { %v1702_v5 = vpop.eup %1701 }
 0x5e1   :  { %v539_v6 = vsel %vm206_vm2, %v1702_v5, 0.0 }
 0x5e2   :  { %540 = vadd.xlane.f32.xlu0 %v539_v6  ;;  %v711_v21 = vpop.permute.xlu1 %710 }
 0x5e3   :  { %v716_v24 = vsel %vm206_vm2, %v711_v21, 0 }
 0x5e6   :  { %v709_v25 = vpop.permute.xlu1 %708 }
 0x5e8   :  { %v1704_v7 = vpop.eup %1703 }
 0x5e9   :  { %v542_v8 = vsel %vm206_vm2, %v1704_v7, 0.0 }
 0x5ea   :  { %543 = vadd.xlane.f32.xlu0 %v542_v8 }
 0x600   :  { %551 = vrot.lane.b32.xlu0 %v1891_v38, %s1765_s21 }
 0x604   :  { %658 = vrot.lane.b32.xlu0 %v1899_v47, %s1767_s23 }
 0x66b   :  { %v541_v9 = vpop.xlane.xlu0 %540 }
 0x66c   :  { %1705 = vrcp.f32 %v541_v9 }
 0x673   :  { %v544_v10 = vpop.xlane.xlu0 %543 }
 0x674   :  { %1707 = vrcp.f32 %v544_v10 }
 0x677   :  { %v552_v11 = vpop.permute.xlu0 %551 }
 0x678   :  { %v557_v12 = vsel %vm331_vm4, %v552_v11, 0 }
 0x679   :  { %v1706_v13 = vpop.eup %1705  ;;  %1562 = vmatpush3.bf16.msra.mxu1 %v557_v12 }
 0x67a   :  { %1573 = vmatprep.subr.bf16.mxu1 %v1759_v15  ;;  %v547_v14 = vmul.f32 %v1706_v13, %v1702_v5 }
 0x67b   :  { %v659_v23 = vpop.permute.xlu0 %658 }
 0x67c   :  { %v549_v17 = vpack.c.bf16 %v547_v14, %v547_v14 }
 0x67e   :  { %1564 = vmatmul.mubr.msk.bf16.vlgmr.msra.gmra.mxu1 %vm206_vm2, %v549_v17 }
 0x67f   :  { %1574 = vmatpush3.bf16.xpose.msra.mxu1 %v666_v18  ;;  %1575 = vmatprep.mubr.msk.bf16.mxu1 %vm1760_vm1, %v1759_v15 }
 0x680   :  { %1585 = vmatprep.subr.bf16.mxu1 %v1759_v15 }
 0x681   :  { %v1708_v19 = vpop.eup %1707 }
 0x682   :  { %v548_v20 = vmul.f32 %v1708_v19, %v1704_v7 }
 0x684   :  { %v550_v22 = vpack.c.bf16 %v548_v20, %v548_v20 }
 0x686   :  { %1570 = vmatmul.mubr.msk.bf16.vlgmr.msra.gmra.mxu0 %vm206_vm2, %v550_v22  ;;  %1576 = vmatmul.mubr.msk.bf16.vlgmr.msra.gmra.mxu1 %vm206_vm2, %v659_v23 }
 0x687   :  { %1580 = vmatpush3.bf16.xpose.msra.mxu0 %v716_v24  ;;  %1581 = vmatprep.mubr.msk.bf16.mxu0 %vm1760_vm1, %v1759_v15 }
 0x688   :  { %1591 = vmatprep.subr.bf16.mxu0 %v1759_v15  ;;  %1587 = vmatprep.mubr.msk.bf16.mxu1 %vm1760_vm1, %v1759_v15 }
 0x68e   :  { %1582 = vmatmul.mubr.msk.bf16.vlgmr.msra.gmra.mxu0 %vm206_vm2, %v709_v25 }
 0x68f   :  { %1593 = vmatprep.mubr.msk.bf16.mxu0 %vm1760_vm1, %v1759_v15 }
 0x73e   :  { %v1982_v26 = vpop.f32.mrf.mxu1 }
 0x740   :  { %v1565_v27 = vpop.f32.mrf.mxu1 }
 0x742   :  { %v596_v28 = vpop.f32.mrf.mxu1 }
 0x744   :  { %v1566_v29 = vpop.f32.mrf.mxu1 }
 0x746   :  { %v1984_v30 = vpop.f32.mrf.mxu0  ;;  %v702_v31 = vpop.f32.mrf.mxu1 }
 0x747   :  { %v703_v32 = vadd.f32 %v702_v31, %v1914_v54 }
 0x748   :  { %v1571_v33 = vpop.f32.mrf.mxu0  ;;  %v1577_v34 = vpop.f32.mrf.mxu1 }
 0x749   :  { %v758_v35 = vsel %vm206_vm2, %v703_v32, -inf }
 0x74a   :  { %759 = vmax.xlane.f32.xlu0 %v758_v35  ;;  %v644_v36 = vpop.f32.mrf.mxu0  ;;  %v705_v37 = vpop.f32.mrf.mxu1 }
 0x74c   :  { %v1572_v39 = vpop.f32.mrf.mxu0  ;;  %v1578_v40 = vpop.f32.mrf.mxu1 }
 0x74e   :  { %v752_v41 = vpop.f32.mrf.mxu0 }
 0x74f   :  { %v753_v43 = vadd.f32 %v752_v41, %v1914_v54 }
 0x750   :  { %v1583_v44 = vpop.f32.mrf.mxu0 }
 0x751   :  { %v761_v45 = vsel %vm206_vm2, %v753_v43, -inf }
 0x752   :  { %762 = vmax.xlane.f32.xlu1 %v761_v45  ;;  %v755_v46 = vpop.f32.mrf.mxu0 }
 0x754   :  { %v1584_v48 = vpop.f32.mrf.mxu0 }
 0x763   :  { %830 = vrot.lane.b32.xlu1 %v1894_v42, %s1768_s24 }
 0x767   :  { %891 = vrot.lane.b32.xlu1 %v1891_v38, %s1769_s25 }
 0x76b   :  { %941 = vrot.lane.b32.xlu1 %v1894_v42, %s1769_s25 }
 0x76f   :  { %939 = vrot.lane.b32.xlu1 %v1907_v50, %s1770_s26 }
 0x7d3   :  { %v760_v49 = vpop.xlane.xlu0 %759 }
 0x7d4   :  { %v764_v51 = vsub.f32 %v703_v32, %v760_v49 }
 0x7d6   :  { %v766_v52 = vmul.f32 1.442695, %v764_v51 }
 0x7d8   :  { %1709 = vpow2.f32 %v766_v52 }
 0x7db   :  { %v763_v53 = vpop.xlane.xlu1 %762 }
 0x7dc   :  { %v765_v55 = vsub.f32 %v753_v43, %v763_v53 }
 0x7de   :  { %v768_v56 = vmul.f32 1.442695, %v765_v55 }
 0x7df   :  { %v831_v57 = vpop.permute.xlu1 %830 }
 0x7e0   :  { %1711 = vpow2.f32 %v768_v56  ;;  %v836_v58 = vsel %vm331_vm4, %v831_v57, 0 }
 0x7e1   :  { %1592 = vmatpush3.bf16.msra.mxu0 %v836_v58 }
 0x7e2   :  { %1603 = vmatprep.subr.bf16.mxu0 %v1759_v15 }
 0x7e3   :  { %v892_v6 = vpop.permute.xlu1 %891 }
 0x7e4   :  { %v897_v8 = vsel %vm206_vm2, %v892_v6, 0 }
 0x7e5   :  { %v1710_v59 = vpop.eup %1709 }
 0x7e6   :  { %v770_v60 = vsel %vm206_vm2, %v1710_v59, 0.0 }
 0x7e7   :  { %771 = vadd.xlane.f32.xlu0 %v770_v60  ;;  %v942_v10 = vpop.permute.xlu1 %941 }
 0x7e8   :  { %v947_v13 = vsel %vm206_vm2, %v942_v10, 0 }
 0x7eb   :  { %v940_v14 = vpop.permute.xlu1 %939 }
 0x7ed   :  { %v1712_v61 = vpop.eup %1711 }
 0x7ee   :  { %v773_v50 = vsel %vm206_vm2, %v1712_v61, 0.0 }
 0x7ef   :  { %774 = vadd.xlane.f32.xlu0 %v773_v50 }
 0x805   :  { %782 = vrot.lane.b32.xlu0 %v1891_v38, %s1768_s24 }
 0x809   :  { %889 = vrot.lane.b32.xlu0 %v1899_v47, %s1770_s26 }
 0x870   :  { %v772_v62 = vpop.xlane.xlu0 %771 }
 0x871   :  { %1713 = vrcp.f32 %v772_v62 }
 0x878   :  { %v775_v63 = vpop.xlane.xlu0 %774 }
 0x879   :  { %1715 = vrcp.f32 %v775_v63  ;;  %v1677_v63 = vld [vmem:[%s2136_s5 + $0x8] sm:$0xff]  }
 0x87c   :  { %v783_v2 = vpop.permute.xlu0 %782 }
 0x87d   :  { %v788_v3 = vsel %vm331_vm4, %v783_v2, 0  ;;  %v1678_v2 = vld [vmem:[%s2136_s5] sm:$0xff]  }
 0x87e   :  { %v1714_v4 = vpop.eup %1713  ;;  %1586 = vmatpush3.bf16.msra.mxu1 %v788_v3 }
 0x87f   :  { %1597 = vmatprep.subr.bf16.mxu1 %v1759_v15  ;;  %v778_v5 = vmul.f32 %v1714_v4, %v1710_v59 }
 0x880   :  { %v890_v12 = vpop.permute.xlu0 %889 }
 0x881   :  { %v780_v7 = vpack.c.bf16 %v778_v5, %v778_v5 }
 0x883   :  { %1588 = vmatmul.mubr.msk.bf16.vlgmr.msra.gmra.mxu1 %vm206_vm2, %v780_v7 }
 0x884   :  { %1598 = vmatpush3.bf16.xpose.msra.mxu1 %v897_v8  ;;  %1599 = vmatprep.mubr.msk.bf16.mxu1 %vm1760_vm1, %v1759_v15 }
 0x885   :  { %1609 = vmatprep.subr.bf16.mxu1 %v1759_v15 }
 0x886   :  { %v1716_v47 = vpop.eup %1715 }
 0x887   :  { %v779_v9 = vmul.f32 %v1716_v47, %v1712_v61 }
 0x889   :  { %v781_v11 = vpack.c.bf16 %v779_v9, %v779_v9 }
 0x88b   :  { %1594 = vmatmul.mubr.msk.bf16.vlgmr.msra.gmra.mxu0 %vm206_vm2, %v781_v11  ;;  %1600 = vmatmul.mubr.msk.bf16.vlgmr.msra.gmra.mxu1 %vm206_vm2, %v890_v12 }
 0x88c   :  { %1604 = vmatpush3.bf16.xpose.msra.mxu0 %v947_v13  ;;  %1605 = vmatprep.mubr.msk.bf16.mxu0 %vm1760_vm1, %v1759_v15 }
 0x88d   :  { %1615 = vmatprep.subr.bf16.mxu0 %v1759_v15  ;;  %1611 = vmatprep.mubr.msk.bf16.mxu1 %vm1760_vm1, %v1759_v15 }
 0x893   :  { %1606 = vmatmul.mubr.msk.bf16.vlgmr.msra.gmra.mxu0 %vm206_vm2, %v940_v14 }
 0x894   :  { %1617 = vmatprep.mubr.msk.bf16.mxu0 %vm1760_vm1, %v1759_v15 }
 0x943   :  { %v824_v16 = vpop.f32.mrf.mxu1 }
 0x945   :  { %v1589_v17 = vpop.f32.mrf.mxu1 }
 0x947   :  { %v827_v18 = vpop.f32.mrf.mxu1 }
 0x949   :  { %v1590_v19 = vpop.f32.mrf.mxu1 }
 0x94b   :  { %v872_v20 = vpop.f32.mrf.mxu0  ;;  %v933_v21 = vpop.f32.mrf.mxu1 }
 0x94c   :  { %v934_v22 = vadd.f32 %v933_v21, %v1914_v54 }
 0x94d   :  { %v1595_v23 = vpop.f32.mrf.mxu0  ;;  %v1601_v24 = vpop.f32.mrf.mxu1 }
 0x94e   :  { %v989_v25 = vsel %vm206_vm2, %v934_v22, -inf }
 0x94f   :  { %990 = vmax.xlane.f32.xlu0 %v989_v25  ;;  %v875_v27 = vpop.f32.mrf.mxu0  ;;  %v936_v28 = vpop.f32.mrf.mxu1 }
 0x951   :  { %v1596_v29 = vpop.f32.mrf.mxu0  ;;  %v1602_v31 = vpop.f32.mrf.mxu1 }
 0x953   :  { %v983_v32 = vpop.f32.mrf.mxu0 }
 0x954   :  { %v984_v33 = vadd.f32 %v983_v32, %v1914_v54 }
 0x955   :  { %v1607_v34 = vpop.f32.mrf.mxu0 }
 0x956   :  { %v992_v35 = vsel %vm206_vm2, %v984_v33, -inf }
 0x957   :  { %993 = vmax.xlane.f32.xlu1 %v992_v35  ;;  %v986_v36 = vpop.f32.mrf.mxu0 }
 0x959   :  { %v1608_v37 = vpop.f32.mrf.mxu0 }
 0x95a   :  { %v1679_v37 = vld [vmem:[%s2140_s9 + $0x8] sm:$0xff]  }
 0x968   :  { %1061 = vrot.lane.b32.xlu1 %v1894_v42, %s1771_s27 }
 0x96c   :  { %649 = vrot.lane.b32.xlu1 %v1982_v26, %s1772_s28 }
 0x970   :  { %651 = vrot.lane.b32.xlu1 %v1984_v30, %s1772_s28 }
 0x974   :  { %882 = vrot.lane.b32.xlu1 %v872_v20, %s1773_s0 }
 0x9d8   :  { %v991_v54 = vpop.xlane.xlu0 %990 }
 0x9d9   :  { %v995_v39 = vsub.f32 %v934_v22, %v991_v54  ;;  %v1680_v54 = vld [vmem:[%s2140_s9] sm:$0xff]  }
 0x9db   :  { %v997_v40 = vmul.f32 1.442695, %v995_v39 }
 0x9dd   :  { %1717 = vpow2.f32 %v997_v40 }
 0x9e0   :  { %v994_v41 = vpop.xlane.xlu1 %993 }
 0x9e1   :  { %v996_v43 = vsub.f32 %v984_v33, %v994_v41 }
 0x9e3   :  { %v999_v44 = vmul.f32 1.442695, %v996_v43 }
 0x9e4   :  { %v1062_v45 = vpop.permute.xlu1 %1061 }
 0x9e5   :  { %1719 = vpow2.f32 %v999_v44  ;;  %v1067_v42 = vsel %vm331_vm4, %v1062_v45, 0 }
 0x9e6   :  { %1616 = vmatpush3.bf16.msra.mxu0 %v1067_v42 }
 0x9e7   :  { %1629 = vmatprep.subr.bf16.mxu0 %v1759_v15 }
 0x9e8   :  { %v650_v26 = vpop.permute.xlu1 %649 }
 0x9e9   :  { %656 = vst.msk [vmem:[#allocation2] sm:$0xff] %vm655_vm5, %v650_v26 }
 0x9ea   :  { %v1718_v30 = vpop.eup %1717 }
 0x9eb   :  { %v1001_v46 = vsel %vm206_vm2, %v1718_v30, 0.0 }
 0x9ec   :  { %1002 = vadd.xlane.f32.xlu0 %v1001_v46  ;;  %v652_v48 = vpop.permute.xlu1 %651 }
 0x9ed   :  { %657 = vst.msk [vmem:[#allocation2 + $0x8] sm:$0xff] %vm655_vm5, %v652_v48 }
 0x9f0   :  { %v883_v49 = vpop.permute.xlu1 %882 }
 0x9f1   :  { %888 = vst.msk [vmem:[#allocation2 + $0x8] sm:$0xff] %vm886_vm6, %v883_v49 }
 0x9f2   :  { %v1720_v51 = vpop.eup %1719 }
 0x9f3   :  { %v1004_v52 = vsel %vm206_vm2, %v1720_v51, 0.0 }
 0x9f4   :  { %1005 = vadd.xlane.f32.xlu0 %v1004_v52 }
 0xa0a   :  { %1013 = vrot.lane.b32.xlu0 %v1891_v38, %s1771_s27 }
 0xa0e   :  { %880 = vrot.lane.b32.xlu0 %v824_v16, %s1773_s0  ;;  %v1446_v16 = vld [vmem:[%s2137_s6] ss:$0 sm:$0xff]  ;;  %s1775_s6 = smov [#allocation3]  }
 0xa0f   :  { %s1413_s17 = sshll.u32 %s1775_s6, 4  ;;  %s1414_s17 = int_to_ptr.vmem [resolvable:$true] %s1413_s17 }
 0xa10   :  { %s1737_s18 = scalar_lea.vmem %s1414_s17, 256  ;;  %p1742_p1 = scmp.lt.s32.totalorder %s1414_s17, %s1414_s17 }
 0xa11   :  { %p1738_p0 = scmp.ne.s32.totalorder %s1414_s17, %s1737_s18  ;;  %p1743_p2 = scmp.lt.s32.totalorder %s1737_s18, %s1737_s18 }
 0xa13   :  { %p1744_p3 = por %p1743_p2, %p1742_p1 }
 0xa15   :  { %p1745_p4 = pnand %p1744_p3, %p1738_p0 }
 0xa75   :  { %v1003_v53 = vpop.xlane.xlu0 %1002 }
 0xa76   :  { %1721 = vrcp.f32 %v1003_v53 }
 0xa7d   :  { %v1006_v55 = vpop.xlane.xlu0 %1005 }
 0xa7e   :  { %1723 = vrcp.f32 %v1006_v55 }
 0xa81   :  { %v1014_v56 = vpop.permute.xlu0 %1013 }
 0xa82   :  { %v1019_v57 = vsel %vm331_vm4, %v1014_v56, 0 }
 0xa83   :  { %v1722_v58 = vpop.eup %1721  ;;  %1610 = vmatpush3.bf16.msra.mxu1 %v1019_v57  ;;  %v1681_v57 = vld [vmem:[%s2142_s11 + $0x38] sm:$0xff]  }
 0xa84   :  { %v1009_v59 = vmul.f32 %v1722_v58, %v1718_v30  ;;  %1621 = vmatprep.subr.bf16.mxu1 %v1759_v15  ;;  %v1450_v30 = vld [vmem:[%s2138_s7] ss:$0 sm:$0xff]  ;;  %v1682_v58 = vld [vmem:[%s2142_s11 + $0x30] sm:$0xff]  }
 0xa85   :  { %v881_v60 = vpop.permute.xlu0 %880 }
 0xa86   :  { %887 = vst.msk [vmem:[#allocation2] sm:$0xff] %vm886_vm6, %v881_v60  ;;  %v1011_v61 = vpack.c.bf16 %v1009_v59, %v1009_v59  ;;  %v1683_v59 = vld [vmem:[%s2142_s11 + $0x28] sm:$0xff]   ;;  %v1684_v60 = vld [vmem:[%s2142_s11 + $0x20] sm:$0xff]  }
 0xa88   :  { %1612 = vmatmul.mubr.msk.bf16.vlgmr.msra.gmra.mxu1 %vm206_vm2, %v1011_v61  ;;  %v1685_v61 = vld [vmem:[%s2142_s11 + $0x18] sm:$0xff]  }
 0xa89   :  { %1625 = vmatprep.mubr.msk.bf16.mxu1 %vm1760_vm1, %v1759_v15  ;;  %1622 = vmatpush3.bf16.msra.mxu1 %v1677_v63  ;;  %v1452_v63 = vld [vmem:[%s2141_s10] ss:$0 sm:$0xff] }
 0xa8a   :  { %1623 = vmatprep.subr.bf16.mxu1 %v1759_v15 }
 0xa8b   :  { %v1724_v38 = vpop.eup %1723 }
 0xa8c   :  { %v1010_v50 = vmul.f32 %v1724_v38, %v1720_v51  ;;  %v1451_v51 = vld [vmem:[%s2139_s8] ss:$0 sm:$0xff]  ;;  %v1686_v38 = vld [vmem:[%s2142_s11 + $0x10] sm:$0xff]  }
 0xa8d   :  { %1624 = vmatpush3.bf16.msra.mxu1 %v1678_v2 }
 0xa8e   :  { %v1012_v62 = vpack.c.bf16 %v1010_v50, %v1010_v50  ;;  %1637 = vmatprep.subr.bf16.mxu1 %v1759_v15  ;;  %v1687_v50 = vld [vmem:[%s2142_s11 + $0x8] sm:$0xff]  }
 0xa90   :  { %1618 = vmatmul.mubr.msk.bf16.vlgmr.msra.gmra.mxu0 %vm206_vm2, %v1012_v62  ;;  %v1688_v62 = vld [vmem:[%s2142_s11] sm:$0xff]  }
 0xa91   :  { %1633 = vmatprep.mubr.msk.bf16.mxu0 %vm1760_vm1, %v1759_v15  ;;  %1630 = vmatpush3.bf16.msra.mxu0 %v1679_v37 }
 0xa92   :  { %1631 = vmatprep.subr.bf16.mxu0 %v1759_v15 }
 0xa95   :  { %1632 = vmatpush3.bf16.msra.mxu0 %v1680_v54 }
 0xb48   :  { %v1055_v3 = vpop.f32.mrf.mxu1 }
 0xb49   :  { %1111 = vrot.lane.b32.xlu0 %v1055_v3, %s1774_s15 }
 0xb4a   :  { %v1613_v4 = vpop.f32.mrf.mxu1 }
 0xb4c   :  { %v1058_v5 = vpop.f32.mrf.mxu1 }
 0xb4e   :  { %v1614_v6 = vpop.f32.mrf.mxu1 }
 0xb50   :  { %v1103_v7 = vpop.f32.mrf.mxu0 }
 0xb51   :  { %1113 = vrot.lane.b32.xlu1 %v1103_v7, %s1774_s15 }
 0xb52   :  { %v1619_v8 = vpop.f32.mrf.mxu0 }
 0xb54   :  { %v1106_v47 = vpop.f32.mrf.mxu0 }
 0xb56   :  { %v1620_v9 = vpop.f32.mrf.mxu0 }
 0xbbb   :  { %v1112_v10 = vpop.permute.xlu0 %1111 }
 0xbbc   :  { %1118 = vst.msk [vmem:[#allocation2] sm:$0xff] %vm1117_vm7, %v1112_v10 }
 0xbc3   :  { %v1114_v11 = vpop.permute.xlu1 %1113  ;;  %v1120_v12 = vld [vmem:[#allocation2] sm:$0xff] }
 0xbc4   :  { %1119 = vst.msk [vmem:[#allocation2 + $0x8] sm:$0xff] %vm1117_vm7, %v1114_v11 }
 0xbcb   :  { %v1121_v13 = vld [vmem:[#allocation2 + $0x8] sm:$0xff] }
 0xbcc   :  { %v1122_v14 = vpack.c.bf16 %v1121_v13, %v1120_v12 }
 0xbce   :  { %1626 = vmatmul.mubr.msk.bf16.vlgmr.msra.gmra.mxu1 %vm84_vm0, %v1122_v14 }
 0xbcf   :  { %1653 = vmatprep.mubr.msk.bf16.mxu1 %vm1760_vm1, %v1759_v15  ;;  %1638 = vmatpush3.bf16.msra.mxu1 %v1681_v57 }
 0xbd0   :  { %1639 = vmatprep.subr.bf16.mxu1 %v1759_v15 }
 0xbd3   :  { %1640 = vmatpush3.bf16.msra.mxu1 %v1682_v58 }
 0xbd4   :  { %1641 = vmatprep.subr.bf16.mxu1 %v1759_v15 }
 0xbd7   :  { %1642 = vmatpush3.bf16.msra.mxu1 %v1683_v59 }
 0xbd8   :  { %1643 = vmatprep.subr.bf16.mxu1 %v1759_v15 }
 0xbdb   :  { %1644 = vmatpush3.bf16.msra.mxu1 %v1684_v60 }
 0xbdc   :  { %1645 = vmatprep.subr.bf16.mxu1 %v1759_v15 }
 0xbdf   :  { %1646 = vmatpush3.bf16.msra.mxu1 %v1685_v61 }
 0xbe0   :  { %1647 = vmatprep.subr.bf16.mxu1 %v1759_v15 }
 0xbe3   :  { %1648 = vmatpush3.bf16.msra.mxu1 %v1686_v38 }
 0xbe4   :  { %1649 = vmatprep.subr.bf16.mxu1 %v1759_v15 }
 0xbe7   :  { %1650 = vmatpush3.bf16.msra.mxu1 %v1687_v50 }
 0xbe8   :  { %1651 = vmatprep.subr.bf16.mxu1 %v1759_v15 }
 0xbeb   :  { %1652 = vmatpush3.bf16.msra.mxu1 %v1688_v62 }
 0xc8e   :  { %v1178_v17 = vpop.f32.mrf.mxu1 }
 0xc8f   :  { %v1179_v18 = vadd.f32 %v1446_v16, %v1178_v17 }
 0xc90   :  { %v1627_v19 = vpop.f32.mrf.mxu1 }
 0xc91   :  { %v2059_v20 = vadd.f32 %v1179_v18, %v1850_v0 }
 0xc92   :  { %v1181_v21 = vpop.f32.mrf.mxu1 }
 0xc93   :  { %v1182_v22 = vadd.f32 %v1446_v16, %v1181_v21  ;;  %v1187_v23 = vsel %vm84_vm0, %v2059_v20, 0.0  ;;  %v1458_v21 = vld [vmem:[%s2143_s12] ss:$0 sm:$0xff] }
 0xc94   :  { %1188 = vadd.xlane.f32.xlu0 %v1187_v23  ;;  %v1628_v24 = vpop.f32.mrf.mxu1 }
 0xc95   :  { %v2064_v25 = vadd.f32 %v1182_v22, %v1855_v1 }
 0xc97   :  { %v1190_v27 = vsel %vm84_vm0, %v2064_v25, 0.0 }
 0xc98   :  { %1191 = vadd.xlane.f32.xlu1 %v1190_v27 }
 0xd1d   :  { %v1189_v28 = vpop.xlane.xlu0 %1188 }
 0xd1e   :  { %v1193_v29 = vmul.f32 0.03125, %v1189_v28 }
 0xd20   :  { %v1195_v31 = vsub.f32 %v2059_v20, %v1193_v29 }
 0xd21   :  { %v1192_v0 = vpop.xlane.xlu1 %1191 }
 0xd22   :  { %v1194_v32 = vmul.f32 0.03125, %v1192_v0  ;;  %v1197_v33 = vmul.f32 %v1195_v31, %v1195_v31 }
 0xd24   :  { %v1196_v34 = vsub.f32 %v2064_v25, %v1194_v32  ;;  %v1199_v35 = vsel %vm84_vm0, %v1197_v33, 0.0 }
 0xd25   :  { %1200 = vadd.xlane.f32.xlu0 %v1199_v35 }
 0xd26   :  { %v1198_v36 = vmul.f32 %v1196_v34, %v1196_v34 }
 0xd28   :  { %v1202_v1 = vsel %vm84_vm0, %v1198_v36, 0.0 }
 0xd29   :  { %1203 = vadd.xlane.f32.xlu0 %v1202_v1 }
 0xdae   :  { %v1201_v39 = vpop.xlane.xlu0 %1200 }
 0xdaf   :  { %v1205_v40 = vmul.f32 0.03125, %v1201_v39 }
 0xdb1   :  { %v1207_v41 = vadd.f32 1e-05, %v1205_v40 }
 0xdb2   :  { %v1204_v43 = vpop.xlane.xlu0 %1203 }
 0xdb3   :  { %1725 = vrsqrt.f32 %v1207_v41  ;;  %v1206_v44 = vmul.f32 0.03125, %v1204_v43 }
 0xdb5   :  { %v1208_v45 = vadd.f32 1e-05, %v1206_v44 }
 0xdb7   :  { %1727 = vrsqrt.f32 %v1208_v45 }
 0xdc0   :  { %v1726_v42 = vpop.eup %1725 }
 0xdc1   :  { %v1211_v26 = vmul.f32 %v1726_v42, %v1195_v31 }
 0xdc3   :  { %v1219_v49 = vmul.f32 %v1450_v30, %v1211_v26 }
 0xdc4   :  { %v1728_v46 = vpop.eup %1727 }
 0xdc5   :  { %v1212_v48 = vmul.f32 %v1728_v46, %v1196_v34  ;;  %v1227_v53 = vadd.f32 %v1451_v51, %v1219_v49 }
 0xdc7   :  { %v1220_v52 = vmul.f32 %v1450_v30, %v1212_v48 }
 0xdc9   :  { %v1228_v55 = vadd.f32 %v1451_v51, %v1220_v52 }
 0xdcb   :  { %v1229_v56 = vpack.c.bf16 %v1228_v55, %v1227_v53 }
 0xdcd   :  { %1634 = vmatmul.mubr.msk.bf16.vlgmr.msra.gmra.mxu0 %vm84_vm0, %v1229_v56 }
 0xe8d   :  { %v1285_v2 = vpop.f32.mrf.mxu0 }
 0xe8e   :  { %v1286_v3 = vadd.f32 %v1452_v63, %v1285_v2 }
 0xe8f   :  { %v1635_v4 = vpop.f32.mrf.mxu0 }
 0xe90   :  { %v1456_v5 = vmul.f32 -1.702, %v1286_v3 }
 0xe91   :  { %v1288_v6 = vpop.f32.mrf.mxu0 }
 0xe92   :  { %v1296_v7 = vmul.f32 1.442695, %v1456_v5  ;;  %v1289_v8 = vadd.f32 %v1452_v63, %v1288_v6 }
 0xe93   :  { %v1636_v47 = vpop.f32.mrf.mxu0 }
 0xe94   :  { %1729 = vpow2.f32 %v1296_v7  ;;  %v1457_v9 = vmul.f32 -1.702, %v1289_v8 }
 0xe96   :  { %v1298_v15 = vmul.f32 1.442695, %v1457_v9 }
 0xe98   :  { %1731 = vpow2.f32 %v1298_v15 }
 0xea1   :  { %v1730_v10 = vpop.eup %1729 }
 0xea2   :  { %v1300_v11 = vadd.f32 1.0, %v1730_v10 }
 0xea4   :  { %1733 = vrcp.f32 %v1300_v11 }
 0xea5   :  { %v1732_v12 = vpop.eup %1731 }
 0xea6   :  { %v1301_v13 = vadd.f32 1.0, %v1732_v12 }
 0xea8   :  { %1735 = vrcp.f32 %v1301_v13 }
 0xeb1   :  { %v1734_v14 = vpop.eup %1733 }
 0xeb2   :  { %v1306_v17 = vmul.f32 %v1734_v14, %v1286_v3 }
 0xeb5   :  { %v1736_v16 = vpop.eup %1735 }
 0xeb6   :  { %v1307_v18 = vmul.f32 %v1736_v16, %v1289_v8 }
 0xeb8   :  { %v1308_v19 = vpack.c.bf16 %v1307_v18, %v1306_v17 }
 0xeba   :  { %1654 = vmatmul.mubr.bf16.vlgmr.msra.gmra.mxu1 %v1308_v19 }
 0xf7a   :  { %v1397_v22 = vpop.f32.mrf.mxu1 }
 0xf7b   :  { %v1398_v23 = vadd.f32 %v1458_v21, %v1397_v22 }
 0xf7c   :  { %v1655_v24 = vpop.f32.mrf.mxu1 }
 0xf7d   :  { %v1404_v27 = vadd.f32 %v1398_v23, %v2059_v20 }
 0xf7e   :  { %v1400_v28 = vpop.f32.mrf.mxu1 }
 0xf7f   :  { %1406 = vst.msk [vmem:[#allocation3] sm:$0xff] %vm84_vm0, %v1404_v27  ;;  %v1401_v29 = vadd.f32 %v1458_v21, %v1400_v28 }
 0xf80   :  { %v1656_v31 = vpop.f32.mrf.mxu1 }
 0xf81   :  { %v1405_v0 = vadd.f32 %v1401_v29, %v2064_v25 }
 0xf83   :  { %1407 = vst.msk [vmem:[#allocation3 + $0x8] sm:$0xff] %vm84_vm0, %v1405_v0 }
 0xf84   :  { %1748 = shalt.err (!%p1745_p4)
}
 0xf85   :  { %s1776_s12 = smov 128  }
 0xf86   :  { %1419 = dma.vmem_to_hbm [thread:$0]  %s1414_s17, 256, %s2144_s13, [#allocation4], %s1776_s12, %s1776_s12, %s1772_s28  }
 0xf87   :  { %1757 = dma.done.wait [#allocation4], 256  }
 0xf88   :  { %1758 = vsyncadd [#allocation4], 4294967040 }
 0xf89   :  { %1423 = vsyncpa [#allocation4], 1 }

</bundles_post_ra>
